<compile_context>
chip_gen: v6e
topology: v6e:2x2x1
jax: 0.10.0
libtpu: 0.0.40
codegen_flags: <defaults>
</compile_context>

<pallas_src>
import functools

import jax
import jax.numpy as jnp
import numpy as np
from jax import lax
from jax.experimental import pallas as pl
from jax.experimental.pallas import tpu as pltpu


def _round_up(x, m):
    return (x + m - 1) // m * m


# ----------------------------------------------------------------------------
# Single fused kernel: DGM + sigmoid gating + folded BN + ReLU + subtraction
#                      + conv3x3 + conv3x3.   BB batch elements per grid step.
# ----------------------------------------------------------------------------
def dae_fused_kernel(pw_ref, c1_ref, c2_ref, lf_ref, x_ref, out_ref,
                     fus_scr, h1_scr, *, C, NC, H, W, BB, ROFF, COFF):
    # Zero the padded planes once per kernel body; the 1-px halo ring around
    # each interior supplies the convs' zero padding.  Interiors are rewritten
    # for every batch element, the halo never is, so a single fill per body is
    # enough even when BB > 1.  (Zeroing only the halo strips would need more
    # masked vst's than filling the shrunken planes, hence the full fill.)
    fus_scr[...] = jnp.zeros_like(fus_scr)
    h1_scr[...] = jnp.zeros_like(h1_scr)

    # SMEM scalars hoisted once per kernel body (reused across batch elems).
    gamma = pw_ref[0]
    s1 = [pw_ref[1 + c] for c in range(C)]
    b1 = [pw_ref[1 + C + c] for c in range(C)]
    s2 = [pw_ref[1 + 2 * C + c] for c in range(C)]
    b2 = [pw_ref[1 + 3 * C + c] for c in range(C)]

    for b in range(BB):
        # ---------------- pointwise stage (VPU only) --------------------------
        x2 = x_ref[b, 0]                      # (H, W)
        seg = jax.nn.sigmoid(x2)

        x1 = [lf_ref[b, c] for c in range(C)]     # per-channel (H, W) planes
        # DGM is degenerate: energy[i, j] = <x1[i], x2> is constant along j,
        # so softmax(max - energy) is exactly uniform 1/C and bmm(relation, x1)
        # is the per-pixel channel mean of x1 (exact algebraic simplification).
        tot = x1[0]
        for c in range(1, C):
            tot = tot + x1[c]
        dgm = tot * (1.0 / C)

        for c in range(C):
            lf_new = gamma * dgm + x1[c]
            fgc = lf_new * seg                # foreground
            bgc = lf_new - fgc                # background = lf_new * (1 - seg)
            r1 = jnp.maximum(fgc * s1[c] + b1[c], 0.0)   # relu(bn1(alpha*fg))
            r2 = jnp.maximum(bgc * s2[c] + b2[c], 0.0)   # relu(bn2(beta*bg))
            fus_scr[c, ROFF:ROFF + H, COFF:COFF + W] = r1 - r2

        # ---------------- conv1: 3x3, stride 1, pad 1 -------------------------
        # Tiny channel count -> scalar-weight tap accumulation on the VPU.
        # Loop order: taps outer, output channels inner, so only C
        # accumulators + one tap are live (no vreg spills); every tap is still
        # read exactly once.  Tap reads stay inside one 128-lane tile.
        acc = [jnp.zeros((H, W), jnp.float32) for _ in range(C)]
        for ci in range(C):
            for kh in range(3):
                for kw in range(3):
                    t = fus_scr[ci, ROFF + kh - 1:ROFF + kh - 1 + H,
                                COFF + kw - 1:COFF + kw - 1 + W]
                    w = [c1_ref[(co * C + ci) * 9 + kh * 3 + kw]   # hoisted SMEM reads
                         for co in range(C)]
                    for co in range(C):
                        acc[co] = acc[co] + w[co] * t
        for co in range(C):
            h1_scr[co, ROFF:ROFF + H, COFF:COFF + W] = (
                acc[co] + c1_ref[C * C * 9 + co])

        # ---------------- conv2: 3x3, stride 1, pad 1 -------------------------
        acc = [jnp.zeros((H, W), jnp.float32) for _ in range(NC)]
        for ci in range(C):
            for kh in range(3):
                for kw in range(3):
                    t = h1_scr[ci, ROFF + kh - 1:ROFF + kh - 1 + H,
                               COFF + kw - 1:COFF + kw - 1 + W]
                    w = [c2_ref[(co * C + ci) * 9 + kh * 3 + kw]
                         for co in range(NC)]
                    for co in range(NC):
                        acc[co] = acc[co] + w[co] * t
        for co in range(NC):
            out_ref[b, co] = (acc[co] + c2_ref[NC * C * 9 + co]).astype(out_ref.dtype)


# ----------------------------------------------------------------------------
# Bilinear upsample (align_corners=True) helpers.
# ----------------------------------------------------------------------------
def _bilinear_matrix(out_n, in_n):
    """(out_n, in_n) interpolation matrix for align_corners=True bilinear."""
    if out_n == 1 or in_n == 1:
        src = np.zeros((out_n,), np.float64)
    else:
        src = np.arange(out_n, dtype=np.float64) * (in_n - 1) / (out_n - 1)
    i0 = np.clip(np.floor(src).astype(np.int64), 0, in_n - 1)
    i1 = np.clip(i0 + 1, 0, in_n - 1)
    f = src - i0
    m = np.zeros((out_n, in_n), np.float64)
    m[np.arange(out_n), i0] += 1.0 - f
    m[np.arange(out_n), i1] += f
    return m.astype(np.float32)


def upsample_bilinear_align_corners(x, out_hw):
    """Gather-based formulation (used only by the pure-JAX reference)."""
    B, C, H, W = x.shape
    OH, OW = out_hw

    def coords(out_n, in_n):
        if out_n == 1 or in_n == 1:
            src = jnp.zeros((out_n,), jnp.float32)
        else:
            src = jnp.arange(out_n, dtype=jnp.float32) * (in_n - 1) / (out_n - 1)
        i0 = jnp.clip(jnp.floor(src).astype(jnp.int32), 0, in_n - 1)
        i1 = jnp.clip(i0 + 1, 0, in_n - 1)
        return i0, i1, src - i0.astype(jnp.float32)

    h0, h1, fh = coords(OH, H)
    w0, w1, fw = coords(OW, W)
    x00 = x[:, :, h0, :][:, :, :, w0]
    x01 = x[:, :, h0, :][:, :, :, w1]
    x10 = x[:, :, h1, :][:, :, :, w0]
    x11 = x[:, :, h1, :][:, :, :, w1]
    fh_ = fh[None, None, :, None]
    fw_ = fw[None, None, None, :]
    return (x00 * (1 - fh_) * (1 - fw_) + x01 * (1 - fh_) * fw_
            + x10 * fh_ * (1 - fw_) + x11 * fh_ * fw_)


def _pick_batch_block(batch):
    """Whole batch in one grid step on single-TensorCore chips (v5e / v6e);
    one batch element per (parallel) grid step otherwise (v7x & default)."""
    try:
        kind = jax.devices()[0].device_kind.lower()
    except Exception:
        return 1
    single_tc = any(t in kind for t in ("v5 lite", "v5e", "v6 lite", "v6e"))
    return batch if single_tc else 1


# ----------------------------------------------------------------------------
# Wrapper.
# ----------------------------------------------------------------------------
def dae_forward(params, low_feature, x):
    B, C, Hl, Wl = low_feature.shape
    _, _, H, W = x.shape
    NC = params["conv2_w"].shape[0]
    eps = 1e-5

    # Bilinear upsample (align_corners=True) as two separable matmuls with
    # precomputed interpolation matrices — gather-free, fuses cleanly in XLA.
    # TODO(synk): could be folded in-kernel on the otherwise-idle MXU.
    wh = jnp.asarray(_bilinear_matrix(H, Hl))           # (H, Hl)
    ww = jnp.asarray(_bilinear_matrix(W, Wl))           # (W, Wl)
    lf_up = jnp.einsum("hi,bcij,wj->bchw", wh,
                       low_feature.astype(jnp.float32), ww,
                       precision=lax.Precision.HIGHEST)
    x = x.astype(jnp.float32)

    # Fold eval-mode BN (and alpha/beta) into per-channel scale/shift.
    inv1 = params["bn1_w"] / jnp.sqrt(params["bn1_rv"] + eps)
    inv2 = params["bn2_w"] / jnp.sqrt(params["bn2_rv"] + eps)
    s1 = params["alpha"][0] * inv1
    b1 = params["bn1_b"] - params["bn1_rm"] * inv1
    s2 = params["beta"][0] * inv2
    b2 = params["bn2_b"] - params["bn2_rm"] * inv2

    pw = jnp.concatenate(
        [params["gamma"].reshape(1), s1, b1, s2, b2]).astype(jnp.float32)
    c1 = jnp.concatenate(
        [params["conv1_w"].reshape(-1), params["conv1_b"].reshape(-1)]).astype(jnp.float32)
    c2 = jnp.concatenate(
        [params["conv2_w"].reshape(-1), params["conv2_b"].reshape(-1)]).astype(jnp.float32)

    # Padded scratch-plane geometry: interior at (ROFF, COFF) with a 1-px halo
    # ring.  ROFF=8 keeps the interior stores sublane-aligned; COFF=1 keeps
    # every 3x3 tap read (cols 0..W+1) inside a single 128-lane tile.
    ROFF, COFF = 8, 1
    sub_ext = _round_up(ROFF + H + 1, 8)       # 32 for H=16
    lane_ext = _round_up(COFF + W + 1, 128)    # 128 for W=16

    bb = _pick_batch_block(B)                  # batch elements per grid step
    kernel = functools.partial(dae_fused_kernel, C=C, NC=NC, H=H, W=W, BB=bb,
                               ROFF=ROFF, COFF=COFF)
    out = pl.pallas_call(
        kernel,
        out_shape=jax.ShapeDtypeStruct((B, NC, H, W), jnp.float32),
        grid=(B // bb,),
        in_specs=[
            pl.BlockSpec(memory_space=pltpu.MemorySpace.SMEM),     # gamma + folded BN
            pl.BlockSpec(memory_space=pltpu.MemorySpace.SMEM),     # conv1 weights/bias
            pl.BlockSpec(memory_space=pltpu.MemorySpace.SMEM),     # conv2 weights/bias
            pl.BlockSpec((bb, C, H, W), lambda i: (i, 0, 0, 0)),   # upsampled low feature
            pl.BlockSpec((bb, 1, H, W), lambda i: (i, 0, 0, 0)),   # x
        ],
        out_specs=pl.BlockSpec((bb, NC, H, W), lambda i: (i, 0, 0, 0)),
        scratch_shapes=[
            pltpu.VMEM((C, sub_ext, lane_ext), jnp.float32),       # padded fusion
            pltpu.VMEM((C, sub_ext, lane_ext), jnp.float32),       # padded conv1 output
        ],
        compiler_params=pltpu.CompilerParams(
            dimension_semantics=("parallel",)),
    )(pw, c1, c2, lf_up, x)
    return out


# ----------------------------------------------------------------------------
# Pure-JAX reference (eval-mode BN, faithful un-simplified DGM) for checking.
# ----------------------------------------------------------------------------
def dae_reference(params, low_feature, x):
    eps = 1e-5
    B, C, _, _ = low_feature.shape
    H, W = x.shape[2], x.shape[3]
    hi = lax.Precision.HIGHEST

    lf = upsample_bilinear_align_corners(low_feature, (H, W)).astype(jnp.float32)
    x1 = lf.reshape(B, C, H * W)
    x2 = jnp.broadcast_to(x.reshape(B, 1, H * W), (B, C, H * W)).astype(jnp.float32)
    energy = jnp.einsum('bik,bjk->bij', x1, x2, precision=hi)
    energy_new = jnp.max(energy, axis=-1, keepdims=True) - energy
    relation = jax.nn.softmax(energy_new, axis=-1)
    dgm = jnp.einsum('bij,bjk->bik', relation, x1, precision=hi).reshape(B, C, H, W)
    lf = params["gamma"] * dgm + lf

    seg = jax.nn.sigmoid(x.astype(jnp.float32))
    fg = lf * seg
    bg = lf * (1.0 - seg)

    def bn(v, w, b, rm, rv):
        c = lambda a: a[None, :, None, None]
        return (v - c(rm)) / jnp.sqrt(c(rv) + eps) * c(w) + c(b)

    r1 = jax.nn.relu(bn(params["alpha"] * fg, params["bn1_w"], params["bn1_b"],
                        params["bn1_rm"], params["bn1_rv"]))
    r2 = jax.nn.relu(bn(params["beta"] * bg, params["bn2_w"], params["bn2_b"],
                        params["bn2_rm"], params["bn2_rv"]))
    fusion = r1 - r2

    def conv(v, w, b):
        y = lax.conv_general_dilated(v, w, (1, 1), ((1, 1), (1, 1)),
                                     dimension_numbers=("NCHW", "OIHW", "NCHW"),
                                     precision=hi)
        return y + b[None, :, None, None]

    return conv(conv(fusion, params["conv1_w"], params["conv1_b"]),
                params["conv2_w"], params["conv2_b"])


if __name__ == "__main__":
    B, C, nclasses = 2, 4, 3        # in_dim_low = 4
    Hl = Wl = 8                      # low_feature spatial (pre-upsample)
    H = W = 16                       # x spatial

    key = jax.random.PRNGKey(0)
    k_lf, k_x, k_w1, k_b1, k_w2, k_b2 = jax.random.split(key, 6)

    low_feature = jax.random.normal(k_lf, (B, C, Hl, Wl), jnp.float32)
    x = jax.random.normal(k_x, (B, 1, H, W), jnp.float32)

    fan_in = C * 3 * 3
    bound = 1.0 / float(np.sqrt(fan_in))
    params = {
        # nn.Parameter inits
        "gamma": jnp.zeros((1,), jnp.float32),   # DGM gamma = zeros(1)
        "alpha": jnp.ones((1,), jnp.float32),
        "beta": jnp.ones((1,), jnp.float32),
        # BatchNorm2d defaults (weight=1, bias=0, running stats 0/1)
        "bn1_w": jnp.ones((C,), jnp.float32),
        "bn1_b": jnp.zeros((C,), jnp.float32),
        "bn1_rm": jnp.zeros((C,), jnp.float32),
        "bn1_rv": jnp.ones((C,), jnp.float32),
        "bn2_w": jnp.ones((C,), jnp.float32),
        "bn2_b": jnp.zeros((C,), jnp.float32),
        "bn2_rm": jnp.zeros((C,), jnp.float32),
        "bn2_rv": jnp.ones((C,), jnp.float32),
        # Conv2d weights: uniform(-1/sqrt(fan_in), 1/sqrt(fan_in))
        "conv1_w": jax.random.uniform(k_w1, (C, C, 3, 3), jnp.float32,
                                      minval=-bound, maxval=bound),
        "conv1_b": jax.random.uniform(k_b1, (C,), jnp.float32,
                                      minval=-bound, maxval=bound),
        "conv2_w": jax.random.uniform(k_w2, (nclasses, C, 3, 3), jnp.float32,
                                      minval=-bound, maxval=bound),
        "conv2_b": jax.random.uniform(k_b2, (nclasses,), jnp.float32,
                                      minval=-bound, maxval=bound),
    }

    fwd = jax.jit(dae_forward)
    out = fwd(params, low_feature, x)
    jax.block_until_ready(out)
    assert out.shape == (B, nclasses, H, W)
    ref = dae_reference(params, low_feature, x)
    np.testing.assert_allclose(np.asarray(out), np.asarray(ref),
                               rtol=1e-4, atol=1e-4)

    # Exercise the DGM / BN folding paths with non-default parameter values.
    params2 = dict(params)
    params2.update(
        gamma=jnp.full((1,), 0.7, jnp.float32),
        alpha=jnp.full((1,), 1.3, jnp.float32),
        beta=jnp.full((1,), 0.6, jnp.float32),
        bn1_w=jnp.full((C,), 1.1, jnp.float32),
        bn1_b=jnp.full((C,), 0.05, jnp.float32),
        bn1_rm=jnp.full((C,), 0.2, jnp.float32),
        bn1_rv=jnp.full((C,), 1.5, jnp.float32),
        bn2_rm=jnp.full((C,), -0.1, jnp.float32),
        bn2_rv=jnp.full((C,), 0.8, jnp.float32),
    )
    out2 = fwd(params2, low_feature, x)
    jax.block_until_ready(out2)
    ref2 = dae_reference(params2, low_feature, x)
    np.testing.assert_allclose(np.asarray(out2), np.asarray(ref2),
                               rtol=1e-4, atol=1e-4)

    print("KERNEL_OK")
</pallas_src>

<mosaic_0001>
module attributes {stable_mosaic.version = 11 : i64} {
  func.func @dae_fused_kernel(%arg0: i32, %arg1: memref<17xf32, #tpu.memory_space<smem>>, %arg2: memref<148xf32, #tpu.memory_space<smem>>, %arg3: memref<111xf32, #tpu.memory_space<smem>>, %arg4: memref<1x4x16x16xf32, #tpu.memory_space<vmem>>, %arg5: memref<1x1x16x16xf32, #tpu.memory_space<vmem>>, %arg6: memref<1x3x16x16xf32, #tpu.memory_space<vmem>>, %arg7: memref<4x32x128xf32, #tpu.memory_space<vmem>>, %arg8: memref<4x32x128xf32, #tpu.memory_space<vmem>>) attributes {dimension_semantics = [#tpu.dimension_semantics<parallel>], iteration_bounds = array<i64: 2>, scalar_prefetch = 0 : i64, scratch_operands = 2 : i64, tpu.core_type = #tpu.core_type<tc>, window_params = [{transform_indices = @transform_0, window_bounds = array<i64: 17>}, {transform_indices = @transform_1, window_bounds = array<i64: 148>}, {transform_indices = @transform_2, window_bounds = array<i64: 111>}, {transform_indices = @transform_3, window_bounds = array<i64: 1, 4, 16, 16>}, {transform_indices = @transform_4, window_bounds = array<i64: 1, 1, 16, 16>}, {transform_indices = @transform_5, window_bounds = array<i64: 1, 3, 16, 16>}]} {
    %cst = arith.constant 0.000000e+00 : f32
    %0 = vector.broadcast %cst : f32 to vector<4x32x128xf32>
    %c0 = arith.constant 0 : index
    %c0_0 = arith.constant 0 : index
    %c0_1 = arith.constant 0 : index
    %1 = vector.load %arg7[%c0, %c0_0, %c0_1] : memref<4x32x128xf32, #tpu.memory_space<vmem>>, vector<4x32x128xf32>
    tpu.vector_store %arg7[%c0, %c0_0, %c0_1], %0 {strides = array<i32>} : memref<4x32x128xf32, #tpu.memory_space<vmem>>, vector<4x32x128xf32>,
    %cst_2 = arith.constant 0.000000e+00 : f32
    %2 = vector.broadcast %cst_2 : f32 to vector<4x32x128xf32>
    %c0_3 = arith.constant 0 : index
    %c0_4 = arith.constant 0 : index
    %c0_5 = arith.constant 0 : index
    %3 = vector.load %arg8[%c0_3, %c0_4, %c0_5] : memref<4x32x128xf32, #tpu.memory_space<vmem>>, vector<4x32x128xf32>
    tpu.vector_store %arg8[%c0_3, %c0_4, %c0_5], %2 {strides = array<i32>} : memref<4x32x128xf32, #tpu.memory_space<vmem>>, vector<4x32x128xf32>,
    %c0_6 = arith.constant 0 : index
    %4 = memref.load %arg1[%c0_6] : memref<17xf32, #tpu.memory_space<smem>>
    %c1 = arith.constant 1 : index
    %5 = memref.load %arg1[%c1] : memref<17xf32, #tpu.memory_space<smem>>
    %c2 = arith.constant 2 : index
    %6 = memref.load %arg1[%c2] : memref<17xf32, #tpu.memory_space<smem>>
    %c3 = arith.constant 3 : index
    %7 = memref.load %arg1[%c3] : memref<17xf32, #tpu.memory_space<smem>>
    %c4 = arith.constant 4 : index
    %8 = memref.load %arg1[%c4] : memref<17xf32, #tpu.memory_space<smem>>
    %c5 = arith.constant 5 : index
    %9 = memref.load %arg1[%c5] : memref<17xf32, #tpu.memory_space<smem>>
    %c6 = arith.constant 6 : index
    %10 = memref.load %arg1[%c6] : memref<17xf32, #tpu.memory_space<smem>>
    %c7 = arith.constant 7 : index
    %11 = memref.load %arg1[%c7] : memref<17xf32, #tpu.memory_space<smem>>
    %c8 = arith.constant 8 : index
    %12 = memref.load %arg1[%c8] : memref<17xf32, #tpu.memory_space<smem>>
    %c9 = arith.constant 9 : index
    %13 = memref.load %arg1[%c9] : memref<17xf32, #tpu.memory_space<smem>>
    %c10 = arith.constant 10 : index
    %14 = memref.load %arg1[%c10] : memref<17xf32, #tpu.memory_space<smem>>
    %c11 = arith.constant 11 : index
    %15 = memref.load %arg1[%c11] : memref<17xf32, #tpu.memory_space<smem>>
    %c12 = arith.constant 12 : index
    %16 = memref.load %arg1[%c12] : memref<17xf32, #tpu.memory_space<smem>>
    %c13 = arith.constant 13 : index
    %17 = memref.load %arg1[%c13] : memref<17xf32, #tpu.memory_space<smem>>
    %c14 = arith.constant 14 : index
    %18 = memref.load %arg1[%c14] : memref<17xf32, #tpu.memory_space<smem>>
    %c15 = arith.constant 15 : index
    %19 = memref.load %arg1[%c15] : memref<17xf32, #tpu.memory_space<smem>>
    %c16 = arith.constant 16 : index
    %20 = memref.load %arg1[%c16] : memref<17xf32, #tpu.memory_space<smem>>
    %c0_7 = arith.constant 0 : index
    %c0_8 = arith.constant 0 : index
    %c0_9 = arith.constant 0 : index
    %c0_10 = arith.constant 0 : index
    %21 = vector.load %arg5[%c0_7, %c0_8, %c0_9, %c0_10] : memref<1x1x16x16xf32, #tpu.memory_space<vmem>>, vector<1x1x16x16xf32>
    %22 = vector.shape_cast %21 : vector<1x1x16x16xf32> to vector<16x16xf32>
    %23 = arith.negf %22 : vector<16x16xf32>
    %24 = math.exp %23 : vector<16x16xf32>
    %cst_11 = arith.constant 1.000000e+00 : f32
    %25 = vector.broadcast %cst_11 : f32 to vector<16x16xf32>
    %26 = arith.addf %25, %24 : vector<16x16xf32>
    %27 = arith.divf %25, %26 : vector<16x16xf32>
    %c0_12 = arith.constant 0 : index
    %c0_13 = arith.constant 0 : index
    %c0_14 = arith.constant 0 : index
    %c0_15 = arith.constant 0 : index
    %28 = vector.load %arg4[%c0_12, %c0_13, %c0_14, %c0_15] : memref<1x4x16x16xf32, #tpu.memory_space<vmem>>, vector<1x1x16x16xf32>
    %29 = vector.shape_cast %28 : vector<1x1x16x16xf32> to vector<16x16xf32>
    %c0_16 = arith.constant 0 : index
    %c1_17 = arith.constant 1 : index
    %c0_18 = arith.constant 0 : index
    %c0_19 = arith.constant 0 : index
    %30 = vector.load %arg4[%c0_16, %c1_17, %c0_18, %c0_19] : memref<1x4x16x16xf32, #tpu.memory_space<vmem>>, vector<1x1x16x16xf32>
    %31 = vector.shape_cast %30 : vector<1x1x16x16xf32> to vector<16x16xf32>
    %c0_20 = arith.constant 0 : index
    %c2_21 = arith.constant 2 : index
    %c0_22 = arith.constant 0 : index
    %c0_23 = arith.constant 0 : index
    %32 = vector.load %arg4[%c0_20, %c2_21, %c0_22, %c0_23] : memref<1x4x16x16xf32, #tpu.memory_space<vmem>>, vector<1x1x16x16xf32>
    %33 = vector.shape_cast %32 : vector<1x1x16x16xf32> to vector<16x16xf32>
    %c0_24 = arith.constant 0 : index
    %c3_25 = arith.constant 3 : index
    %c0_26 = arith.constant 0 : index
    %c0_27 = arith.constant 0 : index
    %34 = vector.load %arg4[%c0_24, %c3_25, %c0_26, %c0_27] : memref<1x4x16x16xf32, #tpu.memory_space<vmem>>, vector<1x1x16x16xf32>
    %35 = vector.shape_cast %34 : vector<1x1x16x16xf32> to vector<16x16xf32>
    %36 = arith.addf %29, %31 : vector<16x16xf32>
    %37 = arith.addf %36, %33 : vector<16x16xf32>
    %38 = arith.addf %37, %35 : vector<16x16xf32>
    %cst_28 = arith.constant 2.500000e-01 : f32
    %39 = vector.broadcast %cst_28 : f32 to vector<16x16xf32>
    %40 = arith.mulf %38, %39 : vector<16x16xf32>
    %41 = vector.broadcast %4 : f32 to vector<16x16xf32>
    %42 = arith.mulf %41, %40 : vector<16x16xf32>
    %43 = arith.addf %42, %29 : vector<16x16xf32>
    %44 = arith.mulf %43, %27 : vector<16x16xf32>
    %45 = arith.subf %43, %44 : vector<16x16xf32>
    %46 = vector.broadcast %5 : f32 to vector<16x16xf32>
    %47 = arith.mulf %44, %46 : vector<16x16xf32>
    %48 = vector.broadcast %9 : f32 to vector<16x16xf32>
    %49 = arith.addf %47, %48 : vector<16x16xf32>
    %cst_29 = arith.constant 0.000000e+00 : f32
    %50 = vector.broadcast %cst_29 : f32 to vector<16x16xf32>
    %51 = arith.maximumf %49, %50 : vector<16x16xf32>
    %52 = vector.broadcast %13 : f32 to vector<16x16xf32>
    %53 = arith.mulf %45, %52 : vector<16x16xf32>
    %54 = vector.broadcast %17 : f32 to vector<16x16xf32>
    %55 = arith.addf %53, %54 : vector<16x16xf32>
    %cst_30 = arith.constant 0.000000e+00 : f32
    %56 = vector.broadcast %cst_30 : f32 to vector<16x16xf32>
    %57 = arith.maximumf %55, %56 : vector<16x16xf32>
    %58 = arith.subf %51, %57 : vector<16x16xf32>
    %c0_31 = arith.constant 0 : index
    %c8_32 = arith.constant 8 : index
    %c1_33 = arith.constant 1 : index
    %59 = vector.load %arg7[%c0_31, %c8_32, %c1_33] : memref<4x32x128xf32, #tpu.memory_space<vmem>>, vector<1x16x16xf32>
    %60 = vector.shape_cast %59 : vector<1x16x16xf32> to vector<16x16xf32>
    %61 = vector.shape_cast %58 : vector<16x16xf32> to vector<1x16x16xf32>
    tpu.vector_store %arg7[%c0_31, %c8_32, %c1_33], %61 {strides = array<i32>} : memref<4x32x128xf32, #tpu.memory_space<vmem>>, vector<1x16x16xf32>,
    %62 = vector.broadcast %4 : f32 to vector<16x16xf32>
    %63 = arith.mulf %62, %40 : vector<16x16xf32>
    %64 = arith.addf %63, %31 : vector<16x16xf32>
    %65 = arith.mulf %64, %27 : vector<16x16xf32>
    %66 = arith.subf %64, %65 : vector<16x16xf32>
    %67 = vector.broadcast %6 : f32 to vector<16x16xf32>
    %68 = arith.mulf %65, %67 : vector<16x16xf32>
    %69 = vector.broadcast %10 : f32 to vector<16x16xf32>
    %70 = arith.addf %68, %69 : vector<16x16xf32>
    %cst_34 = arith.constant 0.000000e+00 : f32
    %71 = vector.broadcast %cst_34 : f32 to vector<16x16xf32>
    %72 = arith.maximumf %70, %71 : vector<16x16xf32>
    %73 = vector.broadcast %14 : f32 to vector<16x16xf32>
    %74 = arith.mulf %66, %73 : vector<16x16xf32>
    %75 = vector.broadcast %18 : f32 to vector<16x16xf32>
    %76 = arith.addf %74, %75 : vector<16x16xf32>
    %cst_35 = arith.constant 0.000000e+00 : f32
    %77 = vector.broadcast %cst_35 : f32 to vector<16x16xf32>
    %78 = arith.maximumf %76, %77 : vector<16x16xf32>
    %79 = arith.subf %72, %78 : vector<16x16xf32>
    %c1_36 = arith.constant 1 : index
    %c8_37 = arith.constant 8 : index
    %c1_38 = arith.constant 1 : index
    %80 = vector.load %arg7[%c1_36, %c8_37, %c1_38] : memref<4x32x128xf32, #tpu.memory_space<vmem>>, vector<1x16x16xf32>
    %81 = vector.shape_cast %80 : vector<1x16x16xf32> to vector<16x16xf32>
    %82 = vector.shape_cast %79 : vector<16x16xf32> to vector<1x16x16xf32>
    tpu.vector_store %arg7[%c1_36, %c8_37, %c1_38], %82 {strides = array<i32>} : memref<4x32x128xf32, #tpu.memory_space<vmem>>, vector<1x16x16xf32>,
    %83 = vector.broadcast %4 : f32 to vector<16x16xf32>
    %84 = arith.mulf %83, %40 : vector<16x16xf32>
    %85 = arith.addf %84, %33 : vector<16x16xf32>
    %86 = arith.mulf %85, %27 : vector<16x16xf32>
    %87 = arith.subf %85, %86 : vector<16x16xf32>
    %88 = vector.broadcast %7 : f32 to vector<16x16xf32>
    %89 = arith.mulf %86, %88 : vector<16x16xf32>
    %90 = vector.broadcast %11 : f32 to vector<16x16xf32>
    %91 = arith.addf %89, %90 : vector<16x16xf32>
    %cst_39 = arith.constant 0.000000e+00 : f32
    %92 = vector.broadcast %cst_39 : f32 to vector<16x16xf32>
    %93 = arith.maximumf %91, %92 : vector<16x16xf32>
    %94 = vector.broadcast %15 : f32 to vector<16x16xf32>
    %95 = arith.mulf %87, %94 : vector<16x16xf32>
    %96 = vector.broadcast %19 : f32 to vector<16x16xf32>
    %97 = arith.addf %95, %96 : vector<16x16xf32>
    %cst_40 = arith.constant 0.000000e+00 : f32
    %98 = vector.broadcast %cst_40 : f32 to vector<16x16xf32>
    %99 = arith.maximumf %97, %98 : vector<16x16xf32>
    %100 = arith.subf %93, %99 : vector<16x16xf32>
    %c2_41 = arith.constant 2 : index
    %c8_42 = arith.constant 8 : index
    %c1_43 = arith.constant 1 : index
    %101 = vector.load %arg7[%c2_41, %c8_42, %c1_43] : memref<4x32x128xf32, #tpu.memory_space<vmem>>, vector<1x16x16xf32>
    %102 = vector.shape_cast %101 : vector<1x16x16xf32> to vector<16x16xf32>
    %103 = vector.shape_cast %100 : vector<16x16xf32> to vector<1x16x16xf32>
    tpu.vector_store %arg7[%c2_41, %c8_42, %c1_43], %103 {strides = array<i32>} : memref<4x32x128xf32, #tpu.memory_space<vmem>>, vector<1x16x16xf32>,
    %104 = vector.broadcast %4 : f32 to vector<16x16xf32>
    %105 = arith.mulf %104, %40 : vector<16x16xf32>
    %106 = arith.addf %105, %35 : vector<16x16xf32>
    %107 = arith.mulf %106, %27 : vector<16x16xf32>
    %108 = arith.subf %106, %107 : vector<16x16xf32>
    %109 = vector.broadcast %8 : f32 to vector<16x16xf32>
    %110 = arith.mulf %107, %109 : vector<16x16xf32>
    %111 = vector.broadcast %12 : f32 to vector<16x16xf32>
    %112 = arith.addf %110, %111 : vector<16x16xf32>
    %cst_44 = arith.constant 0.000000e+00 : f32
    %113 = vector.broadcast %cst_44 : f32 to vector<16x16xf32>
    %114 = arith.maximumf %112, %113 : vector<16x16xf32>
    %115 = vector.broadcast %16 : f32 to vector<16x16xf32>
    %116 = arith.mulf %108, %115 : vector<16x16xf32>
    %117 = vector.broadcast %20 : f32 to vector<16x16xf32>
    %118 = arith.addf %116, %117 : vector<16x16xf32>
    %cst_45 = arith.constant 0.000000e+00 : f32
    %119 = vector.broadcast %cst_45 : f32 to vector<16x16xf32>
    %120 = arith.maximumf %118, %119 : vector<16x16xf32>
    %121 = arith.subf %114, %120 : vector<16x16xf32>
    %c3_46 = arith.constant 3 : index
    %c8_47 = arith.constant 8 : index
    %c1_48 = arith.constant 1 : index
    %122 = vector.load %arg7[%c3_46, %c8_47, %c1_48] : memref<4x32x128xf32, #tpu.memory_space<vmem>>, vector<1x16x16xf32>
    %123 = vector.shape_cast %122 : vector<1x16x16xf32> to vector<16x16xf32>
    %124 = vector.shape_cast %121 : vector<16x16xf32> to vector<1x16x16xf32>
    tpu.vector_store %arg7[%c3_46, %c8_47, %c1_48], %124 {strides = array<i32>} : memref<4x32x128xf32, #tpu.memory_space<vmem>>, vector<1x16x16xf32>,
    %cst_49 = arith.constant 0.000000e+00 : f32
    %125 = vector.broadcast %cst_49 : f32 to vector<16x16xf32>
    %cst_50 = arith.constant 0.000000e+00 : f32
    %126 = vector.broadcast %cst_50 : f32 to vector<16x16xf32>
    %cst_51 = arith.constant 0.000000e+00 : f32
    %127 = vector.broadcast %cst_51 : f32 to vector<16x16xf32>
    %cst_52 = arith.constant 0.000000e+00 : f32
    %128 = vector.broadcast %cst_52 : f32 to vector<16x16xf32>
    %c0_53 = arith.constant 0 : index
    %c7_54 = arith.constant 7 : index
    %c0_55 = arith.constant 0 : index
    %129 = vector.load %arg7[%c0_53, %c7_54, %c0_55] : memref<4x32x128xf32, #tpu.memory_space<vmem>>, vector<1x16x16xf32>
    %130 = vector.shape_cast %129 : vector<1x16x16xf32> to vector<16x16xf32>
    %c0_56 = arith.constant 0 : index
    %131 = memref.load %arg2[%c0_56] : memref<148xf32, #tpu.memory_space<smem>>
    %c36 = arith.constant 36 : index
    %132 = memref.load %arg2[%c36] : memref<148xf32, #tpu.memory_space<smem>>
    %c72 = arith.constant 72 : index
    %133 = memref.load %arg2[%c72] : memref<148xf32, #tpu.memory_space<smem>>
    %c108 = arith.constant 108 : index
    %134 = memref.load %arg2[%c108] : memref<148xf32, #tpu.memory_space<smem>>
    %135 = vector.broadcast %131 : f32 to vector<16x16xf32>
    %136 = arith.mulf %135, %130 : vector<16x16xf32>
    %137 = arith.addf %125, %136 : vector<16x16xf32>
    %138 = vector.broadcast %132 : f32 to vector<16x16xf32>
    %139 = arith.mulf %138, %130 : vector<16x16xf32>
    %140 = arith.addf %126, %139 : vector<16x16xf32>
    %141 = vector.broadcast %133 : f32 to vector<16x16xf32>
    %142 = arith.mulf %141, %130 : vector<16x16xf32>
    %143 = arith.addf %127, %142 : vector<16x16xf32>
    %144 = vector.broadcast %134 : f32 to vector<16x16xf32>
    %145 = arith.mulf %144, %130 : vector<16x16xf32>
    %146 = arith.addf %128, %145 : vector<16x16xf32>
    %c0_57 = arith.constant 0 : index
    %c7_58 = arith.constant 7 : index
    %c1_59 = arith.constant 1 : index
    %147 = vector.load %arg7[%c0_57, %c7_58, %c1_59] : memref<4x32x128xf32, #tpu.memory_space<vmem>>, vector<1x16x16xf32>
    %148 = vector.shape_cast %147 : vector<1x16x16xf32> to vector<16x16xf32>
    %c1_60 = arith.constant 1 : index
    %149 = memref.load %arg2[%c1_60] : memref<148xf32, #tpu.memory_space<smem>>
    %c37 = arith.constant 37 : index
    %150 = memref.load %arg2[%c37] : memref<148xf32, #tpu.memory_space<smem>>
    %c73 = arith.constant 73 : index
    %151 = memref.load %arg2[%c73] : memref<148xf32, #tpu.memory_space<smem>>
    %c109 = arith.constant 109 : index
    %152 = memref.load %arg2[%c109] : memref<148xf32, #tpu.memory_space<smem>>
    %153 = vector.broadcast %149 : f32 to vector<16x16xf32>
    %154 = arith.mulf %153, %148 : vector<16x16xf32>
    %155 = arith.addf %137, %154 : vector<16x16xf32>
    %156 = vector.broadcast %150 : f32 to vector<16x16xf32>
    %157 = arith.mulf %156, %148 : vector<16x16xf32>
    %158 = arith.addf %140, %157 : vector<16x16xf32>
    %159 = vector.broadcast %151 : f32 to vector<16x16xf32>
    %160 = arith.mulf %159, %148 : vector<16x16xf32>
    %161 = arith.addf %143, %160 : vector<16x16xf32>
    %162 = vector.broadcast %152 : f32 to vector<16x16xf32>
    %163 = arith.mulf %162, %148 : vector<16x16xf32>
    %164 = arith.addf %146, %163 : vector<16x16xf32>
    %c0_61 = arith.constant 0 : index
    %c7_62 = arith.constant 7 : index
    %c2_63 = arith.constant 2 : index
    %165 = vector.load %arg7[%c0_61, %c7_62, %c2_63] : memref<4x32x128xf32, #tpu.memory_space<vmem>>, vector<1x16x16xf32>
    %166 = vector.shape_cast %165 : vector<1x16x16xf32> to vector<16x16xf32>
    %c2_64 = arith.constant 2 : index
    %167 = memref.load %arg2[%c2_64] : memref<148xf32, #tpu.memory_space<smem>>
    %c38 = arith.constant 38 : index
    %168 = memref.load %arg2[%c38] : memref<148xf32, #tpu.memory_space<smem>>
    %c74 = arith.constant 74 : index
    %169 = memref.load %arg2[%c74] : memref<148xf32, #tpu.memory_space<smem>>
    %c110 = arith.constant 110 : index
    %170 = memref.load %arg2[%c110] : memref<148xf32, #tpu.memory_space<smem>>
    %171 = vector.broadcast %167 : f32 to vector<16x16xf32>
    %172 = arith.mulf %171, %166 : vector<16x16xf32>
    %173 = arith.addf %155, %172 : vector<16x16xf32>
    %174 = vector.broadcast %168 : f32 to vector<16x16xf32>
    %175 = arith.mulf %174, %166 : vector<16x16xf32>
    %176 = arith.addf %158, %175 : vector<16x16xf32>
    %177 = vector.broadcast %169 : f32 to vector<16x16xf32>
    %178 = arith.mulf %177, %166 : vector<16x16xf32>
    %179 = arith.addf %161, %178 : vector<16x16xf32>
    %180 = vector.broadcast %170 : f32 to vector<16x16xf32>
    %181 = arith.mulf %180, %166 : vector<16x16xf32>
    %182 = arith.addf %164, %181 : vector<16x16xf32>
    %c0_65 = arith.constant 0 : index
    %c8_66 = arith.constant 8 : index
    %c0_67 = arith.constant 0 : index
    %183 = vector.load %arg7[%c0_65, %c8_66, %c0_67] : memref<4x32x128xf32, #tpu.memory_space<vmem>>, vector<1x16x16xf32>
    %184 = vector.shape_cast %183 : vector<1x16x16xf32> to vector<16x16xf32>
    %c3_68 = arith.constant 3 : index
    %185 = memref.load %arg2[%c3_68] : memref<148xf32, #tpu.memory_space<smem>>
    %c39 = arith.constant 39 : index
    %186 = memref.load %arg2[%c39] : memref<148xf32, #tpu.memory_space<smem>>
    %c75 = arith.constant 75 : index
    %187 = memref.load %arg2[%c75] : memref<148xf32, #tpu.memory_space<smem>>
    %c111 = arith.constant 111 : index
    %188 = memref.load %arg2[%c111] : memref<148xf32, #tpu.memory_space<smem>>
    %189 = vector.broadcast %185 : f32 to vector<16x16xf32>
    %190 = arith.mulf %189, %184 : vector<16x16xf32>
    %191 = arith.addf %173, %190 : vector<16x16xf32>
    %192 = vector.broadcast %186 : f32 to vector<16x16xf32>
    %193 = arith.mulf %192, %184 : vector<16x16xf32>
    %194 = arith.addf %176, %193 : vector<16x16xf32>
    %195 = vector.broadcast %187 : f32 to vector<16x16xf32>
    %196 = arith.mulf %195, %184 : vector<16x16xf32>
    %197 = arith.addf %179, %196 : vector<16x16xf32>
    %198 = vector.broadcast %188 : f32 to vector<16x16xf32>
    %199 = arith.mulf %198, %184 : vector<16x16xf32>
    %200 = arith.addf %182, %199 : vector<16x16xf32>
    %c0_69 = arith.constant 0 : index
    %c8_70 = arith.constant 8 : index
    %c1_71 = arith.constant 1 : index
    %201 = vector.load %arg7[%c0_69, %c8_70, %c1_71] : memref<4x32x128xf32, #tpu.memory_space<vmem>>, vector<1x16x16xf32>
    %202 = vector.shape_cast %201 : vector<1x16x16xf32> to vector<16x16xf32>
    %c4_72 = arith.constant 4 : index
    %203 = memref.load %arg2[%c4_72] : memref<148xf32, #tpu.memory_space<smem>>
    %c40 = arith.constant 40 : index
    %204 = memref.load %arg2[%c40] : memref<148xf32, #tpu.memory_space<smem>>
    %c76 = arith.constant 76 : index
    %205 = memref.load %arg2[%c76] : memref<148xf32, #tpu.memory_space<smem>>
    %c112 = arith.constant 112 : index
    %206 = memref.load %arg2[%c112] : memref<148xf32, #tpu.memory_space<smem>>
    %207 = vector.broadcast %203 : f32 to vector<16x16xf32>
    %208 = arith.mulf %207, %202 : vector<16x16xf32>
    %209 = arith.addf %191, %208 : vector<16x16xf32>
    %210 = vector.broadcast %204 : f32 to vector<16x16xf32>
    %211 = arith.mulf %210, %202 : vector<16x16xf32>
    %212 = arith.addf %194, %211 : vector<16x16xf32>
    %213 = vector.broadcast %205 : f32 to vector<16x16xf32>
    %214 = arith.mulf %213, %202 : vector<16x16xf32>
    %215 = arith.addf %197, %214 : vector<16x16xf32>
    %216 = vector.broadcast %206 : f32 to vector<16x16xf32>
    %217 = arith.mulf %216, %202 : vector<16x16xf32>
    %218 = arith.addf %200, %217 : vector<16x16xf32>
    %c0_73 = arith.constant 0 : index
    %c8_74 = arith.constant 8 : index
    %c2_75 = arith.constant 2 : index
    %219 = vector.load %arg7[%c0_73, %c8_74, %c2_75] : memref<4x32x128xf32, #tpu.memory_space<vmem>>, vector<1x16x16xf32>
    %220 = vector.shape_cast %219 : vector<1x16x16xf32> to vector<16x16xf32>
    %c5_76 = arith.constant 5 : index
    %221 = memref.load %arg2[%c5_76] : memref<148xf32, #tpu.memory_space<smem>>
    %c41 = arith.constant 41 : index
    %222 = memref.load %arg2[%c41] : memref<148xf32, #tpu.memory_space<smem>>
    %c77 = arith.constant 77 : index
    %223 = memref.load %arg2[%c77] : memref<148xf32, #tpu.memory_space<smem>>
    %c113 = arith.constant 113 : index
    %224 = memref.load %arg2[%c113] : memref<148xf32, #tpu.memory_space<smem>>
    %225 = vector.broadcast %221 : f32 to vector<16x16xf32>
    %226 = arith.mulf %225, %220 : vector<16x16xf32>
    %227 = arith.addf %209, %226 : vector<16x16xf32>
    %228 = vector.broadcast %222 : f32 to vector<16x16xf32>
    %229 = arith.mulf %228, %220 : vector<16x16xf32>
    %230 = arith.addf %212, %229 : vector<16x16xf32>
    %231 = vector.broadcast %223 : f32 to vector<16x16xf32>
    %232 = arith.mulf %231, %220 : vector<16x16xf32>
    %233 = arith.addf %215, %232 : vector<16x16xf32>
    %234 = vector.broadcast %224 : f32 to vector<16x16xf32>
    %235 = arith.mulf %234, %220 : vector<16x16xf32>
    %236 = arith.addf %218, %235 : vector<16x16xf32>
    %c0_77 = arith.constant 0 : index
    %c9_78 = arith.constant 9 : index
    %c0_79 = arith.constant 0 : index
    %237 = vector.load %arg7[%c0_77, %c9_78, %c0_79] : memref<4x32x128xf32, #tpu.memory_space<vmem>>, vector<1x16x16xf32>
    %238 = vector.shape_cast %237 : vector<1x16x16xf32> to vector<16x16xf32>
    %c6_80 = arith.constant 6 : index
    %239 = memref.load %arg2[%c6_80] : memref<148xf32, #tpu.memory_space<smem>>
    %c42 = arith.constant 42 : index
    %240 = memref.load %arg2[%c42] : memref<148xf32, #tpu.memory_space<smem>>
    %c78 = arith.constant 78 : index
    %241 = memref.load %arg2[%c78] : memref<148xf32, #tpu.memory_space<smem>>
    %c114 = arith.constant 114 : index
    %242 = memref.load %arg2[%c114] : memref<148xf32, #tpu.memory_space<smem>>
    %243 = vector.broadcast %239 : f32 to vector<16x16xf32>
    %244 = arith.mulf %243, %238 : vector<16x16xf32>
    %245 = arith.addf %227, %244 : vector<16x16xf32>
    %246 = vector.broadcast %240 : f32 to vector<16x16xf32>
    %247 = arith.mulf %246, %238 : vector<16x16xf32>
    %248 = arith.addf %230, %247 : vector<16x16xf32>
    %249 = vector.broadcast %241 : f32 to vector<16x16xf32>
    %250 = arith.mulf %249, %238 : vector<16x16xf32>
    %251 = arith.addf %233, %250 : vector<16x16xf32>
    %252 = vector.broadcast %242 : f32 to vector<16x16xf32>
    %253 = arith.mulf %252, %238 : vector<16x16xf32>
    %254 = arith.addf %236, %253 : vector<16x16xf32>
    %c0_81 = arith.constant 0 : index
    %c9_82 = arith.constant 9 : index
    %c1_83 = arith.constant 1 : index
    %255 = vector.load %arg7[%c0_81, %c9_82, %c1_83] : memref<4x32x128xf32, #tpu.memory_space<vmem>>, vector<1x16x16xf32>
    %256 = vector.shape_cast %255 : vector<1x16x16xf32> to vector<16x16xf32>
    %c7_84 = arith.constant 7 : index
    %257 = memref.load %arg2[%c7_84] : memref<148xf32, #tpu.memory_space<smem>>
    %c43 = arith.constant 43 : index
    %258 = memref.load %arg2[%c43] : memref<148xf32, #tpu.memory_space<smem>>
    %c79 = arith.constant 79 : index
    %259 = memref.load %arg2[%c79] : memref<148xf32, #tpu.memory_space<smem>>
    %c115 = arith.constant 115 : index
    %260 = memref.load %arg2[%c115] : memref<148xf32, #tpu.memory_space<smem>>
    %261 = vector.broadcast %257 : f32 to vector<16x16xf32>
    %262 = arith.mulf %261, %256 : vector<16x16xf32>
    %263 = arith.addf %245, %262 : vector<16x16xf32>
    %264 = vector.broadcast %258 : f32 to vector<16x16xf32>
    %265 = arith.mulf %264, %256 : vector<16x16xf32>
    %266 = arith.addf %248, %265 : vector<16x16xf32>
    %267 = vector.broadcast %259 : f32 to vector<16x16xf32>
    %268 = arith.mulf %267, %256 : vector<16x16xf32>
    %269 = arith.addf %251, %268 : vector<16x16xf32>
    %270 = vector.broadcast %260 : f32 to vector<16x16xf32>
    %271 = arith.mulf %270, %256 : vector<16x16xf32>
    %272 = arith.addf %254, %271 : vector<16x16xf32>
    %c0_85 = arith.constant 0 : index
    %c9_86 = arith.constant 9 : index
    %c2_87 = arith.constant 2 : index
    %273 = vector.load %arg7[%c0_85, %c9_86, %c2_87] : memref<4x32x128xf32, #tpu.memory_space<vmem>>, vector<1x16x16xf32>
    %274 = vector.shape_cast %273 : vector<1x16x16xf32> to vector<16x16xf32>
    %c8_88 = arith.constant 8 : index
    %275 = memref.load %arg2[%c8_88] : memref<148xf32, #tpu.memory_space<smem>>
    %c44 = arith.constant 44 : index
    %276 = memref.load %arg2[%c44] : memref<148xf32, #tpu.memory_space<smem>>
    %c80 = arith.constant 80 : index
    %277 = memref.load %arg2[%c80] : memref<148xf32, #tpu.memory_space<smem>>
    %c116 = arith.constant 116 : index
    %278 = memref.load %arg2[%c116] : memref<148xf32, #tpu.memory_space<smem>>
    %279 = vector.broadcast %275 : f32 to vector<16x16xf32>
    %280 = arith.mulf %279, %274 : vector<16x16xf32>
    %281 = arith.addf %263, %280 : vector<16x16xf32>
    %282 = vector.broadcast %276 : f32 to vector<16x16xf32>
    %283 = arith.mulf %282, %274 : vector<16x16xf32>
    %284 = arith.addf %266, %283 : vector<16x16xf32>
    %285 = vector.broadcast %277 : f32 to vector<16x16xf32>
    %286 = arith.mulf %285, %274 : vector<16x16xf32>
    %287 = arith.addf %269, %286 : vector<16x16xf32>
    %288 = vector.broadcast %278 : f32 to vector<16x16xf32>
    %289 = arith.mulf %288, %274 : vector<16x16xf32>
    %290 = arith.addf %272, %289 : vector<16x16xf32>
    %c1_89 = arith.constant 1 : index
    %c7_90 = arith.constant 7 : index
    %c0_91 = arith.constant 0 : index
    %291 = vector.load %arg7[%c1_89, %c7_90, %c0_91] : memref<4x32x128xf32, #tpu.memory_space<vmem>>, vector<1x16x16xf32>
    %292 = vector.shape_cast %291 : vector<1x16x16xf32> to vector<16x16xf32>
    %c9_92 = arith.constant 9 : index
    %293 = memref.load %arg2[%c9_92] : memref<148xf32, #tpu.memory_space<smem>>
    %c45 = arith.constant 45 : index
    %294 = memref.load %arg2[%c45] : memref<148xf32, #tpu.memory_space<smem>>
    %c81 = arith.constant 81 : index
    %295 = memref.load %arg2[%c81] : memref<148xf32, #tpu.memory_space<smem>>
    %c117 = arith.constant 117 : index
    %296 = memref.load %arg2[%c117] : memref<148xf32, #tpu.memory_space<smem>>
    %297 = vector.broadcast %293 : f32 to vector<16x16xf32>
    %298 = arith.mulf %297, %292 : vector<16x16xf32>
    %299 = arith.addf %281, %298 : vector<16x16xf32>
    %300 = vector.broadcast %294 : f32 to vector<16x16xf32>
    %301 = arith.mulf %300, %292 : vector<16x16xf32>
    %302 = arith.addf %284, %301 : vector<16x16xf32>
    %303 = vector.broadcast %295 : f32 to vector<16x16xf32>
    %304 = arith.mulf %303, %292 : vector<16x16xf32>
    %305 = arith.addf %287, %304 : vector<16x16xf32>
    %306 = vector.broadcast %296 : f32 to vector<16x16xf32>
    %307 = arith.mulf %306, %292 : vector<16x16xf32>
    %308 = arith.addf %290, %307 : vector<16x16xf32>
    %c1_93 = arith.constant 1 : index
    %c7_94 = arith.constant 7 : index
    %c1_95 = arith.constant 1 : index
    %309 = vector.load %arg7[%c1_93, %c7_94, %c1_95] : memref<4x32x128xf32, #tpu.memory_space<vmem>>, vector<1x16x16xf32>
    %310 = vector.shape_cast %309 : vector<1x16x16xf32> to vector<16x16xf32>
    %c10_96 = arith.constant 10 : index
    %311 = memref.load %arg2[%c10_96] : memref<148xf32, #tpu.memory_space<smem>>
    %c46 = arith.constant 46 : index
    %312 = memref.load %arg2[%c46] : memref<148xf32, #tpu.memory_space<smem>>
    %c82 = arith.constant 82 : index
    %313 = memref.load %arg2[%c82] : memref<148xf32, #tpu.memory_space<smem>>
    %c118 = arith.constant 118 : index
    %314 = memref.load %arg2[%c118] : memref<148xf32, #tpu.memory_space<smem>>
    %315 = vector.broadcast %311 : f32 to vector<16x16xf32>
    %316 = arith.mulf %315, %310 : vector<16x16xf32>
    %317 = arith.addf %299, %316 : vector<16x16xf32>
    %318 = vector.broadcast %312 : f32 to vector<16x16xf32>
    %319 = arith.mulf %318, %310 : vector<16x16xf32>
    %320 = arith.addf %302, %319 : vector<16x16xf32>
    %321 = vector.broadcast %313 : f32 to vector<16x16xf32>
    %322 = arith.mulf %321, %310 : vector<16x16xf32>
    %323 = arith.addf %305, %322 : vector<16x16xf32>
    %324 = vector.broadcast %314 : f32 to vector<16x16xf32>
    %325 = arith.mulf %324, %310 : vector<16x16xf32>
    %326 = arith.addf %308, %325 : vector<16x16xf32>
    %c1_97 = arith.constant 1 : index
    %c7_98 = arith.constant 7 : index
    %c2_99 = arith.constant 2 : index
    %327 = vector.load %arg7[%c1_97, %c7_98, %c2_99] : memref<4x32x128xf32, #tpu.memory_space<vmem>>, vector<1x16x16xf32>
    %328 = vector.shape_cast %327 : vector<1x16x16xf32> to vector<16x16xf32>
    %c11_100 = arith.constant 11 : index
    %329 = memref.load %arg2[%c11_100] : memref<148xf32, #tpu.memory_space<smem>>
    %c47 = arith.constant 47 : index
    %330 = memref.load %arg2[%c47] : memref<148xf32, #tpu.memory_space<smem>>
    %c83 = arith.constant 83 : index
    %331 = memref.load %arg2[%c83] : memref<148xf32, #tpu.memory_space<smem>>
    %c119 = arith.constant 119 : index
    %332 = memref.load %arg2[%c119] : memref<148xf32, #tpu.memory_space<smem>>
    %333 = vector.broadcast %329 : f32 to vector<16x16xf32>
    %334 = arith.mulf %333, %328 : vector<16x16xf32>
    %335 = arith.addf %317, %334 : vector<16x16xf32>
    %336 = vector.broadcast %330 : f32 to vector<16x16xf32>
    %337 = arith.mulf %336, %328 : vector<16x16xf32>
    %338 = arith.addf %320, %337 : vector<16x16xf32>
    %339 = vector.broadcast %331 : f32 to vector<16x16xf32>
    %340 = arith.mulf %339, %328 : vector<16x16xf32>
    %341 = arith.addf %323, %340 : vector<16x16xf32>
    %342 = vector.broadcast %332 : f32 to vector<16x16xf32>
    %343 = arith.mulf %342, %328 : vector<16x16xf32>
    %344 = arith.addf %326, %343 : vector<16x16xf32>
    %c1_101 = arith.constant 1 : index
    %c8_102 = arith.constant 8 : index
    %c0_103 = arith.constant 0 : index
    %345 = vector.load %arg7[%c1_101, %c8_102, %c0_103] : memref<4x32x128xf32, #tpu.memory_space<vmem>>, vector<1x16x16xf32>
    %346 = vector.shape_cast %345 : vector<1x16x16xf32> to vector<16x16xf32>
    %c12_104 = arith.constant 12 : index
    %347 = memref.load %arg2[%c12_104] : memref<148xf32, #tpu.memory_space<smem>>
    %c48 = arith.constant 48 : index
    %348 = memref.load %arg2[%c48] : memref<148xf32, #tpu.memory_space<smem>>
    %c84 = arith.constant 84 : index
    %349 = memref.load %arg2[%c84] : memref<148xf32, #tpu.memory_space<smem>>
    %c120 = arith.constant 120 : index
    %350 = memref.load %arg2[%c120] : memref<148xf32, #tpu.memory_space<smem>>
    %351 = vector.broadcast %347 : f32 to vector<16x16xf32>
    %352 = arith.mulf %351, %346 : vector<16x16xf32>
    %353 = arith.addf %335, %352 : vector<16x16xf32>
    %354 = vector.broadcast %348 : f32 to vector<16x16xf32>
    %355 = arith.mulf %354, %346 : vector<16x16xf32>
    %356 = arith.addf %338, %355 : vector<16x16xf32>
    %357 = vector.broadcast %349 : f32 to vector<16x16xf32>
    %358 = arith.mulf %357, %346 : vector<16x16xf32>
    %359 = arith.addf %341, %358 : vector<16x16xf32>
    %360 = vector.broadcast %350 : f32 to vector<16x16xf32>
    %361 = arith.mulf %360, %346 : vector<16x16xf32>
    %362 = arith.addf %344, %361 : vector<16x16xf32>
    %c1_105 = arith.constant 1 : index
    %c8_106 = arith.constant 8 : index
    %c1_107 = arith.constant 1 : index
    %363 = vector.load %arg7[%c1_105, %c8_106, %c1_107] : memref<4x32x128xf32, #tpu.memory_space<vmem>>, vector<1x16x16xf32>
    %364 = vector.shape_cast %363 : vector<1x16x16xf32> to vector<16x16xf32>
    %c13_108 = arith.constant 13 : index
    %365 = memref.load %arg2[%c13_108] : memref<148xf32, #tpu.memory_space<smem>>
    %c49 = arith.constant 49 : index
    %366 = memref.load %arg2[%c49] : memref<148xf32, #tpu.memory_space<smem>>
    %c85 = arith.constant 85 : index
    %367 = memref.load %arg2[%c85] : memref<148xf32, #tpu.memory_space<smem>>
    %c121 = arith.constant 121 : index
    %368 = memref.load %arg2[%c121] : memref<148xf32, #tpu.memory_space<smem>>
    %369 = vector.broadcast %365 : f32 to vector<16x16xf32>
    %370 = arith.mulf %369, %364 : vector<16x16xf32>
    %371 = arith.addf %353, %370 : vector<16x16xf32>
    %372 = vector.broadcast %366 : f32 to vector<16x16xf32>
    %373 = arith.mulf %372, %364 : vector<16x16xf32>
    %374 = arith.addf %356, %373 : vector<16x16xf32>
    %375 = vector.broadcast %367 : f32 to vector<16x16xf32>
    %376 = arith.mulf %375, %364 : vector<16x16xf32>
    %377 = arith.addf %359, %376 : vector<16x16xf32>
    %378 = vector.broadcast %368 : f32 to vector<16x16xf32>
    %379 = arith.mulf %378, %364 : vector<16x16xf32>
    %380 = arith.addf %362, %379 : vector<16x16xf32>
    %c1_109 = arith.constant 1 : index
    %c8_110 = arith.constant 8 : index
    %c2_111 = arith.constant 2 : index
    %381 = vector.load %arg7[%c1_109, %c8_110, %c2_111] : memref<4x32x128xf32, #tpu.memory_space<vmem>>, vector<1x16x16xf32>
    %382 = vector.shape_cast %381 : vector<1x16x16xf32> to vector<16x16xf32>
    %c14_112 = arith.constant 14 : index
    %383 = memref.load %arg2[%c14_112] : memref<148xf32, #tpu.memory_space<smem>>
    %c50 = arith.constant 50 : index
    %384 = memref.load %arg2[%c50] : memref<148xf32, #tpu.memory_space<smem>>
    %c86 = arith.constant 86 : index
    %385 = memref.load %arg2[%c86] : memref<148xf32, #tpu.memory_space<smem>>
    %c122 = arith.constant 122 : index
    %386 = memref.load %arg2[%c122] : memref<148xf32, #tpu.memory_space<smem>>
    %387 = vector.broadcast %383 : f32 to vector<16x16xf32>
    %388 = arith.mulf %387, %382 : vector<16x16xf32>
    %389 = arith.addf %371, %388 : vector<16x16xf32>
    %390 = vector.broadcast %384 : f32 to vector<16x16xf32>
    %391 = arith.mulf %390, %382 : vector<16x16xf32>
    %392 = arith.addf %374, %391 : vector<16x16xf32>
    %393 = vector.broadcast %385 : f32 to vector<16x16xf32>
    %394 = arith.mulf %393, %382 : vector<16x16xf32>
    %395 = arith.addf %377, %394 : vector<16x16xf32>
    %396 = vector.broadcast %386 : f32 to vector<16x16xf32>
    %397 = arith.mulf %396, %382 : vector<16x16xf32>
    %398 = arith.addf %380, %397 : vector<16x16xf32>
    %c1_113 = arith.constant 1 : index
    %c9_114 = arith.constant 9 : index
    %c0_115 = arith.constant 0 : index
    %399 = vector.load %arg7[%c1_113, %c9_114, %c0_115] : memref<4x32x128xf32, #tpu.memory_space<vmem>>, vector<1x16x16xf32>
    %400 = vector.shape_cast %399 : vector<1x16x16xf32> to vector<16x16xf32>
    %c15_116 = arith.constant 15 : index
    %401 = memref.load %arg2[%c15_116] : memref<148xf32, #tpu.memory_space<smem>>
    %c51 = arith.constant 51 : index
    %402 = memref.load %arg2[%c51] : memref<148xf32, #tpu.memory_space<smem>>
    %c87 = arith.constant 87 : index
    %403 = memref.load %arg2[%c87] : memref<148xf32, #tpu.memory_space<smem>>
    %c123 = arith.constant 123 : index
    %404 = memref.load %arg2[%c123] : memref<148xf32, #tpu.memory_space<smem>>
    %405 = vector.broadcast %401 : f32 to vector<16x16xf32>
    %406 = arith.mulf %405, %400 : vector<16x16xf32>
    %407 = arith.addf %389, %406 : vector<16x16xf32>
    %408 = vector.broadcast %402 : f32 to vector<16x16xf32>
    %409 = arith.mulf %408, %400 : vector<16x16xf32>
    %410 = arith.addf %392, %409 : vector<16x16xf32>
    %411 = vector.broadcast %403 : f32 to vector<16x16xf32>
    %412 = arith.mulf %411, %400 : vector<16x16xf32>
    %413 = arith.addf %395, %412 : vector<16x16xf32>
    %414 = vector.broadcast %404 : f32 to vector<16x16xf32>
    %415 = arith.mulf %414, %400 : vector<16x16xf32>
    %416 = arith.addf %398, %415 : vector<16x16xf32>
    %c1_117 = arith.constant 1 : index
    %c9_118 = arith.constant 9 : index
    %c1_119 = arith.constant 1 : index
    %417 = vector.load %arg7[%c1_117, %c9_118, %c1_119] : memref<4x32x128xf32, #tpu.memory_space<vmem>>, vector<1x16x16xf32>
    %418 = vector.shape_cast %417 : vector<1x16x16xf32> to vector<16x16xf32>
    %c16_120 = arith.constant 16 : index
    %419 = memref.load %arg2[%c16_120] : memref<148xf32, #tpu.memory_space<smem>>
    %c52 = arith.constant 52 : index
    %420 = memref.load %arg2[%c52] : memref<148xf32, #tpu.memory_space<smem>>
    %c88 = arith.constant 88 : index
    %421 = memref.load %arg2[%c88] : memref<148xf32, #tpu.memory_space<smem>>
    %c124 = arith.constant 124 : index
    %422 = memref.load %arg2[%c124] : memref<148xf32, #tpu.memory_space<smem>>
    %423 = vector.broadcast %419 : f32 to vector<16x16xf32>
    %424 = arith.mulf %423, %418 : vector<16x16xf32>
    %425 = arith.addf %407, %424 : vector<16x16xf32>
    %426 = vector.broadcast %420 : f32 to vector<16x16xf32>
    %427 = arith.mulf %426, %418 : vector<16x16xf32>
    %428 = arith.addf %410, %427 : vector<16x16xf32>
    %429 = vector.broadcast %421 : f32 to vector<16x16xf32>
    %430 = arith.mulf %429, %418 : vector<16x16xf32>
    %431 = arith.addf %413, %430 : vector<16x16xf32>
    %432 = vector.broadcast %422 : f32 to vector<16x16xf32>
    %433 = arith.mulf %432, %418 : vector<16x16xf32>
    %434 = arith.addf %416, %433 : vector<16x16xf32>
    %c1_121 = arith.constant 1 : index
    %c9_122 = arith.constant 9 : index
    %c2_123 = arith.constant 2 : index
    %435 = vector.load %arg7[%c1_121, %c9_122, %c2_123] : memref<4x32x128xf32, #tpu.memory_space<vmem>>, vector<1x16x16xf32>
    %436 = vector.shape_cast %435 : vector<1x16x16xf32> to vector<16x16xf32>
    %c17 = arith.constant 17 : index
    %437 = memref.load %arg2[%c17] : memref<148xf32, #tpu.memory_space<smem>>
    %c53 = arith.constant 53 : index
    %438 = memref.load %arg2[%c53] : memref<148xf32, #tpu.memory_space<smem>>
    %c89 = arith.constant 89 : index
    %439 = memref.load %arg2[%c89] : memref<148xf32, #tpu.memory_space<smem>>
    %c125 = arith.constant 125 : index
    %440 = memref.load %arg2[%c125] : memref<148xf32, #tpu.memory_space<smem>>
    %441 = vector.broadcast %437 : f32 to vector<16x16xf32>
    %442 = arith.mulf %441, %436 : vector<16x16xf32>
    %443 = arith.addf %425, %442 : vector<16x16xf32>
    %444 = vector.broadcast %438 : f32 to vector<16x16xf32>
    %445 = arith.mulf %444, %436 : vector<16x16xf32>
    %446 = arith.addf %428, %445 : vector<16x16xf32>
    %447 = vector.broadcast %439 : f32 to vector<16x16xf32>
    %448 = arith.mulf %447, %436 : vector<16x16xf32>
    %449 = arith.addf %431, %448 : vector<16x16xf32>
    %450 = vector.broadcast %440 : f32 to vector<16x16xf32>
    %451 = arith.mulf %450, %436 : vector<16x16xf32>
    %452 = arith.addf %434, %451 : vector<16x16xf32>
    %c2_124 = arith.constant 2 : index
    %c7_125 = arith.constant 7 : index
    %c0_126 = arith.constant 0 : index
    %453 = vector.load %arg7[%c2_124, %c7_125, %c0_126] : memref<4x32x128xf32, #tpu.memory_space<vmem>>, vector<1x16x16xf32>
    %454 = vector.shape_cast %453 : vector<1x16x16xf32> to vector<16x16xf32>
    %c18 = arith.constant 18 : index
    %455 = memref.load %arg2[%c18] : memref<148xf32, #tpu.memory_space<smem>>
    %c54 = arith.constant 54 : index
    %456 = memref.load %arg2[%c54] : memref<148xf32, #tpu.memory_space<smem>>
    %c90 = arith.constant 90 : index
    %457 = memref.load %arg2[%c90] : memref<148xf32, #tpu.memory_space<smem>>
    %c126 = arith.constant 126 : index
    %458 = memref.load %arg2[%c126] : memref<148xf32, #tpu.memory_space<smem>>
    %459 = vector.broadcast %455 : f32 to vector<16x16xf32>
    %460 = arith.mulf %459, %454 : vector<16x16xf32>
    %461 = arith.addf %443, %460 : vector<16x16xf32>
    %462 = vector.broadcast %456 : f32 to vector<16x16xf32>
    %463 = arith.mulf %462, %454 : vector<16x16xf32>
    %464 = arith.addf %446, %463 : vector<16x16xf32>
    %465 = vector.broadcast %457 : f32 to vector<16x16xf32>
    %466 = arith.mulf %465, %454 : vector<16x16xf32>
    %467 = arith.addf %449, %466 : vector<16x16xf32>
    %468 = vector.broadcast %458 : f32 to vector<16x16xf32>
    %469 = arith.mulf %468, %454 : vector<16x16xf32>
    %470 = arith.addf %452, %469 : vector<16x16xf32>
    %c2_127 = arith.constant 2 : index
    %c7_128 = arith.constant 7 : index
    %c1_129 = arith.constant 1 : index
    %471 = vector.load %arg7[%c2_127, %c7_128, %c1_129] : memref<4x32x128xf32, #tpu.memory_space<vmem>>, vector<1x16x16xf32>
    %472 = vector.shape_cast %471 : vector<1x16x16xf32> to vector<16x16xf32>
    %c19 = arith.constant 19 : index
    %473 = memref.load %arg2[%c19] : memref<148xf32, #tpu.memory_space<smem>>
    %c55 = arith.constant 55 : index
    %474 = memref.load %arg2[%c55] : memref<148xf32, #tpu.memory_space<smem>>
    %c91 = arith.constant 91 : index
    %475 = memref.load %arg2[%c91] : memref<148xf32, #tpu.memory_space<smem>>
    %c127 = arith.constant 127 : index
    %476 = memref.load %arg2[%c127] : memref<148xf32, #tpu.memory_space<smem>>
    %477 = vector.broadcast %473 : f32 to vector<16x16xf32>
    %478 = arith.mulf %477, %472 : vector<16x16xf32>
    %479 = arith.addf %461, %478 : vector<16x16xf32>
    %480 = vector.broadcast %474 : f32 to vector<16x16xf32>
    %481 = arith.mulf %480, %472 : vector<16x16xf32>
    %482 = arith.addf %464, %481 : vector<16x16xf32>
    %483 = vector.broadcast %475 : f32 to vector<16x16xf32>
    %484 = arith.mulf %483, %472 : vector<16x16xf32>
    %485 = arith.addf %467, %484 : vector<16x16xf32>
    %486 = vector.broadcast %476 : f32 to vector<16x16xf32>
    %487 = arith.mulf %486, %472 : vector<16x16xf32>
    %488 = arith.addf %470, %487 : vector<16x16xf32>
    %c2_130 = arith.constant 2 : index
    %c7_131 = arith.constant 7 : index
    %c2_132 = arith.constant 2 : index
    %489 = vector.load %arg7[%c2_130, %c7_131, %c2_132] : memref<4x32x128xf32, #tpu.memory_space<vmem>>, vector<1x16x16xf32>
    %490 = vector.shape_cast %489 : vector<1x16x16xf32> to vector<16x16xf32>
    %c20 = arith.constant 20 : index
    %491 = memref.load %arg2[%c20] : memref<148xf32, #tpu.memory_space<smem>>
    %c56 = arith.constant 56 : index
    %492 = memref.load %arg2[%c56] : memref<148xf32, #tpu.memory_space<smem>>
    %c92 = arith.constant 92 : index
    %493 = memref.load %arg2[%c92] : memref<148xf32, #tpu.memory_space<smem>>
    %c128 = arith.constant 128 : index
    %494 = memref.load %arg2[%c128] : memref<148xf32, #tpu.memory_space<smem>>
    %495 = vector.broadcast %491 : f32 to vector<16x16xf32>
    %496 = arith.mulf %495, %490 : vector<16x16xf32>
    %497 = arith.addf %479, %496 : vector<16x16xf32>
    %498 = vector.broadcast %492 : f32 to vector<16x16xf32>
    %499 = arith.mulf %498, %490 : vector<16x16xf32>
    %500 = arith.addf %482, %499 : vector<16x16xf32>
    %501 = vector.broadcast %493 : f32 to vector<16x16xf32>
    %502 = arith.mulf %501, %490 : vector<16x16xf32>
    %503 = arith.addf %485, %502 : vector<16x16xf32>
    %504 = vector.broadcast %494 : f32 to vector<16x16xf32>
    %505 = arith.mulf %504, %490 : vector<16x16xf32>
    %506 = arith.addf %488, %505 : vector<16x16xf32>
    %c2_133 = arith.constant 2 : index
    %c8_134 = arith.constant 8 : index
    %c0_135 = arith.constant 0 : index
    %507 = vector.load %arg7[%c2_133, %c8_134, %c0_135] : memref<4x32x128xf32, #tpu.memory_space<vmem>>, vector<1x16x16xf32>
    %508 = vector.shape_cast %507 : vector<1x16x16xf32> to vector<16x16xf32>
    %c21 = arith.constant 21 : index
    %509 = memref.load %arg2[%c21] : memref<148xf32, #tpu.memory_space<smem>>
    %c57 = arith.constant 57 : index
    %510 = memref.load %arg2[%c57] : memref<148xf32, #tpu.memory_space<smem>>
    %c93 = arith.constant 93 : index
    %511 = memref.load %arg2[%c93] : memref<148xf32, #tpu.memory_space<smem>>
    %c129 = arith.constant 129 : index
    %512 = memref.load %arg2[%c129] : memref<148xf32, #tpu.memory_space<smem>>
    %513 = vector.broadcast %509 : f32 to vector<16x16xf32>
    %514 = arith.mulf %513, %508 : vector<16x16xf32>
    %515 = arith.addf %497, %514 : vector<16x16xf32>
    %516 = vector.broadcast %510 : f32 to vector<16x16xf32>
    %517 = arith.mulf %516, %508 : vector<16x16xf32>
    %518 = arith.addf %500, %517 : vector<16x16xf32>
    %519 = vector.broadcast %511 : f32 to vector<16x16xf32>
    %520 = arith.mulf %519, %508 : vector<16x16xf32>
    %521 = arith.addf %503, %520 : vector<16x16xf32>
    %522 = vector.broadcast %512 : f32 to vector<16x16xf32>
    %523 = arith.mulf %522, %508 : vector<16x16xf32>
    %524 = arith.addf %506, %523 : vector<16x16xf32>
    %c2_136 = arith.constant 2 : index
    %c8_137 = arith.constant 8 : index
    %c1_138 = arith.constant 1 : index
    %525 = vector.load %arg7[%c2_136, %c8_137, %c1_138] : memref<4x32x128xf32, #tpu.memory_space<vmem>>, vector<1x16x16xf32>
    %526 = vector.shape_cast %525 : vector<1x16x16xf32> to vector<16x16xf32>
    %c22 = arith.constant 22 : index
    %527 = memref.load %arg2[%c22] : memref<148xf32, #tpu.memory_space<smem>>
    %c58 = arith.constant 58 : index
    %528 = memref.load %arg2[%c58] : memref<148xf32, #tpu.memory_space<smem>>
    %c94 = arith.constant 94 : index
    %529 = memref.load %arg2[%c94] : memref<148xf32, #tpu.memory_space<smem>>
    %c130 = arith.constant 130 : index
    %530 = memref.load %arg2[%c130] : memref<148xf32, #tpu.memory_space<smem>>
    %531 = vector.broadcast %527 : f32 to vector<16x16xf32>
    %532 = arith.mulf %531, %526 : vector<16x16xf32>
    %533 = arith.addf %515, %532 : vector<16x16xf32>
    %534 = vector.broadcast %528 : f32 to vector<16x16xf32>
    %535 = arith.mulf %534, %526 : vector<16x16xf32>
    %536 = arith.addf %518, %535 : vector<16x16xf32>
    %537 = vector.broadcast %529 : f32 to vector<16x16xf32>
    %538 = arith.mulf %537, %526 : vector<16x16xf32>
    %539 = arith.addf %521, %538 : vector<16x16xf32>
    %540 = vector.broadcast %530 : f32 to vector<16x16xf32>
    %541 = arith.mulf %540, %526 : vector<16x16xf32>
    %542 = arith.addf %524, %541 : vector<16x16xf32>
    %c2_139 = arith.constant 2 : index
    %c8_140 = arith.constant 8 : index
    %c2_141 = arith.constant 2 : index
    %543 = vector.load %arg7[%c2_139, %c8_140, %c2_141] : memref<4x32x128xf32, #tpu.memory_space<vmem>>, vector<1x16x16xf32>
    %544 = vector.shape_cast %543 : vector<1x16x16xf32> to vector<16x16xf32>
    %c23 = arith.constant 23 : index
    %545 = memref.load %arg2[%c23] : memref<148xf32, #tpu.memory_space<smem>>
    %c59 = arith.constant 59 : index
    %546 = memref.load %arg2[%c59] : memref<148xf32, #tpu.memory_space<smem>>
    %c95 = arith.constant 95 : index
    %547 = memref.load %arg2[%c95] : memref<148xf32, #tpu.memory_space<smem>>
    %c131 = arith.constant 131 : index
    %548 = memref.load %arg2[%c131] : memref<148xf32, #tpu.memory_space<smem>>
    %549 = vector.broadcast %545 : f32 to vector<16x16xf32>
    %550 = arith.mulf %549, %544 : vector<16x16xf32>
    %551 = arith.addf %533, %550 : vector<16x16xf32>
    %552 = vector.broadcast %546 : f32 to vector<16x16xf32>
    %553 = arith.mulf %552, %544 : vector<16x16xf32>
    %554 = arith.addf %536, %553 : vector<16x16xf32>
    %555 = vector.broadcast %547 : f32 to vector<16x16xf32>
    %556 = arith.mulf %555, %544 : vector<16x16xf32>
    %557 = arith.addf %539, %556 : vector<16x16xf32>
    %558 = vector.broadcast %548 : f32 to vector<16x16xf32>
    %559 = arith.mulf %558, %544 : vector<16x16xf32>
    %560 = arith.addf %542, %559 : vector<16x16xf32>
    %c2_142 = arith.constant 2 : index
    %c9_143 = arith.constant 9 : index
    %c0_144 = arith.constant 0 : index
    %561 = vector.load %arg7[%c2_142, %c9_143, %c0_144] : memref<4x32x128xf32, #tpu.memory_space<vmem>>, vector<1x16x16xf32>
    %562 = vector.shape_cast %561 : vector<1x16x16xf32> to vector<16x16xf32>
    %c24 = arith.constant 24 : index
    %563 = memref.load %arg2[%c24] : memref<148xf32, #tpu.memory_space<smem>>
    %c60 = arith.constant 60 : index
    %564 = memref.load %arg2[%c60] : memref<148xf32, #tpu.memory_space<smem>>
    %c96 = arith.constant 96 : index
    %565 = memref.load %arg2[%c96] : memref<148xf32, #tpu.memory_space<smem>>
    %c132 = arith.constant 132 : index
    %566 = memref.load %arg2[%c132] : memref<148xf32, #tpu.memory_space<smem>>
    %567 = vector.broadcast %563 : f32 to vector<16x16xf32>
    %568 = arith.mulf %567, %562 : vector<16x16xf32>
    %569 = arith.addf %551, %568 : vector<16x16xf32>
    %570 = vector.broadcast %564 : f32 to vector<16x16xf32>
    %571 = arith.mulf %570, %562 : vector<16x16xf32>
    %572 = arith.addf %554, %571 : vector<16x16xf32>
    %573 = vector.broadcast %565 : f32 to vector<16x16xf32>
    %574 = arith.mulf %573, %562 : vector<16x16xf32>
    %575 = arith.addf %557, %574 : vector<16x16xf32>
    %576 = vector.broadcast %566 : f32 to vector<16x16xf32>
    %577 = arith.mulf %576, %562 : vector<16x16xf32>
    %578 = arith.addf %560, %577 : vector<16x16xf32>
    %c2_145 = arith.constant 2 : index
    %c9_146 = arith.constant 9 : index
    %c1_147 = arith.constant 1 : index
    %579 = vector.load %arg7[%c2_145, %c9_146, %c1_147] : memref<4x32x128xf32, #tpu.memory_space<vmem>>, vector<1x16x16xf32>
    %580 = vector.shape_cast %579 : vector<1x16x16xf32> to vector<16x16xf32>
    %c25 = arith.constant 25 : index
    %581 = memref.load %arg2[%c25] : memref<148xf32, #tpu.memory_space<smem>>
    %c61 = arith.constant 61 : index
    %582 = memref.load %arg2[%c61] : memref<148xf32, #tpu.memory_space<smem>>
    %c97 = arith.constant 97 : index
    %583 = memref.load %arg2[%c97] : memref<148xf32, #tpu.memory_space<smem>>
    %c133 = arith.constant 133 : index
    %584 = memref.load %arg2[%c133] : memref<148xf32, #tpu.memory_space<smem>>
    %585 = vector.broadcast %581 : f32 to vector<16x16xf32>
    %586 = arith.mulf %585, %580 : vector<16x16xf32>
    %587 = arith.addf %569, %586 : vector<16x16xf32>
    %588 = vector.broadcast %582 : f32 to vector<16x16xf32>
    %589 = arith.mulf %588, %580 : vector<16x16xf32>
    %590 = arith.addf %572, %589 : vector<16x16xf32>
    %591 = vector.broadcast %583 : f32 to vector<16x16xf32>
    %592 = arith.mulf %591, %580 : vector<16x16xf32>
    %593 = arith.addf %575, %592 : vector<16x16xf32>
    %594 = vector.broadcast %584 : f32 to vector<16x16xf32>
    %595 = arith.mulf %594, %580 : vector<16x16xf32>
    %596 = arith.addf %578, %595 : vector<16x16xf32>
    %c2_148 = arith.constant 2 : index
    %c9_149 = arith.constant 9 : index
    %c2_150 = arith.constant 2 : index
    %597 = vector.load %arg7[%c2_148, %c9_149, %c2_150] : memref<4x32x128xf32, #tpu.memory_space<vmem>>, vector<1x16x16xf32>
    %598 = vector.shape_cast %597 : vector<1x16x16xf32> to vector<16x16xf32>
    %c26 = arith.constant 26 : index
    %599 = memref.load %arg2[%c26] : memref<148xf32, #tpu.memory_space<smem>>
    %c62 = arith.constant 62 : index
    %600 = memref.load %arg2[%c62] : memref<148xf32, #tpu.memory_space<smem>>
    %c98 = arith.constant 98 : index
    %601 = memref.load %arg2[%c98] : memref<148xf32, #tpu.memory_space<smem>>
    %c134 = arith.constant 134 : index
    %602 = memref.load %arg2[%c134] : memref<148xf32, #tpu.memory_space<smem>>
    %603 = vector.broadcast %599 : f32 to vector<16x16xf32>
    %604 = arith.mulf %603, %598 : vector<16x16xf32>
    %605 = arith.addf %587, %604 : vector<16x16xf32>
    %606 = vector.broadcast %600 : f32 to vector<16x16xf32>
    %607 = arith.mulf %606, %598 : vector<16x16xf32>
    %608 = arith.addf %590, %607 : vector<16x16xf32>
    %609 = vector.broadcast %601 : f32 to vector<16x16xf32>
    %610 = arith.mulf %609, %598 : vector<16x16xf32>
    %611 = arith.addf %593, %610 : vector<16x16xf32>
    %612 = vector.broadcast %602 : f32 to vector<16x16xf32>
    %613 = arith.mulf %612, %598 : vector<16x16xf32>
    %614 = arith.addf %596, %613 : vector<16x16xf32>
    %c3_151 = arith.constant 3 : index
    %c7_152 = arith.constant 7 : index
    %c0_153 = arith.constant 0 : index
    %615 = vector.load %arg7[%c3_151, %c7_152, %c0_153] : memref<4x32x128xf32, #tpu.memory_space<vmem>>, vector<1x16x16xf32>
    %616 = vector.shape_cast %615 : vector<1x16x16xf32> to vector<16x16xf32>
    %c27 = arith.constant 27 : index
    %617 = memref.load %arg2[%c27] : memref<148xf32, #tpu.memory_space<smem>>
    %c63 = arith.constant 63 : index
    %618 = memref.load %arg2[%c63] : memref<148xf32, #tpu.memory_space<smem>>
    %c99 = arith.constant 99 : index
    %619 = memref.load %arg2[%c99] : memref<148xf32, #tpu.memory_space<smem>>
    %c135 = arith.constant 135 : index
    %620 = memref.load %arg2[%c135] : memref<148xf32, #tpu.memory_space<smem>>
    %621 = vector.broadcast %617 : f32 to vector<16x16xf32>
    %622 = arith.mulf %621, %616 : vector<16x16xf32>
    %623 = arith.addf %605, %622 : vector<16x16xf32>
    %624 = vector.broadcast %618 : f32 to vector<16x16xf32>
    %625 = arith.mulf %624, %616 : vector<16x16xf32>
    %626 = arith.addf %608, %625 : vector<16x16xf32>
    %627 = vector.broadcast %619 : f32 to vector<16x16xf32>
    %628 = arith.mulf %627, %616 : vector<16x16xf32>
    %629 = arith.addf %611, %628 : vector<16x16xf32>
    %630 = vector.broadcast %620 : f32 to vector<16x16xf32>
    %631 = arith.mulf %630, %616 : vector<16x16xf32>
    %632 = arith.addf %614, %631 : vector<16x16xf32>
    %c3_154 = arith.constant 3 : index
    %c7_155 = arith.constant 7 : index
    %c1_156 = arith.constant 1 : index
    %633 = vector.load %arg7[%c3_154, %c7_155, %c1_156] : memref<4x32x128xf32, #tpu.memory_space<vmem>>, vector<1x16x16xf32>
    %634 = vector.shape_cast %633 : vector<1x16x16xf32> to vector<16x16xf32>
    %c28 = arith.constant 28 : index
    %635 = memref.load %arg2[%c28] : memref<148xf32, #tpu.memory_space<smem>>
    %c64 = arith.constant 64 : index
    %636 = memref.load %arg2[%c64] : memref<148xf32, #tpu.memory_space<smem>>
    %c100 = arith.constant 100 : index
    %637 = memref.load %arg2[%c100] : memref<148xf32, #tpu.memory_space<smem>>
    %c136 = arith.constant 136 : index
    %638 = memref.load %arg2[%c136] : memref<148xf32, #tpu.memory_space<smem>>
    %639 = vector.broadcast %635 : f32 to vector<16x16xf32>
    %640 = arith.mulf %639, %634 : vector<16x16xf32>
    %641 = arith.addf %623, %640 : vector<16x16xf32>
    %642 = vector.broadcast %636 : f32 to vector<16x16xf32>
    %643 = arith.mulf %642, %634 : vector<16x16xf32>
    %644 = arith.addf %626, %643 : vector<16x16xf32>
    %645 = vector.broadcast %637 : f32 to vector<16x16xf32>
    %646 = arith.mulf %645, %634 : vector<16x16xf32>
    %647 = arith.addf %629, %646 : vector<16x16xf32>
    %648 = vector.broadcast %638 : f32 to vector<16x16xf32>
    %649 = arith.mulf %648, %634 : vector<16x16xf32>
    %650 = arith.addf %632, %649 : vector<16x16xf32>
    %c3_157 = arith.constant 3 : index
    %c7_158 = arith.constant 7 : index
    %c2_159 = arith.constant 2 : index
    %651 = vector.load %arg7[%c3_157, %c7_158, %c2_159] : memref<4x32x128xf32, #tpu.memory_space<vmem>>, vector<1x16x16xf32>
    %652 = vector.shape_cast %651 : vector<1x16x16xf32> to vector<16x16xf32>
    %c29 = arith.constant 29 : index
    %653 = memref.load %arg2[%c29] : memref<148xf32, #tpu.memory_space<smem>>
    %c65 = arith.constant 65 : index
    %654 = memref.load %arg2[%c65] : memref<148xf32, #tpu.memory_space<smem>>
    %c101 = arith.constant 101 : index
    %655 = memref.load %arg2[%c101] : memref<148xf32, #tpu.memory_space<smem>>
    %c137 = arith.constant 137 : index
    %656 = memref.load %arg2[%c137] : memref<148xf32, #tpu.memory_space<smem>>
    %657 = vector.broadcast %653 : f32 to vector<16x16xf32>
    %658 = arith.mulf %657, %652 : vector<16x16xf32>
    %659 = arith.addf %641, %658 : vector<16x16xf32>
    %660 = vector.broadcast %654 : f32 to vector<16x16xf32>
    %661 = arith.mulf %660, %652 : vector<16x16xf32>
    %662 = arith.addf %644, %661 : vector<16x16xf32>
    %663 = vector.broadcast %655 : f32 to vector<16x16xf32>
    %664 = arith.mulf %663, %652 : vector<16x16xf32>
    %665 = arith.addf %647, %664 : vector<16x16xf32>
    %666 = vector.broadcast %656 : f32 to vector<16x16xf32>
    %667 = arith.mulf %666, %652 : vector<16x16xf32>
    %668 = arith.addf %650, %667 : vector<16x16xf32>
    %c3_160 = arith.constant 3 : index
    %c8_161 = arith.constant 8 : index
    %c0_162 = arith.constant 0 : index
    %669 = vector.load %arg7[%c3_160, %c8_161, %c0_162] : memref<4x32x128xf32, #tpu.memory_space<vmem>>, vector<1x16x16xf32>
    %670 = vector.shape_cast %669 : vector<1x16x16xf32> to vector<16x16xf32>
    %c30 = arith.constant 30 : index
    %671 = memref.load %arg2[%c30] : memref<148xf32, #tpu.memory_space<smem>>
    %c66 = arith.constant 66 : index
    %672 = memref.load %arg2[%c66] : memref<148xf32, #tpu.memory_space<smem>>
    %c102 = arith.constant 102 : index
    %673 = memref.load %arg2[%c102] : memref<148xf32, #tpu.memory_space<smem>>
    %c138 = arith.constant 138 : index
    %674 = memref.load %arg2[%c138] : memref<148xf32, #tpu.memory_space<smem>>
    %675 = vector.broadcast %671 : f32 to vector<16x16xf32>
    %676 = arith.mulf %675, %670 : vector<16x16xf32>
    %677 = arith.addf %659, %676 : vector<16x16xf32>
    %678 = vector.broadcast %672 : f32 to vector<16x16xf32>
    %679 = arith.mulf %678, %670 : vector<16x16xf32>
    %680 = arith.addf %662, %679 : vector<16x16xf32>
    %681 = vector.broadcast %673 : f32 to vector<16x16xf32>
    %682 = arith.mulf %681, %670 : vector<16x16xf32>
    %683 = arith.addf %665, %682 : vector<16x16xf32>
    %684 = vector.broadcast %674 : f32 to vector<16x16xf32>
    %685 = arith.mulf %684, %670 : vector<16x16xf32>
    %686 = arith.addf %668, %685 : vector<16x16xf32>
    %c3_163 = arith.constant 3 : index
    %c8_164 = arith.constant 8 : index
    %c1_165 = arith.constant 1 : index
    %687 = vector.load %arg7[%c3_163, %c8_164, %c1_165] : memref<4x32x128xf32, #tpu.memory_space<vmem>>, vector<1x16x16xf32>
    %688 = vector.shape_cast %687 : vector<1x16x16xf32> to vector<16x16xf32>
    %c31 = arith.constant 31 : index
    %689 = memref.load %arg2[%c31] : memref<148xf32, #tpu.memory_space<smem>>
    %c67 = arith.constant 67 : index
    %690 = memref.load %arg2[%c67] : memref<148xf32, #tpu.memory_space<smem>>
    %c103 = arith.constant 103 : index
    %691 = memref.load %arg2[%c103] : memref<148xf32, #tpu.memory_space<smem>>
    %c139 = arith.constant 139 : index
    %692 = memref.load %arg2[%c139] : memref<148xf32, #tpu.memory_space<smem>>
    %693 = vector.broadcast %689 : f32 to vector<16x16xf32>
    %694 = arith.mulf %693, %688 : vector<16x16xf32>
    %695 = arith.addf %677, %694 : vector<16x16xf32>
    %696 = vector.broadcast %690 : f32 to vector<16x16xf32>
    %697 = arith.mulf %696, %688 : vector<16x16xf32>
    %698 = arith.addf %680, %697 : vector<16x16xf32>
    %699 = vector.broadcast %691 : f32 to vector<16x16xf32>
    %700 = arith.mulf %699, %688 : vector<16x16xf32>
    %701 = arith.addf %683, %700 : vector<16x16xf32>
    %702 = vector.broadcast %692 : f32 to vector<16x16xf32>
    %703 = arith.mulf %702, %688 : vector<16x16xf32>
    %704 = arith.addf %686, %703 : vector<16x16xf32>
    %c3_166 = arith.constant 3 : index
    %c8_167 = arith.constant 8 : index
    %c2_168 = arith.constant 2 : index
    %705 = vector.load %arg7[%c3_166, %c8_167, %c2_168] : memref<4x32x128xf32, #tpu.memory_space<vmem>>, vector<1x16x16xf32>
    %706 = vector.shape_cast %705 : vector<1x16x16xf32> to vector<16x16xf32>
    %c32 = arith.constant 32 : index
    %707 = memref.load %arg2[%c32] : memref<148xf32, #tpu.memory_space<smem>>
    %c68 = arith.constant 68 : index
    %708 = memref.load %arg2[%c68] : memref<148xf32, #tpu.memory_space<smem>>
    %c104 = arith.constant 104 : index
    %709 = memref.load %arg2[%c104] : memref<148xf32, #tpu.memory_space<smem>>
    %c140 = arith.constant 140 : index
    %710 = memref.load %arg2[%c140] : memref<148xf32, #tpu.memory_space<smem>>
    %711 = vector.broadcast %707 : f32 to vector<16x16xf32>
    %712 = arith.mulf %711, %706 : vector<16x16xf32>
    %713 = arith.addf %695, %712 : vector<16x16xf32>
    %714 = vector.broadcast %708 : f32 to vector<16x16xf32>
    %715 = arith.mulf %714, %706 : vector<16x16xf32>
    %716 = arith.addf %698, %715 : vector<16x16xf32>
    %717 = vector.broadcast %709 : f32 to vector<16x16xf32>
    %718 = arith.mulf %717, %706 : vector<16x16xf32>
    %719 = arith.addf %701, %718 : vector<16x16xf32>
    %720 = vector.broadcast %710 : f32 to vector<16x16xf32>
    %721 = arith.mulf %720, %706 : vector<16x16xf32>
    %722 = arith.addf %704, %721 : vector<16x16xf32>
    %c3_169 = arith.constant 3 : index
    %c9_170 = arith.constant 9 : index
    %c0_171 = arith.constant 0 : index
    %723 = vector.load %arg7[%c3_169, %c9_170, %c0_171] : memref<4x32x128xf32, #tpu.memory_space<vmem>>, vector<1x16x16xf32>
    %724 = vector.shape_cast %723 : vector<1x16x16xf32> to vector<16x16xf32>
    %c33 = arith.constant 33 : index
    %725 = memref.load %arg2[%c33] : memref<148xf32, #tpu.memory_space<smem>>
    %c69 = arith.constant 69 : index
    %726 = memref.load %arg2[%c69] : memref<148xf32, #tpu.memory_space<smem>>
    %c105 = arith.constant 105 : index
    %727 = memref.load %arg2[%c105] : memref<148xf32, #tpu.memory_space<smem>>
    %c141 = arith.constant 141 : index
    %728 = memref.load %arg2[%c141] : memref<148xf32, #tpu.memory_space<smem>>
    %729 = vector.broadcast %725 : f32 to vector<16x16xf32>
    %730 = arith.mulf %729, %724 : vector<16x16xf32>
    %731 = arith.addf %713, %730 : vector<16x16xf32>
    %732 = vector.broadcast %726 : f32 to vector<16x16xf32>
    %733 = arith.mulf %732, %724 : vector<16x16xf32>
    %734 = arith.addf %716, %733 : vector<16x16xf32>
    %735 = vector.broadcast %727 : f32 to vector<16x16xf32>
    %736 = arith.mulf %735, %724 : vector<16x16xf32>
    %737 = arith.addf %719, %736 : vector<16x16xf32>
    %738 = vector.broadcast %728 : f32 to vector<16x16xf32>
    %739 = arith.mulf %738, %724 : vector<16x16xf32>
    %740 = arith.addf %722, %739 : vector<16x16xf32>
    %c3_172 = arith.constant 3 : index
    %c9_173 = arith.constant 9 : index
    %c1_174 = arith.constant 1 : index
    %741 = vector.load %arg7[%c3_172, %c9_173, %c1_174] : memref<4x32x128xf32, #tpu.memory_space<vmem>>, vector<1x16x16xf32>
    %742 = vector.shape_cast %741 : vector<1x16x16xf32> to vector<16x16xf32>
    %c34 = arith.constant 34 : index
    %743 = memref.load %arg2[%c34] : memref<148xf32, #tpu.memory_space<smem>>
    %c70 = arith.constant 70 : index
    %744 = memref.load %arg2[%c70] : memref<148xf32, #tpu.memory_space<smem>>
    %c106 = arith.constant 106 : index
    %745 = memref.load %arg2[%c106] : memref<148xf32, #tpu.memory_space<smem>>
    %c142 = arith.constant 142 : index
    %746 = memref.load %arg2[%c142] : memref<148xf32, #tpu.memory_space<smem>>
    %747 = vector.broadcast %743 : f32 to vector<16x16xf32>
    %748 = arith.mulf %747, %742 : vector<16x16xf32>
    %749 = arith.addf %731, %748 : vector<16x16xf32>
    %750 = vector.broadcast %744 : f32 to vector<16x16xf32>
    %751 = arith.mulf %750, %742 : vector<16x16xf32>
    %752 = arith.addf %734, %751 : vector<16x16xf32>
    %753 = vector.broadcast %745 : f32 to vector<16x16xf32>
    %754 = arith.mulf %753, %742 : vector<16x16xf32>
    %755 = arith.addf %737, %754 : vector<16x16xf32>
    %756 = vector.broadcast %746 : f32 to vector<16x16xf32>
    %757 = arith.mulf %756, %742 : vector<16x16xf32>
    %758 = arith.addf %740, %757 : vector<16x16xf32>
    %c3_175 = arith.constant 3 : index
    %c9_176 = arith.constant 9 : index
    %c2_177 = arith.constant 2 : index
    %759 = vector.load %arg7[%c3_175, %c9_176, %c2_177] : memref<4x32x128xf32, #tpu.memory_space<vmem>>, vector<1x16x16xf32>
    %760 = vector.shape_cast %759 : vector<1x16x16xf32> to vector<16x16xf32>
    %c35 = arith.constant 35 : index
    %761 = memref.load %arg2[%c35] : memref<148xf32, #tpu.memory_space<smem>>
    %c71 = arith.constant 71 : index
    %762 = memref.load %arg2[%c71] : memref<148xf32, #tpu.memory_space<smem>>
    %c107 = arith.constant 107 : index
    %763 = memref.load %arg2[%c107] : memref<148xf32, #tpu.memory_space<smem>>
    %c143 = arith.constant 143 : index
    %764 = memref.load %arg2[%c143] : memref<148xf32, #tpu.memory_space<smem>>
    %765 = vector.broadcast %761 : f32 to vector<16x16xf32>
    %766 = arith.mulf %765, %760 : vector<16x16xf32>
    %767 = arith.addf %749, %766 : vector<16x16xf32>
    %768 = vector.broadcast %762 : f32 to vector<16x16xf32>
    %769 = arith.mulf %768, %760 : vector<16x16xf32>
    %770 = arith.addf %752, %769 : vector<16x16xf32>
    %771 = vector.broadcast %763 : f32 to vector<16x16xf32>
    %772 = arith.mulf %771, %760 : vector<16x16xf32>
    %773 = arith.addf %755, %772 : vector<16x16xf32>
    %774 = vector.broadcast %764 : f32 to vector<16x16xf32>
    %775 = arith.mulf %774, %760 : vector<16x16xf32>
    %776 = arith.addf %758, %775 : vector<16x16xf32>
    %c144 = arith.constant 144 : index
    %777 = memref.load %arg2[%c144] : memref<148xf32, #tpu.memory_space<smem>>
    %778 = vector.broadcast %777 : f32 to vector<16x16xf32>
    %779 = arith.addf %767, %778 : vector<16x16xf32>
    %c0_178 = arith.constant 0 : index
    %c8_179 = arith.constant 8 : index
    %c1_180 = arith.constant 1 : index
    %780 = vector.load %arg8[%c0_178, %c8_179, %c1_180] : memref<4x32x128xf32, #tpu.memory_space<vmem>>, vector<1x16x16xf32>
    %781 = vector.shape_cast %780 : vector<1x16x16xf32> to vector<16x16xf32>
    %782 = vector.shape_cast %779 : vector<16x16xf32> to vector<1x16x16xf32>
    tpu.vector_store %arg8[%c0_178, %c8_179, %c1_180], %782 {strides = array<i32>} : memref<4x32x128xf32, #tpu.memory_space<vmem>>, vector<1x16x16xf32>,
    %c145 = arith.constant 145 : index
    %783 = memref.load %arg2[%c145] : memref<148xf32, #tpu.memory_space<smem>>
    %784 = vector.broadcast %783 : f32 to vector<16x16xf32>
    %785 = arith.addf %770, %784 : vector<16x16xf32>
    %c1_181 = arith.constant 1 : index
    %c8_182 = arith.constant 8 : index
    %c1_183 = arith.constant 1 : index
    %786 = vector.load %arg8[%c1_181, %c8_182, %c1_183] : memref<4x32x128xf32, #tpu.memory_space<vmem>>, vector<1x16x16xf32>
    %787 = vector.shape_cast %786 : vector<1x16x16xf32> to vector<16x16xf32>
    %788 = vector.shape_cast %785 : vector<16x16xf32> to vector<1x16x16xf32>
    tpu.vector_store %arg8[%c1_181, %c8_182, %c1_183], %788 {strides = array<i32>} : memref<4x32x128xf32, #tpu.memory_space<vmem>>, vector<1x16x16xf32>,
    %c146 = arith.constant 146 : index
    %789 = memref.load %arg2[%c146] : memref<148xf32, #tpu.memory_space<smem>>
    %790 = vector.broadcast %789 : f32 to vector<16x16xf32>
    %791 = arith.addf %773, %790 : vector<16x16xf32>
    %c2_184 = arith.constant 2 : index
    %c8_185 = arith.constant 8 : index
    %c1_186 = arith.constant 1 : index
    %792 = vector.load %arg8[%c2_184, %c8_185, %c1_186] : memref<4x32x128xf32, #tpu.memory_space<vmem>>, vector<1x16x16xf32>
    %793 = vector.shape_cast %792 : vector<1x16x16xf32> to vector<16x16xf32>
    %794 = vector.shape_cast %791 : vector<16x16xf32> to vector<1x16x16xf32>
    tpu.vector_store %arg8[%c2_184, %c8_185, %c1_186], %794 {strides = array<i32>} : memref<4x32x128xf32, #tpu.memory_space<vmem>>, vector<1x16x16xf32>,
    %c147 = arith.constant 147 : index
    %795 = memref.load %arg2[%c147] : memref<148xf32, #tpu.memory_space<smem>>
    %796 = vector.broadcast %795 : f32 to vector<16x16xf32>
    %797 = arith.addf %776, %796 : vector<16x16xf32>
    %c3_187 = arith.constant 3 : index
    %c8_188 = arith.constant 8 : index
    %c1_189 = arith.constant 1 : index
    %798 = vector.load %arg8[%c3_187, %c8_188, %c1_189] : memref<4x32x128xf32, #tpu.memory_space<vmem>>, vector<1x16x16xf32>
    %799 = vector.shape_cast %798 : vector<1x16x16xf32> to vector<16x16xf32>
    %800 = vector.shape_cast %797 : vector<16x16xf32> to vector<1x16x16xf32>
    tpu.vector_store %arg8[%c3_187, %c8_188, %c1_189], %800 {strides = array<i32>} : memref<4x32x128xf32, #tpu.memory_space<vmem>>, vector<1x16x16xf32>,
    %cst_190 = arith.constant 0.000000e+00 : f32
    %801 = vector.broadcast %cst_190 : f32 to vector<16x16xf32>
    %cst_191 = arith.constant 0.000000e+00 : f32
    %802 = vector.broadcast %cst_191 : f32 to vector<16x16xf32>
    %cst_192 = arith.constant 0.000000e+00 : f32
    %803 = vector.broadcast %cst_192 : f32 to vector<16x16xf32>
    %c0_193 = arith.constant 0 : index
    %c7_194 = arith.constant 7 : index
    %c0_195 = arith.constant 0 : index
    %804 = vector.load %arg8[%c0_193, %c7_194, %c0_195] : memref<4x32x128xf32, #tpu.memory_space<vmem>>, vector<1x16x16xf32>
    %805 = vector.shape_cast %804 : vector<1x16x16xf32> to vector<16x16xf32>
    %c0_196 = arith.constant 0 : index
    %806 = memref.load %arg3[%c0_196] : memref<111xf32, #tpu.memory_space<smem>>
    %c36_197 = arith.constant 36 : index
    %807 = memref.load %arg3[%c36_197] : memref<111xf32, #tpu.memory_space<smem>>
    %c72_198 = arith.constant 72 : index
    %808 = memref.load %arg3[%c72_198] : memref<111xf32, #tpu.memory_space<smem>>
    %809 = vector.broadcast %806 : f32 to vector<16x16xf32>
    %810 = arith.mulf %809, %805 : vector<16x16xf32>
    %811 = arith.addf %801, %810 : vector<16x16xf32>
    %812 = vector.broadcast %807 : f32 to vector<16x16xf32>
    %813 = arith.mulf %812, %805 : vector<16x16xf32>
    %814 = arith.addf %802, %813 : vector<16x16xf32>
    %815 = vector.broadcast %808 : f32 to vector<16x16xf32>
    %816 = arith.mulf %815, %805 : vector<16x16xf32>
    %817 = arith.addf %803, %816 : vector<16x16xf32>
    %c0_199 = arith.constant 0 : index
    %c7_200 = arith.constant 7 : index
    %c1_201 = arith.constant 1 : index
    %818 = vector.load %arg8[%c0_199, %c7_200, %c1_201] : memref<4x32x128xf32, #tpu.memory_space<vmem>>, vector<1x16x16xf32>
    %819 = vector.shape_cast %818 : vector<1x16x16xf32> to vector<16x16xf32>
    %c1_202 = arith.constant 1 : index
    %820 = memref.load %arg3[%c1_202] : memref<111xf32, #tpu.memory_space<smem>>
    %c37_203 = arith.constant 37 : index
    %821 = memref.load %arg3[%c37_203] : memref<111xf32, #tpu.memory_space<smem>>
    %c73_204 = arith.constant 73 : index
    %822 = memref.load %arg3[%c73_204] : memref<111xf32, #tpu.memory_space<smem>>
    %823 = vector.broadcast %820 : f32 to vector<16x16xf32>
    %824 = arith.mulf %823, %819 : vector<16x16xf32>
    %825 = arith.addf %811, %824 : vector<16x16xf32>
    %826 = vector.broadcast %821 : f32 to vector<16x16xf32>
    %827 = arith.mulf %826, %819 : vector<16x16xf32>
    %828 = arith.addf %814, %827 : vector<16x16xf32>
    %829 = vector.broadcast %822 : f32 to vector<16x16xf32>
    %830 = arith.mulf %829, %819 : vector<16x16xf32>
    %831 = arith.addf %817, %830 : vector<16x16xf32>
    %c0_205 = arith.constant 0 : index
    %c7_206 = arith.constant 7 : index
    %c2_207 = arith.constant 2 : index
    %832 = vector.load %arg8[%c0_205, %c7_206, %c2_207] : memref<4x32x128xf32, #tpu.memory_space<vmem>>, vector<1x16x16xf32>
    %833 = vector.shape_cast %832 : vector<1x16x16xf32> to vector<16x16xf32>
    %c2_208 = arith.constant 2 : index
    %834 = memref.load %arg3[%c2_208] : memref<111xf32, #tpu.memory_space<smem>>
    %c38_209 = arith.constant 38 : index
    %835 = memref.load %arg3[%c38_209] : memref<111xf32, #tpu.memory_space<smem>>
    %c74_210 = arith.constant 74 : index
    %836 = memref.load %arg3[%c74_210] : memref<111xf32, #tpu.memory_space<smem>>
    %837 = vector.broadcast %834 : f32 to vector<16x16xf32>
    %838 = arith.mulf %837, %833 : vector<16x16xf32>
    %839 = arith.addf %825, %838 : vector<16x16xf32>
    %840 = vector.broadcast %835 : f32 to vector<16x16xf32>
    %841 = arith.mulf %840, %833 : vector<16x16xf32>
    %842 = arith.addf %828, %841 : vector<16x16xf32>
    %843 = vector.broadcast %836 : f32 to vector<16x16xf32>
    %844 = arith.mulf %843, %833 : vector<16x16xf32>
    %845 = arith.addf %831, %844 : vector<16x16xf32>
    %c0_211 = arith.constant 0 : index
    %c8_212 = arith.constant 8 : index
    %c0_213 = arith.constant 0 : index
    %846 = vector.load %arg8[%c0_211, %c8_212, %c0_213] : memref<4x32x128xf32, #tpu.memory_space<vmem>>, vector<1x16x16xf32>
    %847 = vector.shape_cast %846 : vector<1x16x16xf32> to vector<16x16xf32>
    %c3_214 = arith.constant 3 : index
    %848 = memref.load %arg3[%c3_214] : memref<111xf32, #tpu.memory_space<smem>>
    %c39_215 = arith.constant 39 : index
    %849 = memref.load %arg3[%c39_215] : memref<111xf32, #tpu.memory_space<smem>>
    %c75_216 = arith.constant 75 : index
    %850 = memref.load %arg3[%c75_216] : memref<111xf32, #tpu.memory_space<smem>>
    %851 = vector.broadcast %848 : f32 to vector<16x16xf32>
    %852 = arith.mulf %851, %847 : vector<16x16xf32>
    %853 = arith.addf %839, %852 : vector<16x16xf32>
    %854 = vector.broadcast %849 : f32 to vector<16x16xf32>
    %855 = arith.mulf %854, %847 : vector<16x16xf32>
    %856 = arith.addf %842, %855 : vector<16x16xf32>
    %857 = vector.broadcast %850 : f32 to vector<16x16xf32>
    %858 = arith.mulf %857, %847 : vector<16x16xf32>
    %859 = arith.addf %845, %858 : vector<16x16xf32>
    %c0_217 = arith.constant 0 : index
    %c8_218 = arith.constant 8 : index
    %c1_219 = arith.constant 1 : index
    %860 = vector.load %arg8[%c0_217, %c8_218, %c1_219] : memref<4x32x128xf32, #tpu.memory_space<vmem>>, vector<1x16x16xf32>
    %861 = vector.shape_cast %860 : vector<1x16x16xf32> to vector<16x16xf32>
    %c4_220 = arith.constant 4 : index
    %862 = memref.load %arg3[%c4_220] : memref<111xf32, #tpu.memory_space<smem>>
    %c40_221 = arith.constant 40 : index
    %863 = memref.load %arg3[%c40_221] : memref<111xf32, #tpu.memory_space<smem>>
    %c76_222 = arith.constant 76 : index
    %864 = memref.load %arg3[%c76_222] : memref<111xf32, #tpu.memory_space<smem>>
    %865 = vector.broadcast %862 : f32 to vector<16x16xf32>
    %866 = arith.mulf %865, %861 : vector<16x16xf32>
    %867 = arith.addf %853, %866 : vector<16x16xf32>
    %868 = vector.broadcast %863 : f32 to vector<16x16xf32>
    %869 = arith.mulf %868, %861 : vector<16x16xf32>
    %870 = arith.addf %856, %869 : vector<16x16xf32>
    %871 = vector.broadcast %864 : f32 to vector<16x16xf32>
    %872 = arith.mulf %871, %861 : vector<16x16xf32>
    %873 = arith.addf %859, %872 : vector<16x16xf32>
    %c0_223 = arith.constant 0 : index
    %c8_224 = arith.constant 8 : index
    %c2_225 = arith.constant 2 : index
    %874 = vector.load %arg8[%c0_223, %c8_224, %c2_225] : memref<4x32x128xf32, #tpu.memory_space<vmem>>, vector<1x16x16xf32>
    %875 = vector.shape_cast %874 : vector<1x16x16xf32> to vector<16x16xf32>
    %c5_226 = arith.constant 5 : index
    %876 = memref.load %arg3[%c5_226] : memref<111xf32, #tpu.memory_space<smem>>
    %c41_227 = arith.constant 41 : index
    %877 = memref.load %arg3[%c41_227] : memref<111xf32, #tpu.memory_space<smem>>
    %c77_228 = arith.constant 77 : index
    %878 = memref.load %arg3[%c77_228] : memref<111xf32, #tpu.memory_space<smem>>
    %879 = vector.broadcast %876 : f32 to vector<16x16xf32>
    %880 = arith.mulf %879, %875 : vector<16x16xf32>
    %881 = arith.addf %867, %880 : vector<16x16xf32>
    %882 = vector.broadcast %877 : f32 to vector<16x16xf32>
    %883 = arith.mulf %882, %875 : vector<16x16xf32>
    %884 = arith.addf %870, %883 : vector<16x16xf32>
    %885 = vector.broadcast %878 : f32 to vector<16x16xf32>
    %886 = arith.mulf %885, %875 : vector<16x16xf32>
    %887 = arith.addf %873, %886 : vector<16x16xf32>
    %c0_229 = arith.constant 0 : index
    %c9_230 = arith.constant 9 : index
    %c0_231 = arith.constant 0 : index
    %888 = vector.load %arg8[%c0_229, %c9_230, %c0_231] : memref<4x32x128xf32, #tpu.memory_space<vmem>>, vector<1x16x16xf32>
    %889 = vector.shape_cast %888 : vector<1x16x16xf32> to vector<16x16xf32>
    %c6_232 = arith.constant 6 : index
    %890 = memref.load %arg3[%c6_232] : memref<111xf32, #tpu.memory_space<smem>>
    %c42_233 = arith.constant 42 : index
    %891 = memref.load %arg3[%c42_233] : memref<111xf32, #tpu.memory_space<smem>>
    %c78_234 = arith.constant 78 : index
    %892 = memref.load %arg3[%c78_234] : memref<111xf32, #tpu.memory_space<smem>>
    %893 = vector.broadcast %890 : f32 to vector<16x16xf32>
    %894 = arith.mulf %893, %889 : vector<16x16xf32>
    %895 = arith.addf %881, %894 : vector<16x16xf32>
    %896 = vector.broadcast %891 : f32 to vector<16x16xf32>
    %897 = arith.mulf %896, %889 : vector<16x16xf32>
    %898 = arith.addf %884, %897 : vector<16x16xf32>
    %899 = vector.broadcast %892 : f32 to vector<16x16xf32>
    %900 = arith.mulf %899, %889 : vector<16x16xf32>
    %901 = arith.addf %887, %900 : vector<16x16xf32>
    %c0_235 = arith.constant 0 : index
    %c9_236 = arith.constant 9 : index
    %c1_237 = arith.constant 1 : index
    %902 = vector.load %arg8[%c0_235, %c9_236, %c1_237] : memref<4x32x128xf32, #tpu.memory_space<vmem>>, vector<1x16x16xf32>
    %903 = vector.shape_cast %902 : vector<1x16x16xf32> to vector<16x16xf32>
    %c7_238 = arith.constant 7 : index
    %904 = memref.load %arg3[%c7_238] : memref<111xf32, #tpu.memory_space<smem>>
    %c43_239 = arith.constant 43 : index
    %905 = memref.load %arg3[%c43_239] : memref<111xf32, #tpu.memory_space<smem>>
    %c79_240 = arith.constant 79 : index
    %906 = memref.load %arg3[%c79_240] : memref<111xf32, #tpu.memory_space<smem>>
    %907 = vector.broadcast %904 : f32 to vector<16x16xf32>
    %908 = arith.mulf %907, %903 : vector<16x16xf32>
    %909 = arith.addf %895, %908 : vector<16x16xf32>
    %910 = vector.broadcast %905 : f32 to vector<16x16xf32>
    %911 = arith.mulf %910, %903 : vector<16x16xf32>
    %912 = arith.addf %898, %911 : vector<16x16xf32>
    %913 = vector.broadcast %906 : f32 to vector<16x16xf32>
    %914 = arith.mulf %913, %903 : vector<16x16xf32>
    %915 = arith.addf %901, %914 : vector<16x16xf32>
    %c0_241 = arith.constant 0 : index
    %c9_242 = arith.constant 9 : index
    %c2_243 = arith.constant 2 : index
    %916 = vector.load %arg8[%c0_241, %c9_242, %c2_243] : memref<4x32x128xf32, #tpu.memory_space<vmem>>, vector<1x16x16xf32>
    %917 = vector.shape_cast %916 : vector<1x16x16xf32> to vector<16x16xf32>
    %c8_244 = arith.constant 8 : index
    %918 = memref.load %arg3[%c8_244] : memref<111xf32, #tpu.memory_space<smem>>
    %c44_245 = arith.constant 44 : index
    %919 = memref.load %arg3[%c44_245] : memref<111xf32, #tpu.memory_space<smem>>
    %c80_246 = arith.constant 80 : index
    %920 = memref.load %arg3[%c80_246] : memref<111xf32, #tpu.memory_space<smem>>
    %921 = vector.broadcast %918 : f32 to vector<16x16xf32>
    %922 = arith.mulf %921, %917 : vector<16x16xf32>
    %923 = arith.addf %909, %922 : vector<16x16xf32>
    %924 = vector.broadcast %919 : f32 to vector<16x16xf32>
    %925 = arith.mulf %924, %917 : vector<16x16xf32>
    %926 = arith.addf %912, %925 : vector<16x16xf32>
    %927 = vector.broadcast %920 : f32 to vector<16x16xf32>
    %928 = arith.mulf %927, %917 : vector<16x16xf32>
    %929 = arith.addf %915, %928 : vector<16x16xf32>
    %c1_247 = arith.constant 1 : index
    %c7_248 = arith.constant 7 : index
    %c0_249 = arith.constant 0 : index
    %930 = vector.load %arg8[%c1_247, %c7_248, %c0_249] : memref<4x32x128xf32, #tpu.memory_space<vmem>>, vector<1x16x16xf32>
    %931 = vector.shape_cast %930 : vector<1x16x16xf32> to vector<16x16xf32>
    %c9_250 = arith.constant 9 : index
    %932 = memref.load %arg3[%c9_250] : memref<111xf32, #tpu.memory_space<smem>>
    %c45_251 = arith.constant 45 : index
    %933 = memref.load %arg3[%c45_251] : memref<111xf32, #tpu.memory_space<smem>>
    %c81_252 = arith.constant 81 : index
    %934 = memref.load %arg3[%c81_252] : memref<111xf32, #tpu.memory_space<smem>>
    %935 = vector.broadcast %932 : f32 to vector<16x16xf32>
    %936 = arith.mulf %935, %931 : vector<16x16xf32>
    %937 = arith.addf %923, %936 : vector<16x16xf32>
    %938 = vector.broadcast %933 : f32 to vector<16x16xf32>
    %939 = arith.mulf %938, %931 : vector<16x16xf32>
    %940 = arith.addf %926, %939 : vector<16x16xf32>
    %941 = vector.broadcast %934 : f32 to vector<16x16xf32>
    %942 = arith.mulf %941, %931 : vector<16x16xf32>
    %943 = arith.addf %929, %942 : vector<16x16xf32>
    %c1_253 = arith.constant 1 : index
    %c7_254 = arith.constant 7 : index
    %c1_255 = arith.constant 1 : index
    %944 = vector.load %arg8[%c1_253, %c7_254, %c1_255] : memref<4x32x128xf32, #tpu.memory_space<vmem>>, vector<1x16x16xf32>
    %945 = vector.shape_cast %944 : vector<1x16x16xf32> to vector<16x16xf32>
    %c10_256 = arith.constant 10 : index
    %946 = memref.load %arg3[%c10_256] : memref<111xf32, #tpu.memory_space<smem>>
    %c46_257 = arith.constant 46 : index
    %947 = memref.load %arg3[%c46_257] : memref<111xf32, #tpu.memory_space<smem>>
    %c82_258 = arith.constant 82 : index
    %948 = memref.load %arg3[%c82_258] : memref<111xf32, #tpu.memory_space<smem>>
    %949 = vector.broadcast %946 : f32 to vector<16x16xf32>
    %950 = arith.mulf %949, %945 : vector<16x16xf32>
    %951 = arith.addf %937, %950 : vector<16x16xf32>
    %952 = vector.broadcast %947 : f32 to vector<16x16xf32>
    %953 = arith.mulf %952, %945 : vector<16x16xf32>
    %954 = arith.addf %940, %953 : vector<16x16xf32>
    %955 = vector.broadcast %948 : f32 to vector<16x16xf32>
    %956 = arith.mulf %955, %945 : vector<16x16xf32>
    %957 = arith.addf %943, %956 : vector<16x16xf32>
    %c1_259 = arith.constant 1 : index
    %c7_260 = arith.constant 7 : index
    %c2_261 = arith.constant 2 : index
    %958 = vector.load %arg8[%c1_259, %c7_260, %c2_261] : memref<4x32x128xf32, #tpu.memory_space<vmem>>, vector<1x16x16xf32>
    %959 = vector.shape_cast %958 : vector<1x16x16xf32> to vector<16x16xf32>
    %c11_262 = arith.constant 11 : index
    %960 = memref.load %arg3[%c11_262] : memref<111xf32, #tpu.memory_space<smem>>
    %c47_263 = arith.constant 47 : index
    %961 = memref.load %arg3[%c47_263] : memref<111xf32, #tpu.memory_space<smem>>
    %c83_264 = arith.constant 83 : index
    %962 = memref.load %arg3[%c83_264] : memref<111xf32, #tpu.memory_space<smem>>
    %963 = vector.broadcast %960 : f32 to vector<16x16xf32>
    %964 = arith.mulf %963, %959 : vector<16x16xf32>
    %965 = arith.addf %951, %964 : vector<16x16xf32>
    %966 = vector.broadcast %961 : f32 to vector<16x16xf32>
    %967 = arith.mulf %966, %959 : vector<16x16xf32>
    %968 = arith.addf %954, %967 : vector<16x16xf32>
    %969 = vector.broadcast %962 : f32 to vector<16x16xf32>
    %970 = arith.mulf %969, %959 : vector<16x16xf32>
    %971 = arith.addf %957, %970 : vector<16x16xf32>
    %c1_265 = arith.constant 1 : index
    %c8_266 = arith.constant 8 : index
    %c0_267 = arith.constant 0 : index
    %972 = vector.load %arg8[%c1_265, %c8_266, %c0_267] : memref<4x32x128xf32, #tpu.memory_space<vmem>>, vector<1x16x16xf32>
    %973 = vector.shape_cast %972 : vector<1x16x16xf32> to vector<16x16xf32>
    %c12_268 = arith.constant 12 : index
    %974 = memref.load %arg3[%c12_268] : memref<111xf32, #tpu.memory_space<smem>>
    %c48_269 = arith.constant 48 : index
    %975 = memref.load %arg3[%c48_269] : memref<111xf32, #tpu.memory_space<smem>>
    %c84_270 = arith.constant 84 : index
    %976 = memref.load %arg3[%c84_270] : memref<111xf32, #tpu.memory_space<smem>>
    %977 = vector.broadcast %974 : f32 to vector<16x16xf32>
    %978 = arith.mulf %977, %973 : vector<16x16xf32>
    %979 = arith.addf %965, %978 : vector<16x16xf32>
    %980 = vector.broadcast %975 : f32 to vector<16x16xf32>
    %981 = arith.mulf %980, %973 : vector<16x16xf32>
    %982 = arith.addf %968, %981 : vector<16x16xf32>
    %983 = vector.broadcast %976 : f32 to vector<16x16xf32>
    %984 = arith.mulf %983, %973 : vector<16x16xf32>
    %985 = arith.addf %971, %984 : vector<16x16xf32>
    %c1_271 = arith.constant 1 : index
    %c8_272 = arith.constant 8 : index
    %c1_273 = arith.constant 1 : index
    %986 = vector.load %arg8[%c1_271, %c8_272, %c1_273] : memref<4x32x128xf32, #tpu.memory_space<vmem>>, vector<1x16x16xf32>
    %987 = vector.shape_cast %986 : vector<1x16x16xf32> to vector<16x16xf32>
    %c13_274 = arith.constant 13 : index
    %988 = memref.load %arg3[%c13_274] : memref<111xf32, #tpu.memory_space<smem>>
    %c49_275 = arith.constant 49 : index
    %989 = memref.load %arg3[%c49_275] : memref<111xf32, #tpu.memory_space<smem>>
    %c85_276 = arith.constant 85 : index
    %990 = memref.load %arg3[%c85_276] : memref<111xf32, #tpu.memory_space<smem>>
    %991 = vector.broadcast %988 : f32 to vector<16x16xf32>
    %992 = arith.mulf %991, %987 : vector<16x16xf32>
    %993 = arith.addf %979, %992 : vector<16x16xf32>
    %994 = vector.broadcast %989 : f32 to vector<16x16xf32>
    %995 = arith.mulf %994, %987 : vector<16x16xf32>
    %996 = arith.addf %982, %995 : vector<16x16xf32>
    %997 = vector.broadcast %990 : f32 to vector<16x16xf32>
    %998 = arith.mulf %997, %987 : vector<16x16xf32>
    %999 = arith.addf %985, %998 : vector<16x16xf32>
    %c1_277 = arith.constant 1 : index
    %c8_278 = arith.constant 8 : index
    %c2_279 = arith.constant 2 : index
    %1000 = vector.load %arg8[%c1_277, %c8_278, %c2_279] : memref<4x32x128xf32, #tpu.memory_space<vmem>>, vector<1x16x16xf32>
    %1001 = vector.shape_cast %1000 : vector<1x16x16xf32> to vector<16x16xf32>
    %c14_280 = arith.constant 14 : index
    %1002 = memref.load %arg3[%c14_280] : memref<111xf32, #tpu.memory_space<smem>>
    %c50_281 = arith.constant 50 : index
    %1003 = memref.load %arg3[%c50_281] : memref<111xf32, #tpu.memory_space<smem>>
    %c86_282 = arith.constant 86 : index
    %1004 = memref.load %arg3[%c86_282] : memref<111xf32, #tpu.memory_space<smem>>
    %1005 = vector.broadcast %1002 : f32 to vector<16x16xf32>
    %1006 = arith.mulf %1005, %1001 : vector<16x16xf32>
    %1007 = arith.addf %993, %1006 : vector<16x16xf32>
    %1008 = vector.broadcast %1003 : f32 to vector<16x16xf32>
    %1009 = arith.mulf %1008, %1001 : vector<16x16xf32>
    %1010 = arith.addf %996, %1009 : vector<16x16xf32>
    %1011 = vector.broadcast %1004 : f32 to vector<16x16xf32>
    %1012 = arith.mulf %1011, %1001 : vector<16x16xf32>
    %1013 = arith.addf %999, %1012 : vector<16x16xf32>
    %c1_283 = arith.constant 1 : index
    %c9_284 = arith.constant 9 : index
    %c0_285 = arith.constant 0 : index
    %1014 = vector.load %arg8[%c1_283, %c9_284, %c0_285] : memref<4x32x128xf32, #tpu.memory_space<vmem>>, vector<1x16x16xf32>
    %1015 = vector.shape_cast %1014 : vector<1x16x16xf32> to vector<16x16xf32>
    %c15_286 = arith.constant 15 : index
    %1016 = memref.load %arg3[%c15_286] : memref<111xf32, #tpu.memory_space<smem>>
    %c51_287 = arith.constant 51 : index
    %1017 = memref.load %arg3[%c51_287] : memref<111xf32, #tpu.memory_space<smem>>
    %c87_288 = arith.constant 87 : index
    %1018 = memref.load %arg3[%c87_288] : memref<111xf32, #tpu.memory_space<smem>>
    %1019 = vector.broadcast %1016 : f32 to vector<16x16xf32>
    %1020 = arith.mulf %1019, %1015 : vector<16x16xf32>
    %1021 = arith.addf %1007, %1020 : vector<16x16xf32>
    %1022 = vector.broadcast %1017 : f32 to vector<16x16xf32>
    %1023 = arith.mulf %1022, %1015 : vector<16x16xf32>
    %1024 = arith.addf %1010, %1023 : vector<16x16xf32>
    %1025 = vector.broadcast %1018 : f32 to vector<16x16xf32>
    %1026 = arith.mulf %1025, %1015 : vector<16x16xf32>
    %1027 = arith.addf %1013, %1026 : vector<16x16xf32>
    %c1_289 = arith.constant 1 : index
    %c9_290 = arith.constant 9 : index
    %c1_291 = arith.constant 1 : index
    %1028 = vector.load %arg8[%c1_289, %c9_290, %c1_291] : memref<4x32x128xf32, #tpu.memory_space<vmem>>, vector<1x16x16xf32>
    %1029 = vector.shape_cast %1028 : vector<1x16x16xf32> to vector<16x16xf32>
    %c16_292 = arith.constant 16 : index
    %1030 = memref.load %arg3[%c16_292] : memref<111xf32, #tpu.memory_space<smem>>
    %c52_293 = arith.constant 52 : index
    %1031 = memref.load %arg3[%c52_293] : memref<111xf32, #tpu.memory_space<smem>>
    %c88_294 = arith.constant 88 : index
    %1032 = memref.load %arg3[%c88_294] : memref<111xf32, #tpu.memory_space<smem>>
    %1033 = vector.broadcast %1030 : f32 to vector<16x16xf32>
    %1034 = arith.mulf %1033, %1029 : vector<16x16xf32>
    %1035 = arith.addf %1021, %1034 : vector<16x16xf32>
    %1036 = vector.broadcast %1031 : f32 to vector<16x16xf32>
    %1037 = arith.mulf %1036, %1029 : vector<16x16xf32>
    %1038 = arith.addf %1024, %1037 : vector<16x16xf32>
    %1039 = vector.broadcast %1032 : f32 to vector<16x16xf32>
    %1040 = arith.mulf %1039, %1029 : vector<16x16xf32>
    %1041 = arith.addf %1027, %1040 : vector<16x16xf32>
    %c1_295 = arith.constant 1 : index
    %c9_296 = arith.constant 9 : index
    %c2_297 = arith.constant 2 : index
    %1042 = vector.load %arg8[%c1_295, %c9_296, %c2_297] : memref<4x32x128xf32, #tpu.memory_space<vmem>>, vector<1x16x16xf32>
    %1043 = vector.shape_cast %1042 : vector<1x16x16xf32> to vector<16x16xf32>
    %c17_298 = arith.constant 17 : index
    %1044 = memref.load %arg3[%c17_298] : memref<111xf32, #tpu.memory_space<smem>>
    %c53_299 = arith.constant 53 : index
    %1045 = memref.load %arg3[%c53_299] : memref<111xf32, #tpu.memory_space<smem>>
    %c89_300 = arith.constant 89 : index
    %1046 = memref.load %arg3[%c89_300] : memref<111xf32, #tpu.memory_space<smem>>
    %1047 = vector.broadcast %1044 : f32 to vector<16x16xf32>
    %1048 = arith.mulf %1047, %1043 : vector<16x16xf32>
    %1049 = arith.addf %1035, %1048 : vector<16x16xf32>
    %1050 = vector.broadcast %1045 : f32 to vector<16x16xf32>
    %1051 = arith.mulf %1050, %1043 : vector<16x16xf32>
    %1052 = arith.addf %1038, %1051 : vector<16x16xf32>
    %1053 = vector.broadcast %1046 : f32 to vector<16x16xf32>
    %1054 = arith.mulf %1053, %1043 : vector<16x16xf32>
    %1055 = arith.addf %1041, %1054 : vector<16x16xf32>
    %c2_301 = arith.constant 2 : index
    %c7_302 = arith.constant 7 : index
    %c0_303 = arith.constant 0 : index
    %1056 = vector.load %arg8[%c2_301, %c7_302, %c0_303] : memref<4x32x128xf32, #tpu.memory_space<vmem>>, vector<1x16x16xf32>
    %1057 = vector.shape_cast %1056 : vector<1x16x16xf32> to vector<16x16xf32>
    %c18_304 = arith.constant 18 : index
    %1058 = memref.load %arg3[%c18_304] : memref<111xf32, #tpu.memory_space<smem>>
    %c54_305 = arith.constant 54 : index
    %1059 = memref.load %arg3[%c54_305] : memref<111xf32, #tpu.memory_space<smem>>
    %c90_306 = arith.constant 90 : index
    %1060 = memref.load %arg3[%c90_306] : memref<111xf32, #tpu.memory_space<smem>>
    %1061 = vector.broadcast %1058 : f32 to vector<16x16xf32>
    %1062 = arith.mulf %1061, %1057 : vector<16x16xf32>
    %1063 = arith.addf %1049, %1062 : vector<16x16xf32>
    %1064 = vector.broadcast %1059 : f32 to vector<16x16xf32>
    %1065 = arith.mulf %1064, %1057 : vector<16x16xf32>
    %1066 = arith.addf %1052, %1065 : vector<16x16xf32>
    %1067 = vector.broadcast %1060 : f32 to vector<16x16xf32>
    %1068 = arith.mulf %1067, %1057 : vector<16x16xf32>
    %1069 = arith.addf %1055, %1068 : vector<16x16xf32>
    %c2_307 = arith.constant 2 : index
    %c7_308 = arith.constant 7 : index
    %c1_309 = arith.constant 1 : index
    %1070 = vector.load %arg8[%c2_307, %c7_308, %c1_309] : memref<4x32x128xf32, #tpu.memory_space<vmem>>, vector<1x16x16xf32>
    %1071 = vector.shape_cast %1070 : vector<1x16x16xf32> to vector<16x16xf32>
    %c19_310 = arith.constant 19 : index
    %1072 = memref.load %arg3[%c19_310] : memref<111xf32, #tpu.memory_space<smem>>
    %c55_311 = arith.constant 55 : index
    %1073 = memref.load %arg3[%c55_311] : memref<111xf32, #tpu.memory_space<smem>>
    %c91_312 = arith.constant 91 : index
    %1074 = memref.load %arg3[%c91_312] : memref<111xf32, #tpu.memory_space<smem>>
    %1075 = vector.broadcast %1072 : f32 to vector<16x16xf32>
    %1076 = arith.mulf %1075, %1071 : vector<16x16xf32>
    %1077 = arith.addf %1063, %1076 : vector<16x16xf32>
    %1078 = vector.broadcast %1073 : f32 to vector<16x16xf32>
    %1079 = arith.mulf %1078, %1071 : vector<16x16xf32>
    %1080 = arith.addf %1066, %1079 : vector<16x16xf32>
    %1081 = vector.broadcast %1074 : f32 to vector<16x16xf32>
    %1082 = arith.mulf %1081, %1071 : vector<16x16xf32>
    %1083 = arith.addf %1069, %1082 : vector<16x16xf32>
    %c2_313 = arith.constant 2 : index
    %c7_314 = arith.constant 7 : index
    %c2_315 = arith.constant 2 : index
    %1084 = vector.load %arg8[%c2_313, %c7_314, %c2_315] : memref<4x32x128xf32, #tpu.memory_space<vmem>>, vector<1x16x16xf32>
    %1085 = vector.shape_cast %1084 : vector<1x16x16xf32> to vector<16x16xf32>
    %c20_316 = arith.constant 20 : index
    %1086 = memref.load %arg3[%c20_316] : memref<111xf32, #tpu.memory_space<smem>>
    %c56_317 = arith.constant 56 : index
    %1087 = memref.load %arg3[%c56_317] : memref<111xf32, #tpu.memory_space<smem>>
    %c92_318 = arith.constant 92 : index
    %1088 = memref.load %arg3[%c92_318] : memref<111xf32, #tpu.memory_space<smem>>
    %1089 = vector.broadcast %1086 : f32 to vector<16x16xf32>
    %1090 = arith.mulf %1089, %1085 : vector<16x16xf32>
    %1091 = arith.addf %1077, %1090 : vector<16x16xf32>
    %1092 = vector.broadcast %1087 : f32 to vector<16x16xf32>
    %1093 = arith.mulf %1092, %1085 : vector<16x16xf32>
    %1094 = arith.addf %1080, %1093 : vector<16x16xf32>
    %1095 = vector.broadcast %1088 : f32 to vector<16x16xf32>
    %1096 = arith.mulf %1095, %1085 : vector<16x16xf32>
    %1097 = arith.addf %1083, %1096 : vector<16x16xf32>
    %c2_319 = arith.constant 2 : index
    %c8_320 = arith.constant 8 : index
    %c0_321 = arith.constant 0 : index
    %1098 = vector.load %arg8[%c2_319, %c8_320, %c0_321] : memref<4x32x128xf32, #tpu.memory_space<vmem>>, vector<1x16x16xf32>
    %1099 = vector.shape_cast %1098 : vector<1x16x16xf32> to vector<16x16xf32>
    %c21_322 = arith.constant 21 : index
    %1100 = memref.load %arg3[%c21_322] : memref<111xf32, #tpu.memory_space<smem>>
    %c57_323 = arith.constant 57 : index
    %1101 = memref.load %arg3[%c57_323] : memref<111xf32, #tpu.memory_space<smem>>
    %c93_324 = arith.constant 93 : index
    %1102 = memref.load %arg3[%c93_324] : memref<111xf32, #tpu.memory_space<smem>>
    %1103 = vector.broadcast %1100 : f32 to vector<16x16xf32>
    %1104 = arith.mulf %1103, %1099 : vector<16x16xf32>
    %1105 = arith.addf %1091, %1104 : vector<16x16xf32>
    %1106 = vector.broadcast %1101 : f32 to vector<16x16xf32>
    %1107 = arith.mulf %1106, %1099 : vector<16x16xf32>
    %1108 = arith.addf %1094, %1107 : vector<16x16xf32>
    %1109 = vector.broadcast %1102 : f32 to vector<16x16xf32>
    %1110 = arith.mulf %1109, %1099 : vector<16x16xf32>
    %1111 = arith.addf %1097, %1110 : vector<16x16xf32>
    %c2_325 = arith.constant 2 : index
    %c8_326 = arith.constant 8 : index
    %c1_327 = arith.constant 1 : index
    %1112 = vector.load %arg8[%c2_325, %c8_326, %c1_327] : memref<4x32x128xf32, #tpu.memory_space<vmem>>, vector<1x16x16xf32>
    %1113 = vector.shape_cast %1112 : vector<1x16x16xf32> to vector<16x16xf32>
    %c22_328 = arith.constant 22 : index
    %1114 = memref.load %arg3[%c22_328] : memref<111xf32, #tpu.memory_space<smem>>
    %c58_329 = arith.constant 58 : index
    %1115 = memref.load %arg3[%c58_329] : memref<111xf32, #tpu.memory_space<smem>>
    %c94_330 = arith.constant 94 : index
    %1116 = memref.load %arg3[%c94_330] : memref<111xf32, #tpu.memory_space<smem>>
    %1117 = vector.broadcast %1114 : f32 to vector<16x16xf32>
    %1118 = arith.mulf %1117, %1113 : vector<16x16xf32>
    %1119 = arith.addf %1105, %1118 : vector<16x16xf32>
    %1120 = vector.broadcast %1115 : f32 to vector<16x16xf32>
    %1121 = arith.mulf %1120, %1113 : vector<16x16xf32>
    %1122 = arith.addf %1108, %1121 : vector<16x16xf32>
    %1123 = vector.broadcast %1116 : f32 to vector<16x16xf32>
    %1124 = arith.mulf %1123, %1113 : vector<16x16xf32>
    %1125 = arith.addf %1111, %1124 : vector<16x16xf32>
    %c2_331 = arith.constant 2 : index
    %c8_332 = arith.constant 8 : index
    %c2_333 = arith.constant 2 : index
    %1126 = vector.load %arg8[%c2_331, %c8_332, %c2_333] : memref<4x32x128xf32, #tpu.memory_space<vmem>>, vector<1x16x16xf32>
    %1127 = vector.shape_cast %1126 : vector<1x16x16xf32> to vector<16x16xf32>
    %c23_334 = arith.constant 23 : index
    %1128 = memref.load %arg3[%c23_334] : memref<111xf32, #tpu.memory_space<smem>>
    %c59_335 = arith.constant 59 : index
    %1129 = memref.load %arg3[%c59_335] : memref<111xf32, #tpu.memory_space<smem>>
    %c95_336 = arith.constant 95 : index
    %1130 = memref.load %arg3[%c95_336] : memref<111xf32, #tpu.memory_space<smem>>
    %1131 = vector.broadcast %1128 : f32 to vector<16x16xf32>
    %1132 = arith.mulf %1131, %1127 : vector<16x16xf32>
    %1133 = arith.addf %1119, %1132 : vector<16x16xf32>
    %1134 = vector.broadcast %1129 : f32 to vector<16x16xf32>
    %1135 = arith.mulf %1134, %1127 : vector<16x16xf32>
    %1136 = arith.addf %1122, %1135 : vector<16x16xf32>
    %1137 = vector.broadcast %1130 : f32 to vector<16x16xf32>
    %1138 = arith.mulf %1137, %1127 : vector<16x16xf32>
    %1139 = arith.addf %1125, %1138 : vector<16x16xf32>
    %c2_337 = arith.constant 2 : index
    %c9_338 = arith.constant 9 : index
    %c0_339 = arith.constant 0 : index
    %1140 = vector.load %arg8[%c2_337, %c9_338, %c0_339] : memref<4x32x128xf32, #tpu.memory_space<vmem>>, vector<1x16x16xf32>
    %1141 = vector.shape_cast %1140 : vector<1x16x16xf32> to vector<16x16xf32>
    %c24_340 = arith.constant 24 : index
    %1142 = memref.load %arg3[%c24_340] : memref<111xf32, #tpu.memory_space<smem>>
    %c60_341 = arith.constant 60 : index
    %1143 = memref.load %arg3[%c60_341] : memref<111xf32, #tpu.memory_space<smem>>
    %c96_342 = arith.constant 96 : index
    %1144 = memref.load %arg3[%c96_342] : memref<111xf32, #tpu.memory_space<smem>>
    %1145 = vector.broadcast %1142 : f32 to vector<16x16xf32>
    %1146 = arith.mulf %1145, %1141 : vector<16x16xf32>
    %1147 = arith.addf %1133, %1146 : vector<16x16xf32>
    %1148 = vector.broadcast %1143 : f32 to vector<16x16xf32>
    %1149 = arith.mulf %1148, %1141 : vector<16x16xf32>
    %1150 = arith.addf %1136, %1149 : vector<16x16xf32>
    %1151 = vector.broadcast %1144 : f32 to vector<16x16xf32>
    %1152 = arith.mulf %1151, %1141 : vector<16x16xf32>
    %1153 = arith.addf %1139, %1152 : vector<16x16xf32>
    %c2_343 = arith.constant 2 : index
    %c9_344 = arith.constant 9 : index
    %c1_345 = arith.constant 1 : index
    %1154 = vector.load %arg8[%c2_343, %c9_344, %c1_345] : memref<4x32x128xf32, #tpu.memory_space<vmem>>, vector<1x16x16xf32>
    %1155 = vector.shape_cast %1154 : vector<1x16x16xf32> to vector<16x16xf32>
    %c25_346 = arith.constant 25 : index
    %1156 = memref.load %arg3[%c25_346] : memref<111xf32, #tpu.memory_space<smem>>
    %c61_347 = arith.constant 61 : index
    %1157 = memref.load %arg3[%c61_347] : memref<111xf32, #tpu.memory_space<smem>>
    %c97_348 = arith.constant 97 : index
    %1158 = memref.load %arg3[%c97_348] : memref<111xf32, #tpu.memory_space<smem>>
    %1159 = vector.broadcast %1156 : f32 to vector<16x16xf32>
    %1160 = arith.mulf %1159, %1155 : vector<16x16xf32>
    %1161 = arith.addf %1147, %1160 : vector<16x16xf32>
    %1162 = vector.broadcast %1157 : f32 to vector<16x16xf32>
    %1163 = arith.mulf %1162, %1155 : vector<16x16xf32>
    %1164 = arith.addf %1150, %1163 : vector<16x16xf32>
    %1165 = vector.broadcast %1158 : f32 to vector<16x16xf32>
    %1166 = arith.mulf %1165, %1155 : vector<16x16xf32>
    %1167 = arith.addf %1153, %1166 : vector<16x16xf32>
    %c2_349 = arith.constant 2 : index
    %c9_350 = arith.constant 9 : index
    %c2_351 = arith.constant 2 : index
    %1168 = vector.load %arg8[%c2_349, %c9_350, %c2_351] : memref<4x32x128xf32, #tpu.memory_space<vmem>>, vector<1x16x16xf32>
    %1169 = vector.shape_cast %1168 : vector<1x16x16xf32> to vector<16x16xf32>
    %c26_352 = arith.constant 26 : index
    %1170 = memref.load %arg3[%c26_352] : memref<111xf32, #tpu.memory_space<smem>>
    %c62_353 = arith.constant 62 : index
    %1171 = memref.load %arg3[%c62_353] : memref<111xf32, #tpu.memory_space<smem>>
    %c98_354 = arith.constant 98 : index
    %1172 = memref.load %arg3[%c98_354] : memref<111xf32, #tpu.memory_space<smem>>
    %1173 = vector.broadcast %1170 : f32 to vector<16x16xf32>
    %1174 = arith.mulf %1173, %1169 : vector<16x16xf32>
    %1175 = arith.addf %1161, %1174 : vector<16x16xf32>
    %1176 = vector.broadcast %1171 : f32 to vector<16x16xf32>
    %1177 = arith.mulf %1176, %1169 : vector<16x16xf32>
    %1178 = arith.addf %1164, %1177 : vector<16x16xf32>
    %1179 = vector.broadcast %1172 : f32 to vector<16x16xf32>
    %1180 = arith.mulf %1179, %1169 : vector<16x16xf32>
    %1181 = arith.addf %1167, %1180 : vector<16x16xf32>
    %c3_355 = arith.constant 3 : index
    %c7_356 = arith.constant 7 : index
    %c0_357 = arith.constant 0 : index
    %1182 = vector.load %arg8[%c3_355, %c7_356, %c0_357] : memref<4x32x128xf32, #tpu.memory_space<vmem>>, vector<1x16x16xf32>
    %1183 = vector.shape_cast %1182 : vector<1x16x16xf32> to vector<16x16xf32>
    %c27_358 = arith.constant 27 : index
    %1184 = memref.load %arg3[%c27_358] : memref<111xf32, #tpu.memory_space<smem>>
    %c63_359 = arith.constant 63 : index
    %1185 = memref.load %arg3[%c63_359] : memref<111xf32, #tpu.memory_space<smem>>
    %c99_360 = arith.constant 99 : index
    %1186 = memref.load %arg3[%c99_360] : memref<111xf32, #tpu.memory_space<smem>>
    %1187 = vector.broadcast %1184 : f32 to vector<16x16xf32>
    %1188 = arith.mulf %1187, %1183 : vector<16x16xf32>
    %1189 = arith.addf %1175, %1188 : vector<16x16xf32>
    %1190 = vector.broadcast %1185 : f32 to vector<16x16xf32>
    %1191 = arith.mulf %1190, %1183 : vector<16x16xf32>
    %1192 = arith.addf %1178, %1191 : vector<16x16xf32>
    %1193 = vector.broadcast %1186 : f32 to vector<16x16xf32>
    %1194 = arith.mulf %1193, %1183 : vector<16x16xf32>
    %1195 = arith.addf %1181, %1194 : vector<16x16xf32>
    %c3_361 = arith.constant 3 : index
    %c7_362 = arith.constant 7 : index
    %c1_363 = arith.constant 1 : index
    %1196 = vector.load %arg8[%c3_361, %c7_362, %c1_363] : memref<4x32x128xf32, #tpu.memory_space<vmem>>, vector<1x16x16xf32>
    %1197 = vector.shape_cast %1196 : vector<1x16x16xf32> to vector<16x16xf32>
    %c28_364 = arith.constant 28 : index
    %1198 = memref.load %arg3[%c28_364] : memref<111xf32, #tpu.memory_space<smem>>
    %c64_365 = arith.constant 64 : index
    %1199 = memref.load %arg3[%c64_365] : memref<111xf32, #tpu.memory_space<smem>>
    %c100_366 = arith.constant 100 : index
    %1200 = memref.load %arg3[%c100_366] : memref<111xf32, #tpu.memory_space<smem>>
    %1201 = vector.broadcast %1198 : f32 to vector<16x16xf32>
    %1202 = arith.mulf %1201, %1197 : vector<16x16xf32>
    %1203 = arith.addf %1189, %1202 : vector<16x16xf32>
    %1204 = vector.broadcast %1199 : f32 to vector<16x16xf32>
    %1205 = arith.mulf %1204, %1197 : vector<16x16xf32>
    %1206 = arith.addf %1192, %1205 : vector<16x16xf32>
    %1207 = vector.broadcast %1200 : f32 to vector<16x16xf32>
    %1208 = arith.mulf %1207, %1197 : vector<16x16xf32>
    %1209 = arith.addf %1195, %1208 : vector<16x16xf32>
    %c3_367 = arith.constant 3 : index
    %c7_368 = arith.constant 7 : index
    %c2_369 = arith.constant 2 : index
    %1210 = vector.load %arg8[%c3_367, %c7_368, %c2_369] : memref<4x32x128xf32, #tpu.memory_space<vmem>>, vector<1x16x16xf32>
    %1211 = vector.shape_cast %1210 : vector<1x16x16xf32> to vector<16x16xf32>
    %c29_370 = arith.constant 29 : index
    %1212 = memref.load %arg3[%c29_370] : memref<111xf32, #tpu.memory_space<smem>>
    %c65_371 = arith.constant 65 : index
    %1213 = memref.load %arg3[%c65_371] : memref<111xf32, #tpu.memory_space<smem>>
    %c101_372 = arith.constant 101 : index
    %1214 = memref.load %arg3[%c101_372] : memref<111xf32, #tpu.memory_space<smem>>
    %1215 = vector.broadcast %1212 : f32 to vector<16x16xf32>
    %1216 = arith.mulf %1215, %1211 : vector<16x16xf32>
    %1217 = arith.addf %1203, %1216 : vector<16x16xf32>
    %1218 = vector.broadcast %1213 : f32 to vector<16x16xf32>
    %1219 = arith.mulf %1218, %1211 : vector<16x16xf32>
    %1220 = arith.addf %1206, %1219 : vector<16x16xf32>
    %1221 = vector.broadcast %1214 : f32 to vector<16x16xf32>
    %1222 = arith.mulf %1221, %1211 : vector<16x16xf32>
    %1223 = arith.addf %1209, %1222 : vector<16x16xf32>
    %c3_373 = arith.constant 3 : index
    %c8_374 = arith.constant 8 : index
    %c0_375 = arith.constant 0 : index
    %1224 = vector.load %arg8[%c3_373, %c8_374, %c0_375] : memref<4x32x128xf32, #tpu.memory_space<vmem>>, vector<1x16x16xf32>
    %1225 = vector.shape_cast %1224 : vector<1x16x16xf32> to vector<16x16xf32>
    %c30_376 = arith.constant 30 : index
    %1226 = memref.load %arg3[%c30_376] : memref<111xf32, #tpu.memory_space<smem>>
    %c66_377 = arith.constant 66 : index
    %1227 = memref.load %arg3[%c66_377] : memref<111xf32, #tpu.memory_space<smem>>
    %c102_378 = arith.constant 102 : index
    %1228 = memref.load %arg3[%c102_378] : memref<111xf32, #tpu.memory_space<smem>>
    %1229 = vector.broadcast %1226 : f32 to vector<16x16xf32>
    %1230 = arith.mulf %1229, %1225 : vector<16x16xf32>
    %1231 = arith.addf %1217, %1230 : vector<16x16xf32>
    %1232 = vector.broadcast %1227 : f32 to vector<16x16xf32>
    %1233 = arith.mulf %1232, %1225 : vector<16x16xf32>
    %1234 = arith.addf %1220, %1233 : vector<16x16xf32>
    %1235 = vector.broadcast %1228 : f32 to vector<16x16xf32>
    %1236 = arith.mulf %1235, %1225 : vector<16x16xf32>
    %1237 = arith.addf %1223, %1236 : vector<16x16xf32>
    %c3_379 = arith.constant 3 : index
    %c8_380 = arith.constant 8 : index
    %c1_381 = arith.constant 1 : index
    %1238 = vector.load %arg8[%c3_379, %c8_380, %c1_381] : memref<4x32x128xf32, #tpu.memory_space<vmem>>, vector<1x16x16xf32>
    %1239 = vector.shape_cast %1238 : vector<1x16x16xf32> to vector<16x16xf32>
    %c31_382 = arith.constant 31 : index
    %1240 = memref.load %arg3[%c31_382] : memref<111xf32, #tpu.memory_space<smem>>
    %c67_383 = arith.constant 67 : index
    %1241 = memref.load %arg3[%c67_383] : memref<111xf32, #tpu.memory_space<smem>>
    %c103_384 = arith.constant 103 : index
    %1242 = memref.load %arg3[%c103_384] : memref<111xf32, #tpu.memory_space<smem>>
    %1243 = vector.broadcast %1240 : f32 to vector<16x16xf32>
    %1244 = arith.mulf %1243, %1239 : vector<16x16xf32>
    %1245 = arith.addf %1231, %1244 : vector<16x16xf32>
    %1246 = vector.broadcast %1241 : f32 to vector<16x16xf32>
    %1247 = arith.mulf %1246, %1239 : vector<16x16xf32>
    %1248 = arith.addf %1234, %1247 : vector<16x16xf32>
    %1249 = vector.broadcast %1242 : f32 to vector<16x16xf32>
    %1250 = arith.mulf %1249, %1239 : vector<16x16xf32>
    %1251 = arith.addf %1237, %1250 : vector<16x16xf32>
    %c3_385 = arith.constant 3 : index
    %c8_386 = arith.constant 8 : index
    %c2_387 = arith.constant 2 : index
    %1252 = vector.load %arg8[%c3_385, %c8_386, %c2_387] : memref<4x32x128xf32, #tpu.memory_space<vmem>>, vector<1x16x16xf32>
    %1253 = vector.shape_cast %1252 : vector<1x16x16xf32> to vector<16x16xf32>
    %c32_388 = arith.constant 32 : index
    %1254 = memref.load %arg3[%c32_388] : memref<111xf32, #tpu.memory_space<smem>>
    %c68_389 = arith.constant 68 : index
    %1255 = memref.load %arg3[%c68_389] : memref<111xf32, #tpu.memory_space<smem>>
    %c104_390 = arith.constant 104 : index
    %1256 = memref.load %arg3[%c104_390] : memref<111xf32, #tpu.memory_space<smem>>
    %1257 = vector.broadcast %1254 : f32 to vector<16x16xf32>
    %1258 = arith.mulf %1257, %1253 : vector<16x16xf32>
    %1259 = arith.addf %1245, %1258 : vector<16x16xf32>
    %1260 = vector.broadcast %1255 : f32 to vector<16x16xf32>
    %1261 = arith.mulf %1260, %1253 : vector<16x16xf32>
    %1262 = arith.addf %1248, %1261 : vector<16x16xf32>
    %1263 = vector.broadcast %1256 : f32 to vector<16x16xf32>
    %1264 = arith.mulf %1263, %1253 : vector<16x16xf32>
    %1265 = arith.addf %1251, %1264 : vector<16x16xf32>
    %c3_391 = arith.constant 3 : index
    %c9_392 = arith.constant 9 : index
    %c0_393 = arith.constant 0 : index
    %1266 = vector.load %arg8[%c3_391, %c9_392, %c0_393] : memref<4x32x128xf32, #tpu.memory_space<vmem>>, vector<1x16x16xf32>
    %1267 = vector.shape_cast %1266 : vector<1x16x16xf32> to vector<16x16xf32>
    %c33_394 = arith.constant 33 : index
    %1268 = memref.load %arg3[%c33_394] : memref<111xf32, #tpu.memory_space<smem>>
    %c69_395 = arith.constant 69 : index
    %1269 = memref.load %arg3[%c69_395] : memref<111xf32, #tpu.memory_space<smem>>
    %c105_396 = arith.constant 105 : index
    %1270 = memref.load %arg3[%c105_396] : memref<111xf32, #tpu.memory_space<smem>>
    %1271 = vector.broadcast %1268 : f32 to vector<16x16xf32>
    %1272 = arith.mulf %1271, %1267 : vector<16x16xf32>
    %1273 = arith.addf %1259, %1272 : vector<16x16xf32>
    %1274 = vector.broadcast %1269 : f32 to vector<16x16xf32>
    %1275 = arith.mulf %1274, %1267 : vector<16x16xf32>
    %1276 = arith.addf %1262, %1275 : vector<16x16xf32>
    %1277 = vector.broadcast %1270 : f32 to vector<16x16xf32>
    %1278 = arith.mulf %1277, %1267 : vector<16x16xf32>
    %1279 = arith.addf %1265, %1278 : vector<16x16xf32>
    %c3_397 = arith.constant 3 : index
    %c9_398 = arith.constant 9 : index
    %c1_399 = arith.constant 1 : index
    %1280 = vector.load %arg8[%c3_397, %c9_398, %c1_399] : memref<4x32x128xf32, #tpu.memory_space<vmem>>, vector<1x16x16xf32>
    %1281 = vector.shape_cast %1280 : vector<1x16x16xf32> to vector<16x16xf32>
    %c34_400 = arith.constant 34 : index
    %1282 = memref.load %arg3[%c34_400] : memref<111xf32, #tpu.memory_space<smem>>
    %c70_401 = arith.constant 70 : index
    %1283 = memref.load %arg3[%c70_401] : memref<111xf32, #tpu.memory_space<smem>>
    %c106_402 = arith.constant 106 : index
    %1284 = memref.load %arg3[%c106_402] : memref<111xf32, #tpu.memory_space<smem>>
    %1285 = vector.broadcast %1282 : f32 to vector<16x16xf32>
    %1286 = arith.mulf %1285, %1281 : vector<16x16xf32>
    %1287 = arith.addf %1273, %1286 : vector<16x16xf32>
    %1288 = vector.broadcast %1283 : f32 to vector<16x16xf32>
    %1289 = arith.mulf %1288, %1281 : vector<16x16xf32>
    %1290 = arith.addf %1276, %1289 : vector<16x16xf32>
    %1291 = vector.broadcast %1284 : f32 to vector<16x16xf32>
    %1292 = arith.mulf %1291, %1281 : vector<16x16xf32>
    %1293 = arith.addf %1279, %1292 : vector<16x16xf32>
    %c3_403 = arith.constant 3 : index
    %c9_404 = arith.constant 9 : index
    %c2_405 = arith.constant 2 : index
    %1294 = vector.load %arg8[%c3_403, %c9_404, %c2_405] : memref<4x32x128xf32, #tpu.memory_space<vmem>>, vector<1x16x16xf32>
    %1295 = vector.shape_cast %1294 : vector<1x16x16xf32> to vector<16x16xf32>
    %c35_406 = arith.constant 35 : index
    %1296 = memref.load %arg3[%c35_406] : memref<111xf32, #tpu.memory_space<smem>>
    %c71_407 = arith.constant 71 : index
    %1297 = memref.load %arg3[%c71_407] : memref<111xf32, #tpu.memory_space<smem>>
    %c107_408 = arith.constant 107 : index
    %1298 = memref.load %arg3[%c107_408] : memref<111xf32, #tpu.memory_space<smem>>
    %1299 = vector.broadcast %1296 : f32 to vector<16x16xf32>
    %1300 = arith.mulf %1299, %1295 : vector<16x16xf32>
    %1301 = arith.addf %1287, %1300 : vector<16x16xf32>
    %1302 = vector.broadcast %1297 : f32 to vector<16x16xf32>
    %1303 = arith.mulf %1302, %1295 : vector<16x16xf32>
    %1304 = arith.addf %1290, %1303 : vector<16x16xf32>
    %1305 = vector.broadcast %1298 : f32 to vector<16x16xf32>
    %1306 = arith.mulf %1305, %1295 : vector<16x16xf32>
    %1307 = arith.addf %1293, %1306 : vector<16x16xf32>
    %c108_409 = arith.constant 108 : index
    %1308 = memref.load %arg3[%c108_409] : memref<111xf32, #tpu.memory_space<smem>>
    %1309 = vector.broadcast %1308 : f32 to vector<16x16xf32>
    %1310 = arith.addf %1301, %1309 : vector<16x16xf32>
    %c0_410 = arith.constant 0 : index
    %c0_411 = arith.constant 0 : index
    %c0_412 = arith.constant 0 : index
    %c0_413 = arith.constant 0 : index
    %1311 = vector.load %arg6[%c0_410, %c0_411, %c0_412, %c0_413] : memref<1x3x16x16xf32, #tpu.memory_space<vmem>>, vector<1x1x16x16xf32>
    %1312 = vector.shape_cast %1311 : vector<1x1x16x16xf32> to vector<16x16xf32>
    %1313 = vector.shape_cast %1310 : vector<16x16xf32> to vector<1x1x16x16xf32>
    tpu.vector_store %arg6[%c0_410, %c0_411, %c0_412, %c0_413], %1313 {strides = array<i32>} : memref<1x3x16x16xf32, #tpu.memory_space<vmem>>, vector<1x1x16x16xf32>,
    %c109_414 = arith.constant 109 : index
    %1314 = memref.load %arg3[%c109_414] : memref<111xf32, #tpu.memory_space<smem>>
    %1315 = vector.broadcast %1314 : f32 to vector<16x16xf32>
    %1316 = arith.addf %1304, %1315 : vector<16x16xf32>
    %c0_415 = arith.constant 0 : index
    %c1_416 = arith.constant 1 : index
    %c0_417 = arith.constant 0 : index
    %c0_418 = arith.constant 0 : index
    %1317 = vector.load %arg6[%c0_415, %c1_416, %c0_417, %c0_418] : memref<1x3x16x16xf32, #tpu.memory_space<vmem>>, vector<1x1x16x16xf32>
    %1318 = vector.shape_cast %1317 : vector<1x1x16x16xf32> to vector<16x16xf32>
    %1319 = vector.shape_cast %1316 : vector<16x16xf32> to vector<1x1x16x16xf32>
    tpu.vector_store %arg6[%c0_415, %c1_416, %c0_417, %c0_418], %1319 {strides = array<i32>} : memref<1x3x16x16xf32, #tpu.memory_space<vmem>>, vector<1x1x16x16xf32>,
    %c110_419 = arith.constant 110 : index
    %1320 = memref.load %arg3[%c110_419] : memref<111xf32, #tpu.memory_space<smem>>
    %1321 = vector.broadcast %1320 : f32 to vector<16x16xf32>
    %1322 = arith.addf %1307, %1321 : vector<16x16xf32>
    %c0_420 = arith.constant 0 : index
    %c2_421 = arith.constant 2 : index
    %c0_422 = arith.constant 0 : index
    %c0_423 = arith.constant 0 : index
    %1323 = vector.load %arg6[%c0_420, %c2_421, %c0_422, %c0_423] : memref<1x3x16x16xf32, #tpu.memory_space<vmem>>, vector<1x1x16x16xf32>
    %1324 = vector.shape_cast %1323 : vector<1x1x16x16xf32> to vector<16x16xf32>
    %1325 = vector.shape_cast %1322 : vector<16x16xf32> to vector<1x1x16x16xf32>
    tpu.vector_store %arg6[%c0_420, %c2_421, %c0_422, %c0_423], %1325 {strides = array<i32>} : memref<1x3x16x16xf32, #tpu.memory_space<vmem>>, vector<1x1x16x16xf32>,
    return
  }
  func.func @transform_0(%arg0: i32) -> i32 {
    %c0_i32 = arith.constant 0 : i32
    %c0_i32_0 = arith.constant 0 : i32
    return %c0_i32 : i32
  }
  func.func @transform_1(%arg0: i32) -> i32 {
    %c0_i32 = arith.constant 0 : i32
    %c0_i32_0 = arith.constant 0 : i32
    return %c0_i32 : i32
  }
  func.func @transform_2(%arg0: i32) -> i32 {
    %c0_i32 = arith.constant 0 : i32
    %c0_i32_0 = arith.constant 0 : i32
    return %c0_i32 : i32
  }
  func.func @transform_3(%arg0: i32) -> (i32, i32, i32, i32) {
    %c0_i32 = arith.constant 0 : i32
    %c0_i32_0 = arith.constant 0 : i32
    %c0_i32_1 = arith.constant 0 : i32
    %c0_i32_2 = arith.constant 0 : i32
    return %arg0, %c0_i32, %c0_i32_0, %c0_i32_1 : i32, i32, i32, i32
  }
  func.func @transform_4(%arg0: i32) -> (i32, i32, i32, i32) {
    %c0_i32 = arith.constant 0 : i32
    %c0_i32_0 = arith.constant 0 : i32
    %c0_i32_1 = arith.constant 0 : i32
    %c0_i32_2 = arith.constant 0 : i32
    return %arg0, %c0_i32, %c0_i32_0, %c0_i32_1 : i32, i32, i32, i32
  }
  func.func @transform_5(%arg0: i32) -> (i32, i32, i32, i32) {
    %c0_i32 = arith.constant 0 : i32
    %c0_i32_0 = arith.constant 0 : i32
    %c0_i32_1 = arith.constant 0 : i32
    %c0_i32_2 = arith.constant 0 : i32
    return %arg0, %c0_i32, %c0_i32_0, %c0_i32_1 : i32, i32, i32, i32
  }
}

</mosaic_0001>

<bundles_post_ra>
// kernel: dae_forward.1
= control target key start
LH: loop header
LB: loop body
LE: loop exit
PB: predicated region body
PF: predicated region fallthrough
CT: control target
= control target key end

     0   :  { %10 = vsyncpa [#allocation6], 0  ;;  %s6144_s0 = inlined_call_operand.vmem [shape: f32[17], index: 0, kind: input, shape index: {}]   ;;  %s6145_s1 = inlined_call_operand.vmem [shape: f32[148], index: 1, kind: input, shape index: {}]   ;;  %s6146_s2 = inlined_call_operand.vmem [shape: f32[111], index: 2, kind: input, shape index: {}]   ;;  %s6147_s3 = inlined_call_operand.vmem [shape: f32[2,4,16,16], index: 3, kind: input, shape index: {}]   ;;  %s6148_s4 = inlined_call_operand.vmem [shape: f32[2,1,16,16], index: 4, kind: input, shape index: {}]   ;;  %s6149_s5 = inlined_call_operand.hbm [shape: f32[2,3,16,16], index: 5, kind: output, shape index: {}]  }
   0x1   :  { %11 = vsyncpa [#allocation8], 0 }
   0x2   :  { %12 = vsyncpa [#allocation5], 0 }
   0x3   :  { %14 = vsyncpa [#allocation5 + $0x1], 0  ;;  %s4155_s18 = smov 0   ;;  %s4157_s19 = smov 0  }
   0x4   :  { %s4159_s20 = smov 0   ;;  %s4161_s21 = smov 0  }
   0x5 LB: > { %s4176_s22 = sadd.s32 4294967295, %s4113_s21   ;;  %s3610_s23 = sadd.s32 4294967294, %s4113_s21   ;;  %s4113_s21 = sphi %s4161_s21, %s6167_s21   ;;  %s4109_s20 = sphi %s4159_s20, %s6166_s20   ;;  %s4105_s19 = sphi %s4157_s19, %s6165_s19   ;;  %s4101_s18 = sphi %s4155_s18, %s6164_s18  }
   0x6   : > { %s4180_s24 = sadd.s32 1, %s4113_s21   ;;  %s142_s25 = sadd.s32 1, %s4109_s20 }
   0x7   : > { %s139_s26 = ssub.s32 %s4113_s21, %s4180_s24  ;;  %p152_p0 = scmp.ne.s32.totalorder %s4109_s20, %s4105_s19 }
   0x8   : > { %p140_p1 = scmp.eq.s32.totalorder %s139_s26, 0  ;;  %p153_p2 = scmp.eq.s32.totalorder %s4176_s22, 1 }
   0x9   : > { %p158_p3 = scmp.ne.s32.totalorder %s4105_s19, %s4101_s18  ;;  %p159_p4 = scmp.eq.s32.totalorder %s3610_s23, 1 }
   0xa   : > { %s4191_s27 = scalar_select %p140_p1, %s4109_s20, %s142_s25  }
   0xb   : > { %p4193_p5 = por %p153_p2, %p152_p0  ;;  %p4197_p6 = por %p159_p4, %p158_p3 }
   0xc   : > { %p3611_p7 = scmp.ge.s32.totalorder %s4113_s21, 1  ;;  %p166_p8 = scmp.lt.s32.totalorder %s4113_s21, 3 }
   0xd   : > { %s6153_s28 = scalar_select %p4193_p5, 1, 0 }
   0xe   : > { %s6154_s29 = scalar_select %p4197_p6, 1, 0 }
   0xf   : > { %p6150_p9 = scmp.eq.s32.totalorder %s4176_s22, 0  ;;  %p4204_p10 = pnand %p3611_p7, %p166_p8 }
  0x10   : > { %s190_s8 = sshll.u32 %s6145_s1, 4  ;;  %s179_s11 = sshll.u32 %s6144_s0, 4  ;;  %s191_s8 = int_to_ptr.vmem [resolvable:$true] %s190_s8  ;;  %s180_s11 = int_to_ptr.vmem [resolvable:$true] %s179_s11 }
  0x11   : > { %s6155_s30 = scalar_select %p4204_p10, 1, 0 }
  0x12   : > { %p3930_p11 = pneg %p4204_p10  ;;  %s201_s15 = sshll.u32 %s6146_s2, 4  ;;  %s4225_s15 = int_to_ptr.vmem [resolvable:$true] %s201_s15 }
  0x13   : > { %s4000_s16 = scalar_lea.vmem %s191_s8, 32  ;;  %p4008_p3 = scmp.lt.s32.totalorder %s191_s8, %s191_s8 }
  0x14   : > { %p4218_p12 = pnand %p6150_p9, %p3930_p11  ;;  %p4001_p13 = scmp.ne.s32.totalorder %s191_s8, %s4000_s16 }
  0x15   : > { %p4009_p4 = scmp.lt.s32.totalorder %s4000_s16, %s4000_s16 }
  0x16   : > { %p4002_p0 = pneg %p4218_p12 }
  0x17   : > { %p4010_p7 = por %p4009_p4, %p4008_p3 }
  0x18   : > { %p4003_p1 = pnand %p4002_p0, %p4001_p13 }
  0x1a   : > { %p4004_p2 = pneg %p4003_p1 }
  0x1c   : > { %p4011_p8 = pnand %p4010_p7, %p4004_p2 }
  0x1e   : > { %4014 = shalt.err (!%p4011_p8)
}
  0x1f   : > { %s4115_s17 = smov [#allocation7]   ;;  %s4015_s23 = scalar_lea.vmem %s180_s11, 16 }
  0x20   : > { %3936 = dma.vmem_to_smem (!%p4218_p12), %s191_s8, 32, %s4115_s17, [#allocation8]  }
  0x21   : > { %p4016_p11 = scmp.ne.s32.totalorder %s180_s11, %s4015_s23  ;;  %p4023_p5 = scmp.lt.s32.totalorder %s180_s11, %s180_s11 }
  0x22   : > { %p4024_p10 = scmp.lt.s32.totalorder %s4015_s23, %s4015_s23 }
  0x23   : > { %p4018_p9 = pnand %p4016_p11, %p4002_p0 }
  0x24   : > { %p4025_p13 = por %p4024_p10, %p4023_p5 }
  0x25   : > { %p4019_p6 = pneg %p4018_p9 }
  0x27   : > { %p4026_p1 = pnand %p4025_p13, %p4019_p6 }
  0x29   : > { %4029 = shalt.err (!%p4026_p1)
}
  0x2a   : > { %s4116_s25 = smov [#allocation4]   ;;  %s4030_s26 = scalar_lea.vmem %s4225_s15, 16 }
  0x2b   : > { %3933 = dma.vmem_to_smem (!%p4218_p12), %s180_s11, 16, %s4116_s25, [#allocation6]  }
  0x2c   : > { %p4031_p2 = scmp.ne.s32.totalorder %s4225_s15, %s4030_s26  ;;  %p4038_p9 = scmp.lt.s32.totalorder %s4225_s15, %s4225_s15 }
  0x2d   : > { %p4039_p7 = scmp.lt.s32.totalorder %s4030_s26, %s4030_s26 }
  0x2e   : > { %p4033_p3 = pnand %p4031_p2, %p4002_p0 }
  0x2f   : > { %p4040_p5 = por %p4039_p7, %p4038_p9 }
  0x30   : > { %p4034_p4 = pneg %p4033_p3 }
  0x32   : > { %p4041_p6 = pnand %p4040_p5, %p4034_p4 }
  0x34   : > { %4044 = shalt.err (!%p4041_p6)
}
  0x35   : > { %s4117_s6 = smov [#allocation9]   ;;  %p6157_p10 = scmp.ne.s32.totalorder %s6155_s30, 0 }
  0x36   : > { %3939 = dma.vmem_to_smem (!%p4218_p12), %s4225_s15, 16, %s4117_s6, [#allocation8]  }
  0x37   : > { %230 = sbr.rel (%p6157_p10) target bundleno = 1276 (0x4fc), region = 40  ;;  %p6158_p8 = scmp.eq.s32.totalorder (!%p6157_p10), %s4176_s22, 0 }
  0x3c   : > { %4088 = dma.done.wait (%p6158_p8), [#allocation6], 16   ;;  %p6159_p0 = pmov %p6158_p8 }
  0x3e   : > { %4090 = vsyncadd (%p6159_p0), [#allocation6], 4294967280  ;;  %p6160_p11 = pmov %p6159_p0 }
  0x3f   : > { %p6161_p13 = pmov %p6159_p0 }
  0x40   : > { %4092 = dma.done.wait (%p6160_p11), [#allocation8], 48  }
  0x41   : > { %4094 = vsyncadd (%p6161_p13), [#allocation8], 4294967248 }
  0x42   : > { %244 = sfence }
  0x43   : > { %p272_p1 = scmp.lt.s32.totalorder %s4176_s22, 1  ;;  %v4118_v0 = vmov 0.0   ;;  %s4269_s15 = sld [smem:[#allocation4]]  ;;  %vm399_vm0 = vcmask 138248   ;;  %vm3474_vm1 = vcmask 130048  }
  0x44   : > { %282 = vst [vmem:[#allocation2] sm:$0xff] %v4118_v0  ;;  %283 = vst [vmem:[#allocation2 + $0x8] sm:$0xff] %v4118_v0  ;;  %s4271_s16 = sld [smem:[#allocation4 + $0x1]]  ;;  %p6162_p2 = scmp.ne.s32.totalorder %s6153_s28, 0 }
  0x45   : > { %284 = vst [vmem:[#allocation2 + $0x10] sm:$0xff] %v4118_v0  ;;  %285 = vst [vmem:[#allocation2 + $0x18] sm:$0xff] %v4118_v0  ;;  %s273_s30 = scalar_select %p272_p1, %s4176_s22, 1 }
  0x46   : > { %286 = vst [vmem:[#allocation2 + $0x20] sm:$0xff] %v4118_v0  ;;  %287 = vst [vmem:[#allocation2 + $0x28] sm:$0xff] %v4118_v0  ;;  %s4273_s17 = sld [smem:[#allocation4 + $0x5]] }
  0x47   : > { %288 = vst [vmem:[#allocation2 + $0x30] sm:$0xff] %v4118_v0  ;;  %289 = vst [vmem:[#allocation2 + $0x38] sm:$0xff] %v4118_v0  ;;  %s3913_s7 = sshll.u32 %s273_s30, 4  ;;  %s3912_s11 = sshll.u32 %s273_s30, 6 }
  0x48   : > { %290 = vst [vmem:[#allocation2 + $0x40] sm:$0xff] %v4118_v0  ;;  %291 = vst [vmem:[#allocation2 + $0x48] sm:$0xff] %v4118_v0  ;;  %s281_s10 = scalar_lea.vmem %s6148_s4, %s3913_s7  ;;  %s276_s14 = scalar_lea.vmem %s6147_s3, %s3912_s11 }
  0x49   : > { %292 = vst [vmem:[#allocation2 + $0x50] sm:$0xff] %v4118_v0  ;;  %293 = vst [vmem:[#allocation2 + $0x58] sm:$0xff] %v4118_v0  ;;  %v331_v1 = vld [vmem:[%s281_s10] sm:$0xff]  ;;  %v332_v2 = vld [vmem:[%s281_s10 + $0x8] sm:$0xff]  ;;  %s4275_s23 = sld [smem:[#allocation4 + $0x9]]  ;;  %v364_v25 = vstv %s4269_s15 }
  0x4a   : > { %294 = vst [vmem:[#allocation2 + $0x60] sm:$0xff] %v4118_v0  ;;  %295 = vst [vmem:[#allocation2 + $0x68] sm:$0xff] %v4118_v0  ;;  %v3640_v3 = vmul.f32 -1.442695, %v331_v1  ;;  %v3641_v4 = vmul.f32 -1.442695, %v332_v2  ;;  %v373_v28 = vstv %s4271_s16 }
  0x4b   : > { %296 = vst [vmem:[#allocation2 + $0x70] sm:$0xff] %v4118_v0  ;;  %297 = vst [vmem:[#allocation2 + $0x78] sm:$0xff] %v4118_v0  ;;  %v345_v5 = vld [vmem:[%s276_s14] sm:$0xff]  ;;  %v3642_v6 = vld [vmem:[%s276_s14 + $0x10] sm:$0xff]  ;;  %s4277_s25 = sld [smem:[#allocation4 + $0xd]]  ;;  %s4119_s16 = smov 1  }
  0x4c   : > { %298 = vst [vmem:[#allocation3] sm:$0xff] %v4118_v0  ;;  %299 = vst [vmem:[#allocation3 + $0x8] sm:$0xff] %v4118_v0  ;;  %3992 = vpow2.f32 %v3640_v3  ;;  %v346_v7 = vld [vmem:[%s276_s14 + $0x8] sm:$0xff]  ;;  %v3643_v8 = vld [vmem:[%s276_s14 + $0x18] sm:$0xff]  ;;  %v356_v9 = vadd.f32 %v3642_v6, %v345_v5  ;;  %s4279_s26 = sld [smem:[#allocation4 + $0x2]]  ;;  %v376_v29 = vstv %s4273_s17 }
  0x4d   : > { %300 = vst [vmem:[#allocation3 + $0x10] sm:$0xff] %v4118_v0  ;;  %301 = vst [vmem:[#allocation3 + $0x18] sm:$0xff] %v4118_v0  ;;  %3994 = vpow2.f32 %v3641_v4  ;;  %v3644_v10 = vld [vmem:[%s276_s14 + $0x20] sm:$0xff]  ;;  %v357_v11 = vadd.f32 %v3643_v8, %v346_v7  ;;  %v3645_v12 = vld [vmem:[%s276_s14 + $0x28] sm:$0xff]  ;;  %s4281_s6 = sld [smem:[#allocation4 + $0x6]] }
  0x4e   : > { %302 = vst [vmem:[#allocation3 + $0x20] sm:$0xff] %v4118_v0  ;;  %303 = vst [vmem:[#allocation3 + $0x28] sm:$0xff] %v4118_v0  ;;  %v358_v13 = vadd.f32 %v3644_v10, %v356_v9  ;;  %v3646_v14 = vld [vmem:[%s276_s14 + $0x30] sm:$0xff]  ;;  %v3647_v16 = vld [vmem:[%s276_s14 + $0x38] sm:$0xff]  ;;  %s4283_s30 = sld [smem:[#allocation4 + $0xa]] }
  0x4f   : > { %304 = vst [vmem:[#allocation3 + $0x30] sm:$0xff] %v4118_v0  ;;  %305 = vst [vmem:[#allocation3 + $0x38] sm:$0xff] %v4118_v0  ;;  %v359_v15 = vadd.f32 %v3645_v12, %v357_v11  ;;  %s4285_s7 = sld [smem:[#allocation4 + $0xe]]  ;;  %v381_v30 = vstv %s4275_s23 }
  0x50   : > { %306 = vst [vmem:[#allocation3 + $0x40] sm:$0xff] %v4118_v0  ;;  %307 = vst [vmem:[#allocation3 + $0x48] sm:$0xff] %v4118_v0  ;;  %v360_v20 = vadd.f32 %v3646_v14, %v358_v13  ;;  %s4287_s8 = sld [smem:[#allocation4 + $0x3]] }
  0x51   : > { %308 = vst [vmem:[#allocation3 + $0x50] sm:$0xff] %v4118_v0  ;;  %309 = vst [vmem:[#allocation3 + $0x58] sm:$0xff] %v4118_v0  ;;  %v361_v22 = vadd.f32 %v3647_v16, %v359_v15  ;;  %s4289_s9 = sld [smem:[#allocation4 + $0xb]]  ;;  %v384_v31 = vstv %s4277_s25 }
  0x52   : > { %310 = vst [vmem:[#allocation3 + $0x60] sm:$0xff] %v4118_v0  ;;  %311 = vst [vmem:[#allocation3 + $0x68] sm:$0xff] %v4118_v0  ;;  %v362_v23 = vmul.f32 0.25, %v360_v20  ;;  %s4292_s10 = sld [smem:[#allocation4 + $0x7]]  ;;  %v408_v32 = vstv %s4279_s26 }
  0x53   : > { %312 = vst [vmem:[#allocation3 + $0x70] sm:$0xff] %v4118_v0  ;;  %313 = vst [vmem:[#allocation3 + $0x78] sm:$0xff] %v4118_v0  ;;  %v363_v24 = vmul.f32 0.25, %v361_v22  ;;  %s4294_s11 = sld [smem:[#allocation4 + $0xf]]  ;;  %v411_v33 = vstv %s4281_s6  ;;  %s4120_s6 = smov 127  }
  0x54   : > { %s4296_s12 = sld [smem:[#allocation4 + $0x4]]  ;;  %v365_v26 = vmul.f32 %v364_v25, %v362_v23  ;;  %v416_v36 = vstv %s4283_s30 }
  0x55   : > { %s4298_s13 = sld [smem:[#allocation4 + $0xc]]  ;;  %v366_v27 = vmul.f32 %v364_v25, %v363_v24  ;;  %v419_v42 = vstv %s4285_s7 }
  0x56   : > { %s4300_s14 = sld [smem:[#allocation4 + $0x8]]  ;;  %v367_v34 = vadd.f32 %v365_v26, %v345_v5  ;;  %v402_v35 = vadd.f32 %v3642_v6, %v365_v26  ;;  %v437_v37 = vadd.f32 %v3644_v10, %v365_v26  ;;  %v4309_v41 = vadd.f32 %v3646_v14, %v365_v26 }
  0x57   : > { %v368_v38 = vadd.f32 %v366_v27, %v346_v7  ;;  %v403_v39 = vadd.f32 %v3643_v8, %v366_v27  ;;  %v438_v40 = vadd.f32 %v3645_v12, %v366_v27  ;;  %v443_v43 = vstv %s4287_s8  ;;  %s4322_s15 = sld [smem:[#allocation4 + $0x10]] }
  0x58   : > { %v446_v44 = vstv %s4292_s10  ;;  %v451_v45 = vstv %s4289_s9  ;;  %v4318_v50 = vadd.f32 %v3647_v16, %v366_v27  ;;  %s3651_s17 = sld [smem:[#allocation7 + $0x1]]  ;;  %s4121_s10 = smov 126  }
  0x59   : > { %v3993_v17 = vpop.eup %3992  ;;  %v454_v47 = vstv %s4294_s11  ;;  %s3652_s23 = sld [smem:[#allocation7 + $0x25]] }
  0x5a   : > { %v3995_v18 = vpop.eup %3994  ;;  %v339_v19 = vadd.f32 1.0, %v3993_v17  ;;  %v478_v48 = vstv %s4296_s12  ;;  %s3653_s25 = sld [smem:[#allocation7 + $0x49]] }
  0x5b   : > { %v340_v21 = vadd.f32 1.0, %v3995_v18  ;;  %v486_v49 = vstv %s4298_s13  ;;  %s3654_s26 = sld [smem:[#allocation7 + $0x6d]] }
  0x5c   : > { %3996 = vrcp.f32 %v339_v19  ;;  %v481_v55 = vstv %s4300_s14  ;;  %s3655_s30 = sld [smem:[#allocation7 + $0x2]] }
  0x5d   : > { %3998 = vrcp.f32 %v340_v21  ;;  %s3656_s7 = sld [smem:[#allocation7 + $0x26]] }
  0x5e   : > { %s3657_s8 = sld [smem:[#allocation7 + $0x4a]] }
  0x5f   : > { %s3658_s9 = sld [smem:[#allocation7 + $0x6e]] }
  0x60   : > { %s3663_s11 = sld [smem:[#allocation7 + $0x4]] }
  0x61   : > { %s3664_s12 = sld [smem:[#allocation7 + $0x28]] }
  0x62   : > { %s3665_s13 = sld [smem:[#allocation7 + $0x4c]] }
  0x63   : > { %s3666_s14 = sld [smem:[#allocation7 + $0x70]] }
  0x69   : > { %v3997_v46 = vpop.eup %3996 }
  0x6a   : > { %v3999_v51 = vpop.eup %3998  ;;  %v369_v52 = vmul.f32 %v3997_v46, %v367_v34  ;;  %v404_v53 = vmul.f32 %v3997_v46, %v402_v35  ;;  %v439_v54 = vmul.f32 %v3997_v46, %v437_v37  ;;  %v474_v59 = vmul.f32 %v3997_v46, %v4309_v41 }
  0x6b   : > { %v370_v56 = vmul.f32 %v3999_v51, %v368_v38  ;;  %v405_v57 = vmul.f32 %v3999_v51, %v403_v39  ;;  %v440_v58 = vmul.f32 %v3999_v51, %v438_v40 }
  0x6c   : > { %v371_v60 = vsub.f32 %v367_v34, %v369_v52  ;;  %v374_v61 = vmul.f32 %v373_v28, %v369_v52  ;;  %v406_v62 = vsub.f32 %v402_v35, %v404_v53  ;;  %v409_v63 = vmul.f32 %v408_v32, %v404_v53 }
  0x6d   : > { %v372_v0 = vsub.f32 %v368_v38, %v370_v56  ;;  %v375_v1 = vmul.f32 %v373_v28, %v370_v56  ;;  %v407_v2 = vsub.f32 %v403_v39, %v405_v57  ;;  %v410_v3 = vmul.f32 %v408_v32, %v405_v57 }
  0x6e   : > { %v377_v4 = vadd.f32 %v376_v29, %v374_v61  ;;  %v382_v5 = vmul.f32 %v381_v30, %v371_v60  ;;  %v412_v6 = vadd.f32 %v411_v33, %v409_v63  ;;  %v417_v7 = vmul.f32 %v416_v36, %v406_v62 }
  0x6f   : > { %v378_v8 = vadd.f32 %v376_v29, %v375_v1  ;;  %v383_v9 = vmul.f32 %v381_v30, %v372_v0  ;;  %v413_v10 = vadd.f32 %v411_v33, %v410_v3  ;;  %v418_v11 = vmul.f32 %v416_v36, %v407_v2 }
  0x70   : > { %v379_v12 = vmax.f32 %v377_v4, 0.0  ;;  %v385_v13 = vadd.f32 %v384_v31, %v382_v5  ;;  %v414_v14 = vmax.f32 %v412_v6, 0.0  ;;  %v420_v15 = vadd.f32 %v419_v42, %v417_v7 }
  0x71   : > { %v386_v16 = vadd.f32 %v384_v31, %v383_v9  ;;  %v380_v17 = vmax.f32 %v378_v8, 0.0  ;;  %v421_v18 = vadd.f32 %v419_v42, %v418_v11  ;;  %v415_v19 = vmax.f32 %v413_v10, 0.0 }
  0x72   : > { %v387_v20 = vmax.f32 %v385_v13, 0.0  ;;  %v422_v21 = vmax.f32 %v420_v15, 0.0  ;;  %v441_v22 = vsub.f32 %v437_v37, %v439_v54  ;;  %v444_v23 = vmul.f32 %v443_v43, %v439_v54 }
  0x73   : > { %v388_v24 = vmax.f32 %v386_v16, 0.0  ;;  %v423_v25 = vmax.f32 %v421_v18, 0.0  ;;  %v442_v26 = vsub.f32 %v438_v40, %v440_v58  ;;  %v445_v27 = vmul.f32 %v443_v43, %v440_v58 }
  0x74   : > { %v389_v28 = vsub.f32 %v379_v12, %v387_v20  ;;  %v424_v29 = vsub.f32 %v414_v14, %v422_v21  ;;  %v447_v30 = vadd.f32 %v446_v44, %v444_v23  ;;  %v452_v32 = vmul.f32 %v451_v45, %v441_v22 }
  0x75   : > { %v390_v33 = vsub.f32 %v380_v17, %v388_v24  ;;  %v425_v31 = vsub.f32 %v415_v19, %v423_v25  ;;  %v448_v34 = vadd.f32 %v446_v44, %v445_v27  ;;  %v453_v35 = vmul.f32 %v451_v45, %v442_v26 }
  0x76   : > { %393 = vrot.lane.b32.xlu0 %v389_v28, %s4119_s16  ;;  %428 = vrot.lane.b32.xlu1 %v424_v29, %s4119_s16  ;;  %v449_v36 = vmax.f32 %v447_v30, 0.0  ;;  %v455_v37 = vadd.f32 %v454_v47, %v452_v32  ;;  %v476_v38 = vsub.f32 %v4309_v41, %v474_v59  ;;  %v479_v39 = vmul.f32 %v478_v48, %v474_v59 }
  0x77   : > { %v450_v40 = vmax.f32 %v448_v34, 0.0  ;;  %v456_v42 = vadd.f32 %v454_v47, %v453_v35  ;;  %v489_v43 = vstv %s4322_s15  ;;  %v475_v44 = vmul.f32 %v3999_v51, %v4318_v50  ;;  %s3667_s15 = sld [smem:[#allocation7 + $0x5]] }
  0x78   : > { %v457_v45 = vmax.f32 %v455_v37, 0.0  ;;  %v482_v46 = vadd.f32 %v481_v55, %v479_v39  ;;  %v487_v52 = vmul.f32 %v486_v49, %v476_v38  ;;  %v537_v2 = vstv %s3651_s17  ;;  %s3668_s17 = sld [smem:[#allocation7 + $0x29]] }
  0x79   : > { %v458_v53 = vmax.f32 %v456_v42, 0.0  ;;  %v477_v54 = vsub.f32 %v4318_v50, %v475_v44  ;;  %v480_v56 = vmul.f32 %v478_v48, %v475_v44  ;;  %v550_v7 = vstv %s3652_s23  ;;  %s3669_s23 = sld [smem:[#allocation7 + $0x4d]] }
  0x7a   : > { %395 = vrot.lane.b32.xlu0 %v390_v33, %s4119_s16  ;;  %430 = vrot.lane.b32.xlu1 %v425_v31, %s4119_s16  ;;  %v459_v41 = vsub.f32 %v449_v36, %v457_v45  ;;  %v484_v47 = vmax.f32 %v482_v46, 0.0  ;;  %v490_v57 = vadd.f32 %v489_v43, %v487_v52  ;;  %v563_v13 = vstv %s3653_s25  ;;  %s3670_s25 = sld [smem:[#allocation7 + $0x71]] }
  0x7b   : > { %v460_v58 = vsub.f32 %v450_v40, %v458_v53  ;;  %v483_v51 = vadd.f32 %v481_v55, %v480_v56  ;;  %v488_v59 = vmul.f32 %v486_v49, %v477_v54  ;;  %v576_v16 = vstv %s3654_s26  ;;  %s3675_s26 = sld [smem:[#allocation7 + $0x7]] }
  0x7c   : > { %v492_v60 = vmax.f32 %v490_v57, 0.0  ;;  %v593_v19 = vstv %s3655_s30  ;;  %v606_v22 = vstv %s3656_s7  ;;  %v619_v25 = vstv %s3657_s8  ;;  %s3676_s30 = sld [smem:[#allocation7 + $0x2b]] }
  0x7d   : > { %v485_v61 = vmax.f32 %v483_v51, 0.0  ;;  %v491_v62 = vadd.f32 %v489_v43, %v488_v59  ;;  %v632_v28 = vstv %s3658_s9  ;;  %v675_v33 = vstv %s3663_s11  ;;  %s3677_s7 = sld [smem:[#allocation7 + $0x4f]] }
  0x7e   : > { %463 = vrot.lane.b32.xlu0 %v459_v41, %s4119_s16  ;;  %465 = vrot.lane.b32.xlu1 %v460_v58, %s4119_s16  ;;  %v494_v48 = vsub.f32 %v484_v47, %v492_v60  ;;  %v688_v36 = vstv %s3664_s12  ;;  %v701_v39 = vstv %s3665_s13  ;;  %s3678_s8 = sld [smem:[#allocation7 + $0x73]] }
  0x7f   : > { %v493_v50 = vmax.f32 %v491_v62, 0.0  ;;  %v714_v43 = vstv %s3666_s14  ;;  %v731_v46 = vstv %s3667_s15  ;;  %v744_v54 = vstv %s3668_s17  ;;  %s3679_s9 = sld [smem:[#allocation7 + $0x8]] }
  0x80   : > { %v757_v47 = vstv %s3669_s23  ;;  %v770_v51 = vstv %s3670_s25  ;;  %s3680_s11 = sld [smem:[#allocation7 + $0x2c]] }
  0x81   : > { %v495_v63 = vsub.f32 %v485_v61, %v493_v50  ;;  %v813_v62 = vstv %s3675_s26  ;;  %s3681_s12 = sld [smem:[#allocation7 + $0x50]] }
  0x82   : > { %498 = vrot.lane.b32.xlu0 %v494_v48, %s4119_s16  ;;  %s3682_s13 = sld [smem:[#allocation7 + $0x74]] }
  0x83   : > { %500 = vrot.lane.b32.xlu1 %v495_v63, %s4119_s16  ;;  %s3687_s14 = sld [smem:[#allocation7 + $0xa]] }
  0x84   : > { %s3688_s15 = sld [smem:[#allocation7 + $0x2e]] }
  0x85   : > { %s3689_s17 = sld [smem:[#allocation7 + $0x52]] }
  0x86   : > { %s3690_s23 = sld [smem:[#allocation7 + $0x76]] }
  0x87   : > { %s3691_s25 = sld [smem:[#allocation7 + $0xb]] }
  0x88   : > { %s3692_s26 = sld [smem:[#allocation7 + $0x2f]] }
  0xe8   : > { %v394_v0 = vpop.permute.xlu0 %393  ;;  %v429_v55 = vpop.permute.xlu1 %428 }
  0xe9   : > { %400 = vst.msk [vmem:[#allocation2 + $0x8] sm:$0xff] %vm399_vm0, %v394_v0  ;;  %435 = vst.msk [vmem:[#allocation2 + $0x28] sm:$0xff] %vm399_vm0, %v429_v55  ;;  %v826_v0 = vstv %s3676_s30  ;;  %s4480_s30 = sld [smem:[#allocation7 + $0x53]] }
  0xec   : > { %v396_v49 = vpop.permute.xlu0 %395  ;;  %v431_v1 = vpop.permute.xlu1 %430 }
  0xed   : > { %401 = vst.msk [vmem:[#allocation2 + $0x10] sm:$0xff] %vm399_vm0, %v396_v49  ;;  %436 = vst.msk [vmem:[#allocation2 + $0x30] sm:$0xff] %vm399_vm0, %v431_v1  ;;  %v839_v1 = vstv %s3677_s7  ;;  %s4486_s7 = sld [smem:[#allocation7 + $0x77]] }
  0xf0   : > { %v4352_v3 = vld [vmem:[#allocation2 + $0x7] sm:$0xff]  ;;  %v464_v4 = vpop.permute.xlu0 %463  ;;  %v466_v5 = vpop.permute.xlu1 %465 }
  0xf1   : > { %v538_v6 = vmul.f32 %v537_v2, %v4352_v3  ;;  %470 = vst.msk [vmem:[#allocation2 + $0x48] sm:$0xff] %vm399_vm0, %v464_v4  ;;  %471 = vst.msk [vmem:[#allocation2 + $0x50] sm:$0xff] %vm399_vm0, %v466_v5  ;;  %v551_v10 = vmul.f32 %v550_v7, %v4352_v3  ;;  %v564_v14 = vmul.f32 %v563_v13, %v4352_v3  ;;  %v4388_v32 = vld [vmem:[#allocation2 + $0x8] sm:$0xff]  ;;  %v852_v5 = vstv %s3678_s8  ;;  %s4493_s8 = sld [smem:[#allocation7 + $0xd]] }
  0xf2   : > { %v577_v17 = vmul.f32 %v576_v16, %v4352_v3  ;;  %v594_v20 = vmul.f32 %v593_v19, %v4352_v3  ;;  %v607_v23 = vmul.f32 %v606_v22, %v4352_v3  ;;  %v620_v26 = vmul.f32 %v619_v25, %v4352_v3 }
  0xf3   : > { %542 = vrot.lane.b32.xlu0 %v538_v6, %s4120_s6  ;;  %v633_v29 = vmul.f32 %v632_v28, %v4352_v3  ;;  %v676_v31 = vmul.f32 %v675_v33, %v4388_v32  ;;  %v689_v37 = vmul.f32 %v688_v36, %v4388_v32  ;;  %v702_v40 = vmul.f32 %v701_v39, %v4388_v32 }
  0xf4   : > { %v4358_v8 = vld [vmem:[#allocation2 + $0xf] sm:$0xff]  ;;  %v499_v9 = vpop.permute.xlu0 %498  ;;  %v715_v44 = vmul.f32 %v714_v43, %v4388_v32  ;;  %v732_v52 = vmul.f32 %v731_v46, %v4388_v32  ;;  %v745_v56 = vmul.f32 %v744_v54, %v4388_v32  ;;  %v758_v57 = vmul.f32 %v757_v47, %v4388_v32 }
  0xf5   : > { %v539_v11 = vmul.f32 %v537_v2, %v4358_v8  ;;  %505 = vst.msk [vmem:[#allocation2 + $0x68] sm:$0xff] %vm399_vm0, %v499_v9  ;;  %v501_v12 = vpop.permute.xlu1 %500  ;;  %v552_v15 = vmul.f32 %v550_v7, %v4358_v8  ;;  %v565_v18 = vmul.f32 %v563_v13, %v4358_v8  ;;  %v578_v21 = vmul.f32 %v576_v16, %v4358_v8  ;;  %v4394_v35 = vld [vmem:[#allocation2 + $0x10] sm:$0xff] }
  0xf6   : > { %506 = vst.msk [vmem:[#allocation2 + $0x70] sm:$0xff] %vm399_vm0, %v501_v12  ;;  %v595_v24 = vmul.f32 %v593_v19, %v4358_v8  ;;  %v608_v27 = vmul.f32 %v606_v22, %v4358_v8  ;;  %v621_v30 = vmul.f32 %v619_v25, %v4358_v8  ;;  %v634_v34 = vmul.f32 %v632_v28, %v4358_v8  ;;  %v4424_v61 = vld [vmem:[#allocation2 + $0x9] sm:$0xff]  ;;  %v4430_v63 = vld [vmem:[#allocation2 + $0x11] sm:$0xff] }
  0xf7   : > { %555 = vrot.lane.b32.xlu0 %v551_v10, %s4120_s6  ;;  %544 = vrot.lane.b32.xlu1 %v539_v11, %s4120_s6  ;;  %v677_v38 = vmul.f32 %v675_v33, %v4394_v35  ;;  %v690_v42 = vmul.f32 %v688_v36, %v4394_v35  ;;  %v703_v45 = vmul.f32 %v701_v39, %v4394_v35  ;;  %v869_v9 = vstv %s3679_s9  ;;  %v4458_v19 = vld [vmem:[#allocation2 + $0x27] sm:$0xff]  ;;  %v4466_v25 = vld [vmem:[#allocation2 + $0x2f] sm:$0xff]  ;;  %s4495_s9 = sld [smem:[#allocation7]] }
  0xf8   : > { %v716_v53 = vmul.f32 %v714_v43, %v4394_v35  ;;  %v733_v41 = vmul.f32 %v731_v46, %v4394_v35  ;;  %v746_v58 = vmul.f32 %v744_v54, %v4394_v35  ;;  %v771_v59 = vmul.f32 %v770_v51, %v4388_v32 }
  0xf9   : > { %v759_v60 = vmul.f32 %v757_v47, %v4394_v35  ;;  %v814_v48 = vmul.f32 %v813_v62, %v4424_v61  ;;  %v772_v50 = vmul.f32 %v770_v51, %v4394_v35  ;;  %v827_v55 = vmul.f32 %v826_v0, %v4424_v61  ;;  %v4516_v51 = vld [vmem:[#allocation2 + $0x28] sm:$0xff] }
  0xfa   : > { %v815_v49 = vmul.f32 %v813_v62, %v4430_v63  ;;  %v840_v2 = vmul.f32 %v839_v1, %v4424_v61  ;;  %v828_v4 = vmul.f32 %v826_v0, %v4430_v63  ;;  %v853_v6 = vmul.f32 %v852_v5, %v4424_v61 }
  0xfb   : > { %568 = vrot.lane.b32.xlu0 %v564_v14, %s4120_s6  ;;  %557 = vrot.lane.b32.xlu1 %v552_v15, %s4120_s6  ;;  %v841_v7 = vmul.f32 %v839_v1, %v4430_v63  ;;  %v870_v10 = vmul.f32 %v869_v9, %v4424_v61  ;;  %v854_v11 = vmul.f32 %v852_v5, %v4430_v63  ;;  %v882_v12 = vstv %s3680_s11  ;;  %s4499_s11 = sld [smem:[#allocation7 + $0x24]] }
  0xfc   : > { %v883_v13 = vmul.f32 %v882_v12, %v4424_v61  ;;  %v871_v14 = vmul.f32 %v869_v9, %v4430_v63  ;;  %v895_v15 = vstv %s3681_s12  ;;  %s4504_s12 = sld [smem:[#allocation7 + $0x31]] }
  0xfd   : > { %v896_v16 = vmul.f32 %v895_v15, %v4424_v61  ;;  %v897_v22 = vmul.f32 %v895_v15, %v4430_v63 }
  0xff   : > { %581 = vrot.lane.b32.xlu0 %v577_v17, %s4120_s6  ;;  %570 = vrot.lane.b32.xlu1 %v565_v18, %s4120_s6  ;;  %v884_v17 = vmul.f32 %v882_v12, %v4430_v63  ;;  %v908_v18 = vstv %s3682_s13  ;;  %s4508_s13 = sld [smem:[#allocation7 + $0x3]] }
 0x102   : > { %v1102_v1 = vstv %s4504_s12  ;;  %s4615_s12 = sld [smem:[#allocation7 + $0x10]] }
 0x103   : > { %598 = vrot.lane.b32.xlu0 %v594_v20, %s4121_s10  ;;  %583 = vrot.lane.b32.xlu1 %v578_v21, %s4120_s6  ;;  %v951_v20 = vstv %s3687_s14  ;;  %v909_v21 = vmul.f32 %v908_v18, %v4424_v61  ;;  %s4510_s14 = sld [smem:[#allocation7 + $0x48]] }
 0x104   : > { %v953_v28 = vmul.f32 %v951_v20, %v4466_v25 }
 0x107   : > { %611 = vrot.lane.b32.xlu0 %v607_v23, %s4121_s10  ;;  %600 = vrot.lane.b32.xlu1 %v595_v24, %s4121_s10  ;;  %v952_v23 = vmul.f32 %v951_v20, %v4458_v19  ;;  %v910_v24 = vmul.f32 %v908_v18, %v4430_v63 }
 0x10b   : > { %624 = vrot.lane.b32.xlu0 %v620_v26, %s4121_s10  ;;  %613 = vrot.lane.b32.xlu1 %v608_v27, %s4121_s10  ;;  %v964_v26 = vstv %s3688_s15  ;;  %s4514_s15 = sld [smem:[#allocation7 + $0x55]] }
 0x10c   : > { %v965_v27 = vmul.f32 %v964_v26, %v4458_v19  ;;  %v966_v33 = vmul.f32 %v964_v26, %v4466_v25 }
 0x10f   : > { %637 = vrot.lane.b32.xlu0 %v633_v29, %s4121_s10  ;;  %626 = vrot.lane.b32.xlu1 %v621_v30, %s4121_s10  ;;  %v977_v29 = vstv %s3689_s17  ;;  %s4518_s17 = sld [smem:[#allocation7 + $0x6c]] }
 0x110   : > { %v978_v30 = vmul.f32 %v977_v29, %v4458_v19  ;;  %v979_v36 = vmul.f32 %v977_v29, %v4466_v25 }
 0x111   : > { %v1115_v12 = vstv %s4514_s15  ;;  %s4636_s15 = sld [smem:[#allocation7 + $0x58]] }
 0x112   : > { %v1116_v29 = vmul.f32 %v1115_v12, %v4516_v51 }
 0x113   : > { %680 = vrot.lane.b32.xlu0 %v676_v31, %s4120_s6  ;;  %639 = vrot.lane.b32.xlu1 %v634_v34, %s4121_s10  ;;  %v990_v31 = vstv %s3690_s23  ;;  %s4524_s23 = sld [smem:[#allocation7 + $0x27]] }
 0x114   : > { %v991_v34 = vmul.f32 %v990_v31, %v4458_v19  ;;  %v992_v39 = vmul.f32 %v990_v31, %v4466_v25 }
 0x117   : > { %693 = vrot.lane.b32.xlu0 %v689_v37, %s4120_s6  ;;  %682 = vrot.lane.b32.xlu1 %v677_v38, %s4120_s6  ;;  %v1007_v37 = vstv %s3691_s25  ;;  %s4526_s25 = sld [smem:[#allocation7 + $0x79]] }
 0x118   : > { %v1008_v38 = vmul.f32 %v1007_v37, %v4458_v19 }
 0x119   : > { %v656_v18 = vstv %s4524_s23  ;;  %s4644_s23 = sld [smem:[#allocation7 + $0x7c]] }
 0x11b   : > { %706 = vrot.lane.b32.xlu0 %v702_v40, %s4120_s6  ;;  %695 = vrot.lane.b32.xlu1 %v690_v42, %s4120_s6  ;;  %v1020_v40 = vstv %s3692_s26  ;;  %s4538_s26 = sld [smem:[#allocation7 + $0x4b]] }
 0x11c   : > { %v1021_v43 = vmul.f32 %v1020_v40, %v4458_v19  ;;  %v1022_v54 = vmul.f32 %v1020_v40, %v4466_v25 }
 0x11f   : > { %719 = vrot.lane.b32.xlu0 %v715_v44, %s4120_s6  ;;  %708 = vrot.lane.b32.xlu1 %v703_v45, %s4120_s6  ;;  %v1009_v44 = vmul.f32 %v1007_v37, %v4466_v25  ;;  %v1033_v45 = vstv %s4480_s30  ;;  %s4543_s30 = sld [smem:[#allocation7 + $0xe]] }
 0x123   : > { %736 = vrot.lane.b32.xlu0 %v732_v52, %s4121_s10  ;;  %721 = vrot.lane.b32.xlu1 %v716_v53, %s4120_s6  ;;  %v1034_v53 = vmul.f32 %v1033_v45, %v4458_v19 }
 0x125   : > { %v1145_v37 = vstv %s4543_s30  ;;  %s4664_s30 = sld [smem:[#allocation7 + $0x72]] }
 0x127   : > { %749 = vrot.lane.b32.xlu0 %v745_v56, %s4121_s10  ;;  %738 = vrot.lane.b32.xlu1 %v733_v41, %s4121_s10  ;;  %v1046_v56 = vstv %s4486_s7  ;;  %s4559_s7 = sld [smem:[#allocation7 + $0x6f]] }
 0x128   : > { %v1048_v0 = vmul.f32 %v1046_v56, %v4466_v25 }
 0x12b   : > { %762 = vrot.lane.b32.xlu0 %v758_v57, %s4121_s10  ;;  %751 = vrot.lane.b32.xlu1 %v746_v58, %s4121_s10  ;;  %v1047_v57 = vmul.f32 %v1046_v56, %v4458_v19  ;;  %v1035_v58 = vmul.f32 %v1033_v45, %v4466_v25 }
 0x12f   : > { %775 = vrot.lane.b32.xlu0 %v771_v59, %s4121_s10  ;;  %764 = vrot.lane.b32.xlu1 %v759_v60, %s4121_s10  ;;  %v1089_v59 = vstv %s4493_s8  ;;  %v513_v60 = vstv %s4495_s9  ;;  %s4568_s8 = sld [smem:[#allocation7 + $0x32]] }
 0x130   : > { %s4584_s9 = sld [smem:[#allocation7 + $0x56]] }
 0x133   : > { %818 = vrot.lane.b32.xlu0 %v814_v48, %s4120_s6  ;;  %777 = vrot.lane.b32.xlu1 %v772_v50, %s4121_s10  ;;  %v1090_v50 = vmul.f32 %v1089_v59, %v4516_v51 }
 0x137   : > { %831 = vrot.lane.b32.xlu0 %v827_v55, %s4120_s6  ;;  %820 = vrot.lane.b32.xlu1 %v815_v49, %s4120_s6  ;;  %v4534_v55 = vld [vmem:[#allocation2 + $0x30] sm:$0xff]  ;;  %v514_v49 = vmul.f32 %v513_v60, %v4352_v3 }
 0x13b   : > { %844 = vrot.lane.b32.xlu0 %v840_v2, %s4120_s6  ;;  %833 = vrot.lane.b32.xlu1 %v828_v4, %s4120_s6  ;;  %v518_v2 = vstv %s4499_s11  ;;  %v651_v4 = vstv %s4508_s13  ;;  %s4601_s11 = sld [smem:[#allocation7 + $0x7a]] }
 0x13c   : > { %s4625_s13 = sld [smem:[#allocation7 + $0x34]] }
 0x13f   : > { %857 = vrot.lane.b32.xlu0 %v853_v6, %s4120_s6  ;;  %846 = vrot.lane.b32.xlu1 %v841_v7, %s4120_s6  ;;  %v523_v6 = vstv %s4510_s14  ;;  %s4629_s14 = sld [smem:[#allocation7 + $0x6]] }
 0x140   : > { %v524_v26 = vmul.f32 %v523_v6, %v4352_v3 }
 0x143   : > { %874 = vrot.lane.b32.xlu0 %v870_v10, %s4121_s10  ;;  %859 = vrot.lane.b32.xlu1 %v854_v11, %s4120_s6  ;;  %v1103_v10 = vmul.f32 %v1102_v1, %v4516_v51  ;;  %v1091_v11 = vmul.f32 %v1089_v59, %v4534_v55 }
 0x147   : > { %887 = vrot.lane.b32.xlu0 %v883_v13, %s4121_s10  ;;  %876 = vrot.lane.b32.xlu1 %v871_v14, %s4121_s10  ;;  %v515_v13 = vmul.f32 %v513_v60, %v4358_v8  ;;  %v519_v14 = vmul.f32 %v518_v2, %v4352_v3 }
 0x14b   : > { %900 = vrot.lane.b32.xlu0 %v896_v16, %s4121_s10  ;;  %889 = vrot.lane.b32.xlu1 %v884_v17, %s4121_s10  ;;  %v652_v16 = vmul.f32 %v651_v4, %v4388_v32  ;;  %v528_v17 = vstv %s4518_s17  ;;  %s4640_s17 = sld [smem:[#allocation7 + $0x2a]] }
 0x14c   : > { %v529_v45 = vmul.f32 %v528_v17, %v4352_v3  ;;  %v666_v3 = vstv %s4559_s7  ;;  %s4673_s7 = sld [smem:[#allocation7 + $0x35]] }
 0x14f   : > { %913 = vrot.lane.b32.xlu0 %v909_v21, %s4121_s10  ;;  %902 = vrot.lane.b32.xlu1 %v897_v22, %s4121_s10  ;;  %v1128_v22 = vstv %s4526_s25  ;;  %s4652_s25 = sld [smem:[#allocation7 + $0x4e]] }
 0x153   : > { %956 = vrot.lane.b32.xlu0 %v952_v23, %s4120_s6  ;;  %915 = vrot.lane.b32.xlu1 %v910_v24, %s4121_s10  ;;  %v520_v24 = vmul.f32 %v518_v2, %v4358_v8  ;;  %v1146_v2 = vmul.f32 %v1145_v37, %v4516_v51 }
 0x157   : > { %969 = vrot.lane.b32.xlu0 %v965_v27, %s4120_s6  ;;  %958 = vrot.lane.b32.xlu1 %v953_v28, %s4120_s6 }
 0x15b   : > { %982 = vrot.lane.b32.xlu0 %v978_v30, %s4120_s6  ;;  %971 = vrot.lane.b32.xlu1 %v966_v33, %s4120_s6  ;;  %v1104_v30 = vmul.f32 %v1102_v1, %v4534_v55 }
 0x15f   : > { %995 = vrot.lane.b32.xlu0 %v991_v34, %s4120_s6  ;;  %984 = vrot.lane.b32.xlu1 %v979_v36, %s4120_s6  ;;  %v653_v34 = vmul.f32 %v651_v4, %v4394_v35  ;;  %v657_v36 = vmul.f32 %v656_v18, %v4388_v32  ;;  %v1130_v4 = vmul.f32 %v1128_v22, %v4534_v55 }
 0x163   : > { %1012 = vrot.lane.b32.xlu0 %v1008_v38, %s4121_s10  ;;  %997 = vrot.lane.b32.xlu1 %v992_v39, %s4120_s6  ;;  %v661_v38 = vstv %s4538_s26  ;;  %s4657_s26 = sld [smem:[#allocation7 + $0x11]] }
 0x165   : > { %v543_v42 = vpop.permute.xlu0 %542 }
 0x166   : > { %v548_v5 = vadd.f32 %v543_v42, %v514_v49 }
 0x167   : > { %1025 = vrot.lane.b32.xlu0 %v1021_v43, %s4121_s10  ;;  %1014 = vrot.lane.b32.xlu1 %v1009_v44, %s4121_s10  ;;  %v525_v44 = vmul.f32 %v523_v6, %v4358_v8 }
 0x169   : > { %v545_v46 = vpop.permute.xlu1 %544  ;;  %v556_v52 = vpop.permute.xlu0 %555 }
 0x16a   : > { %v549_v20 = vadd.f32 %v545_v46, %v515_v13  ;;  %v561_v21 = vadd.f32 %v556_v52, %v519_v14 }
 0x16b   : > { %1038 = vrot.lane.b32.xlu0 %v1034_v53, %s4121_s10  ;;  %1027 = vrot.lane.b32.xlu1 %v1022_v54, %s4121_s10  ;;  %v1129_v53 = vmul.f32 %v1128_v22, %v4516_v51  ;;  %v1117_v54 = vmul.f32 %v1115_v12, %v4534_v55 }
 0x16d   : > { %v558_v41 = vpop.permute.xlu1 %557  ;;  %v569_v47 = vpop.permute.xlu0 %568 }
 0x16e   : > { %v562_v39 = vadd.f32 %v558_v41, %v520_v24  ;;  %v574_v40 = vadd.f32 %v569_v47, %v524_v26  ;;  %v658_v41 = vmul.f32 %v656_v18, %v4394_v35  ;;  %v662_v47 = vmul.f32 %v661_v38, %v4388_v32 }
 0x16f   : > { %1051 = vrot.lane.b32.xlu0 %v1047_v57, %s4121_s10  ;;  %1040 = vrot.lane.b32.xlu1 %v1035_v58, %s4121_s10  ;;  %v1184_v24 = vstv %s4601_s11  ;;  %s4719_s11 = sld [smem:[#allocation7 + $0x13]] }
 0x171   : > { %v4528_v62 = vpop.permute.xlu1 %570  ;;  %v4530_v48 = vpop.permute.xlu0 %581 }
 0x172   : > { %v575_v58 = vadd.f32 %v4528_v62, %v525_v44  ;;  %v587_v59 = vadd.f32 %v4530_v48, %v529_v45  ;;  %v663_v62 = vmul.f32 %v661_v38, %v4394_v35  ;;  %v667_v48 = vmul.f32 %v666_v3, %v4388_v32 }
 0x173   : > { %1094 = vrot.lane.b32.xlu0 %v1090_v50, %s4120_s6  ;;  %1053 = vrot.lane.b32.xlu1 %v1048_v0, %s4121_s10  ;;  %v530_v0 = vmul.f32 %v528_v17, %v4358_v8  ;;  %v1171_v17 = vstv %s4584_s9  ;;  %v668_v32 = vmul.f32 %v666_v3, %v4394_v35  ;;  %v1240_v38 = vstv %s4625_s13  ;;  %s4705_s9 = sld [smem:[#allocation7 + $0x7d]] }
 0x174   : > { %s4733_s13 = sld [smem:[#allocation7 + $0x9]] }
 0x175   : > { %v4547_v7 = vpop.permute.xlu1 %583  ;;  %v599_v9 = vpop.permute.xlu0 %598 }
 0x176   : > { %v604_v15 = vadd.f32 %v599_v9, %v548_v5  ;;  %v1158_v5 = vstv %s4568_s8  ;;  %v588_v8 = vadd.f32 %v4547_v7, %v530_v0  ;;  %s4689_s8 = sld [smem:[#allocation7 + $0x59]] }
 0x177   : > { %1107 = vrot.lane.b32.xlu0 %v1103_v10, %s4120_s6  ;;  %1096 = vrot.lane.b32.xlu1 %v1091_v11, %s4120_s6  ;;  %v1159_v14 = vmul.f32 %v1158_v5, %v4516_v51  ;;  %v1160_v22 = vmul.f32 %v1158_v5, %v4534_v55 }
 0x178   : > { %v4562_v23 = vadd.f32 %v652_v16, %v604_v15  ;;  %v1147_v15 = vmul.f32 %v1145_v37, %v4534_v55  ;;  %v4646_v37 = vld [vmem:[#allocation2 + $0x31] sm:$0xff] }
 0x179   : > { %v601_v27 = vpop.permute.xlu1 %600  ;;  %v612_v28 = vpop.permute.xlu0 %611  ;;  %v1242_v0 = vmul.f32 %v1240_v38, %v4646_v37 }
 0x17a   : > { %v605_v33 = vadd.f32 %v601_v27, %v549_v20  ;;  %v617_v31 = vadd.f32 %v612_v28, %v561_v21  ;;  %v1172_v21 = vmul.f32 %v1171_v17, %v4516_v51  ;;  %v1185_v27 = vmul.f32 %v1184_v24, %v4516_v51 }
 0x17b   : > { %1120 = vrot.lane.b32.xlu0 %v1116_v29, %s4120_s6  ;;  %1109 = vrot.lane.b32.xlu1 %v1104_v30, %s4120_s6  ;;  %v1173_v28 = vmul.f32 %v1171_v17, %v4534_v55  ;;  %v4633_v29 = vld [vmem:[#allocation2 + $0x29] sm:$0xff]  ;;  %v1227_v30 = vstv %s4615_s12  ;;  %v804_v17 = vstv %s4664_s30  ;;  %s4729_s12 = sld [smem:[#allocation7 + $0x37]] }
 0x17c   : > { %v4576_v42 = vadd.f32 %v653_v34, %v605_v33  ;;  %v4578_v43 = vadd.f32 %v657_v36, %v617_v31  ;;  %v1228_v34 = vmul.f32 %v1227_v30, %v4633_v29  ;;  %v1186_v36 = vmul.f32 %v1184_v24, %v4534_v55  ;;  %s4777_s30 = sld [smem:[#allocation7 + $0x38]] }
 0x17d   : > { %v614_v46 = vpop.permute.xlu1 %613  ;;  %v625_v52 = vpop.permute.xlu0 %624 }
 0x17e   : > { %v618_v56 = vadd.f32 %v614_v46, %v562_v39  ;;  %v630_v57 = vadd.f32 %v625_v52, %v574_v40  ;;  %v789_v39 = vstv %s4629_s14  ;;  %v1241_v46 = vmul.f32 %v1240_v38, %v4633_v29  ;;  %s4740_s14 = sld [smem:[#allocation7 + $0x5b]] }
 0x17f   : > { %1133 = vrot.lane.b32.xlu0 %v1129_v53, %s4120_s6  ;;  %1122 = vrot.lane.b32.xlu1 %v1117_v54, %s4120_s6  ;;  %v1229_v52 = vmul.f32 %v1227_v30, %v4646_v37  ;;  %v1253_v54 = vstv %s4636_s15  ;;  %s4744_s15 = sld [smem:[#allocation7 + $0x2d]] }
 0x180   : > { %v4593_v60 = vadd.f32 %v658_v41, %v618_v56  ;;  %v4595_v50 = vadd.f32 %v662_v47, %v630_v57  ;;  %v790_v56 = vmul.f32 %v789_v39, %v4424_v61  ;;  %v794_v57 = vstv %s4640_s17  ;;  %s4748_s17 = sld [smem:[#allocation7 + $0x7f]] }
 0x181   : > { %v627_v49 = vpop.permute.xlu1 %626  ;;  %v638_v1 = vpop.permute.xlu0 %637 }
 0x182   : > { %v631_v6 = vadd.f32 %v627_v49, %v575_v58  ;;  %v643_v9 = vadd.f32 %v638_v1, %v587_v59  ;;  %v1254_v59 = vmul.f32 %v1253_v54, %v4633_v29  ;;  %v1266_v49 = vstv %s4644_s23  ;;  %s4756_s23 = sld [smem:[#allocation7 + $0x51]] }
 0x183   : > { %1150 = vrot.lane.b32.xlu0 %v1146_v2, %s4121_s10  ;;  %1135 = vrot.lane.b32.xlu1 %v1130_v4, %s4120_s6  ;;  %v791_v4 = vmul.f32 %v789_v39, %v4430_v63 }
 0x184   : > { %v4608_v10 = vadd.f32 %v663_v62, %v631_v6  ;;  %v4610_v11 = vadd.f32 %v667_v48, %v643_v9 }
 0x185   : > { %v640_v12 = vpop.permute.xlu1 %639  ;;  %v681_v13 = vpop.permute.xlu0 %680 }
 0x186   : > { %v644_v16 = vadd.f32 %v640_v12, %v588_v8  ;;  %v686_v40 = vadd.f32 %v681_v13, %v4562_v23  ;;  %v1267_v12 = vmul.f32 %v1266_v49, %v4633_v29  ;;  %v1255_v13 = vmul.f32 %v1253_v54, %v4646_v37 }
 0x187   : > { %1163 = vrot.lane.b32.xlu0 %v1159_v14, %s4121_s10  ;;  %1152 = vrot.lane.b32.xlu1 %v1147_v15, %s4121_s10  ;;  %v1283_v14 = vstv %s4657_s26  ;;  %s4768_s26 = sld [smem:[#allocation7 + $0x75]] }
 0x188   : > { %v4620_v7 = vadd.f32 %v668_v32, %v644_v16 }
 0x189   : > { %v683_v18 = vpop.permute.xlu1 %682  ;;  %v694_v20 = vpop.permute.xlu0 %693 }
 0x18a   : > { %v687_v23 = vadd.f32 %v683_v18, %v4576_v42  ;;  %v699_v41 = vadd.f32 %v694_v20, %v4578_v43  ;;  %v795_v42 = vmul.f32 %v794_v57, %v4424_v61  ;;  %v799_v43 = vstv %s4652_s25  ;;  %s4761_s25 = sld [smem:[#allocation7 + $0x14]] }
 0x18b   : > { %1176 = vrot.lane.b32.xlu0 %v1172_v21, %s4121_s10  ;;  %1165 = vrot.lane.b32.xlu1 %v1160_v22, %s4121_s10 }
 0x18d   : > { %v696_v35 = vpop.permute.xlu1 %695  ;;  %v707_v26 = vpop.permute.xlu0 %706 }
 0x18e   : > { %v700_v5 = vadd.f32 %v696_v35, %v4593_v60  ;;  %v712_v6 = vadd.f32 %v707_v26, %v4595_v50  ;;  %v796_v60 = vmul.f32 %v794_v57, %v4430_v63  ;;  %v800_v50 = vmul.f32 %v799_v43, %v4424_v61 }
 0x18f   : > { %1189 = vrot.lane.b32.xlu0 %v1185_v27, %s4121_s10  ;;  %1178 = vrot.lane.b32.xlu1 %v1173_v28, %s4121_s10  ;;  %v1284_v35 = vmul.f32 %v1283_v14, %v4633_v29  ;;  %v1268_v26 = vmul.f32 %v1266_v49, %v4646_v37  ;;  %v1296_v27 = vstv %s4673_s7  ;;  %s4793_s7 = sld [smem:[#allocation7 + $0x5c]] }
 0x190   : > { %v1297_v39 = vmul.f32 %v1296_v27, %v4633_v29  ;;  %v1298_v54 = vmul.f32 %v1296_v27, %v4646_v37 }
 0x191   : > { %v709_v33 = vpop.permute.xlu1 %708  ;;  %v720_v31 = vpop.permute.xlu0 %719 }
 0x192   : > { %v713_v32 = vadd.f32 %v709_v33, %v4608_v10  ;;  %v725_v18 = vadd.f32 %v720_v31, %v4610_v11  ;;  %v801_v10 = vmul.f32 %v799_v43, %v4430_v63  ;;  %v805_v11 = vmul.f32 %v804_v17, %v4424_v61 }
 0x193   : > { %1232 = vrot.lane.b32.xlu0 %v1228_v34, %s4120_s6  ;;  %1191 = vrot.lane.b32.xlu1 %v1186_v36, %s4121_s10  ;;  %v806_v61 = vmul.f32 %v804_v17, %v4430_v63 }
 0x195   : > { %v722_v44 = vpop.permute.xlu1 %721  ;;  %v737_v45 = vpop.permute.xlu0 %736 }
 0x196   : > { %v742_v53 = vadd.f32 %v737_v45, %v686_v40  ;;  %v726_v33 = vadd.f32 %v722_v44, %v4620_v7  ;;  %v1285_v40 = vmul.f32 %v1283_v14, %v4646_v37 }
 0x197   : > { %1245 = vrot.lane.b32.xlu0 %v1241_v46, %s4120_s6  ;;  %1234 = vrot.lane.b32.xlu1 %v1229_v52, %s4120_s6  ;;  %v1309_v46 = vstv %s4689_s8  ;;  %s4809_s8 = sld [smem:[#allocation7 + $0x80]] }
 0x198   : > { %v4668_v47 = vadd.f32 %v790_v56, %v742_v53  ;;  %v1310_v53 = vmul.f32 %v1309_v46, %v4633_v29  ;;  %v1322_v56 = vstv %s4705_s9  ;;  %s4823_s9 = sld [smem:[#allocation7 + $0x16]] }
 0x199   : > { %v739_v3 = vpop.permute.xlu1 %738  ;;  %v750_v58 = vpop.permute.xlu0 %749  ;;  %v1324_v49 = vmul.f32 %v1322_v56, %v4646_v37 }
 0x19a   : > { %v743_v1 = vadd.f32 %v739_v3, %v687_v23  ;;  %v755_v2 = vadd.f32 %v750_v58, %v699_v41  ;;  %v1311_v23 = vmul.f32 %v1309_v46, %v4646_v37  ;;  %v1323_v41 = vmul.f32 %v1322_v56, %v4633_v29  ;;  %v4737_v3 = vld [vmem:[#allocation2 + $0x47] sm:$0xff] }
 0x19b   : > { %1258 = vrot.lane.b32.xlu0 %v1254_v59, %s4120_s6  ;;  %1247 = vrot.lane.b32.xlu1 %v1242_v0, %s4120_s6  ;;  %v1365_v58 = vstv %s4719_s11  ;;  %v942_v46 = vstv %s4768_s26  ;;  %s4833_s11 = sld [smem:[#allocation7 + $0x3a]] }
 0x19c   : > { %v4682_v9 = vadd.f32 %v791_v4, %v743_v1  ;;  %v4684_v62 = vadd.f32 %v795_v42, %v755_v2  ;;  %v1366_v1 = vmul.f32 %v1365_v58, %v4737_v3  ;;  %v4750_v2 = vld [vmem:[#allocation2 + $0x4f] sm:$0xff]  ;;  %v1378_v4 = vstv %s4729_s12  ;;  %s4837_s12 = sld [smem:[#allocation7 + $0xc]] }
 0x19d   : > { %v752_v48 = vpop.permute.xlu1 %751  ;;  %v763_v8 = vpop.permute.xlu0 %762  ;;  %v927_v42 = vstv %s4733_s13  ;;  %s4844_s13 = sld [smem:[#allocation7 + $0x5e]] }
 0x19e   : > { %v756_v15 = vadd.f32 %v752_v48, %v700_v5  ;;  %v768_v16 = vadd.f32 %v763_v8, %v712_v6  ;;  %v1367_v48 = vmul.f32 %v1365_v58, %v4750_v2  ;;  %v1379_v8 = vmul.f32 %v1378_v4, %v4737_v3  ;;  %s4881_s26 = sld [smem:[#allocation7 + $0x3b]] }
 0x19f   : > { %1271 = vrot.lane.b32.xlu0 %v1267_v12, %s4120_s6  ;;  %1260 = vrot.lane.b32.xlu1 %v1255_v13, %s4120_s6  ;;  %v1391_v13 = vstv %s4740_s14  ;;  %v928_v14 = vmul.f32 %v927_v42, %v4458_v19  ;;  %s4848_s14 = sld [smem:[#allocation7 + $0x30]] }
 0x1a0   : > { %v4698_v20 = vadd.f32 %v796_v60, %v756_v15  ;;  %v4700_v21 = vadd.f32 %v800_v50, %v768_v16  ;;  %v932_v15 = vstv %s4744_s15  ;;  %s4852_s15 = sld [smem:[#allocation7 + $0x82]] }
 0x1a1   : > { %v765_v22 = vpop.permute.xlu1 %764  ;;  %v776_v24 = vpop.permute.xlu0 %775 }
 0x1a2   : > { %v769_v28 = vadd.f32 %v765_v22, %v713_v32  ;;  %v781_v30 = vadd.f32 %v776_v24, %v725_v18  ;;  %v1380_v32 = vmul.f32 %v1378_v4, %v4750_v2  ;;  %v1392_v18 = vmul.f32 %v1391_v13, %v4737_v3 }
 0x1a3   : > { %1288 = vrot.lane.b32.xlu0 %v1284_v35, %s4121_s10  ;;  %1273 = vrot.lane.b32.xlu1 %v1268_v26, %s4120_s6  ;;  %v1404_v22 = vstv %s4748_s17  ;;  %v929_v26 = vmul.f32 %v927_v42, %v4466_v25  ;;  %s4860_s17 = sld [smem:[#allocation7 + $0x54]] }
 0x1a4   : > { %v4712_v31 = vadd.f32 %v801_v10, %v769_v28  ;;  %v4714_v34 = vadd.f32 %v805_v11, %v781_v30 }
 0x1a5   : > { %v778_v36 = vpop.permute.xlu1 %777  ;;  %v819_v38 = vpop.permute.xlu0 %818 }
 0x1a6   : > { %v782_v45 = vadd.f32 %v778_v36, %v726_v33  ;;  %v824_v43 = vadd.f32 %v819_v38, %v4668_v47  ;;  %v1393_v36 = vmul.f32 %v1391_v13, %v4750_v2  ;;  %v1405_v38 = vmul.f32 %v1404_v22, %v4737_v3 }
 0x1a7   : > { %1301 = vrot.lane.b32.xlu0 %v1297_v39, %s4121_s10  ;;  %1290 = vrot.lane.b32.xlu1 %v1285_v40, %s4121_s10  ;;  %v1421_v39 = vstv %s4761_s25  ;;  %s4872_s25 = sld [smem:[#allocation7 + $0x78]] }
 0x1a8   : > { %v4724_v7 = vadd.f32 %v806_v61, %v782_v45  ;;  %v1423_v42 = vmul.f32 %v1421_v39, %v4750_v2 }
 0x1a9   : > { %v821_v44 = vpop.permute.xlu1 %820  ;;  %v832_v52 = vpop.permute.xlu0 %831 }
 0x1aa   : > { %v825_v47 = vadd.f32 %v821_v44, %v4682_v9  ;;  %v837_v16 = vadd.f32 %v832_v52, %v4684_v62  ;;  %v933_v9 = vmul.f32 %v932_v15, %v4458_v19  ;;  %v937_v62 = vstv %s4756_s23  ;;  %s4865_s23 = sld [smem:[#allocation7 + $0x17]] }
 0x1ab   : > { %1314 = vrot.lane.b32.xlu0 %v1310_v53, %s4121_s10  ;;  %1303 = vrot.lane.b32.xlu1 %v1298_v54, %s4121_s10 }
 0x1ad   : > { %v834_v63 = vpop.permute.xlu1 %833  ;;  %v845_v57 = vpop.permute.xlu0 %844 }
 0x1ae   : > { %v838_v27 = vadd.f32 %v834_v63, %v4698_v20  ;;  %v850_v28 = vadd.f32 %v845_v57, %v4700_v21  ;;  %v934_v20 = vmul.f32 %v932_v15, %v4466_v25  ;;  %v938_v21 = vmul.f32 %v937_v62, %v4458_v19 }
 0x1af   : > { %1316 = vrot.lane.b32.xlu1 %v1311_v23, %s4121_s10  ;;  %1327 = vrot.lane.b32.xlu0 %v1323_v41, %s4121_s10  ;;  %v1406_v63 = vmul.f32 %v1404_v22, %v4750_v2  ;;  %v1422_v57 = vmul.f32 %v1421_v39, %v4737_v3  ;;  %v1434_v23 = vstv %s4777_s30  ;;  %s4897_s30 = sld [smem:[#allocation7 + $0x5f]] }
 0x1b1   : > { %v847_v59 = vpop.permute.xlu1 %846  ;;  %v858_v0 = vpop.permute.xlu0 %857 }
 0x1b2   : > { %v851_v61 = vadd.f32 %v847_v59, %v4712_v31  ;;  %v863_v44 = vadd.f32 %v858_v0, %v4714_v34  ;;  %v939_v31 = vmul.f32 %v937_v62, %v4466_v25  ;;  %v943_v34 = vmul.f32 %v942_v46, %v4458_v19 }
 0x1b3   : > { %1329 = vrot.lane.b32.xlu1 %v1324_v49, %s4121_s10  ;;  %1370 = vrot.lane.b32.xlu0 %v1366_v1, %s4120_s6  ;;  %v944_v19 = vmul.f32 %v942_v46, %v4466_v25 }
 0x1b5   : > { %v860_v5 = vpop.permute.xlu1 %859  ;;  %v875_v6 = vpop.permute.xlu0 %874 }
 0x1b6   : > { %v880_v12 = vadd.f32 %v875_v6, %v824_v43  ;;  %v864_v59 = vadd.f32 %v860_v5, %v4724_v7  ;;  %v1435_v43 = vmul.f32 %v1434_v23, %v4737_v3 }
 0x1b7   : > { %1372 = vrot.lane.b32.xlu1 %v1367_v48, %s4120_s6  ;;  %1383 = vrot.lane.b32.xlu0 %v1379_v8, %s4120_s6  ;;  %v1447_v48 = vstv %s4793_s7  ;;  %s4913_s7 = sld [smem:[#allocation7 + $0x83]] }
 0x1b8   : > { %v4772_v60 = vadd.f32 %v928_v14, %v880_v12  ;;  %v1436_v12 = vmul.f32 %v1434_v23, %v4750_v2  ;;  %v1448_v13 = vmul.f32 %v1447_v48, %v4737_v3  ;;  %v1460_v14 = vstv %s4809_s8  ;;  %s4927_s8 = sld [smem:[#allocation7 + $0x19]] }
 0x1b9   : > { %v877_v50 = vpop.permute.xlu1 %876  ;;  %v888_v17 = vpop.permute.xlu0 %887  ;;  %v1462_v22 = vmul.f32 %v1460_v14, %v4750_v2 }
 0x1ba   : > { %v881_v24 = vadd.f32 %v877_v50, %v825_v47  ;;  %v893_v35 = vadd.f32 %v888_v17, %v837_v16  ;;  %v1449_v47 = vmul.f32 %v1447_v48, %v4750_v2  ;;  %v1461_v16 = vmul.f32 %v1460_v14, %v4737_v3  ;;  %v4841_v50 = vld [vmem:[#allocation2 + $0x48] sm:$0xff] }
 0x1bb   : > { %1385 = vrot.lane.b32.xlu1 %v1380_v32, %s4120_s6  ;;  %1396 = vrot.lane.b32.xlu0 %v1392_v18, %s4120_s6  ;;  %v1503_v17 = vstv %s4823_s9  ;;  %v1080_v48 = vstv %s4872_s25  ;;  %s4937_s9 = sld [smem:[#allocation7 + $0x3d]] }
 0x1bc   : > { %v4786_v30 = vadd.f32 %v929_v26, %v881_v24  ;;  %v4788_v10 = vadd.f32 %v933_v9, %v893_v35  ;;  %v1504_v24 = vmul.f32 %v1503_v17, %v4841_v50  ;;  %v4854_v35 = vld [vmem:[#allocation2 + $0x50] sm:$0xff]  ;;  %v1516_v26 = vstv %s4833_s11  ;;  %s4941_s11 = sld [smem:[#allocation7 + $0xf]] }
 0x1bd   : > { %v890_v11 = vpop.permute.xlu1 %889  ;;  %v901_v33 = vpop.permute.xlu0 %900  ;;  %v1065_v9 = vstv %s4837_s12  ;;  %s4948_s12 = sld [smem:[#allocation7 + $0x61]] }
 0x1be   : > { %v894_v40 = vadd.f32 %v890_v11, %v838_v27  ;;  %v906_v45 = vadd.f32 %v901_v33, %v850_v28  ;;  %v1505_v11 = vmul.f32 %v1503_v17, %v4854_v35  ;;  %v1517_v33 = vmul.f32 %v1516_v26, %v4841_v50  ;;  %s4985_s25 = sld [smem:[#allocation7 + $0x3e]] }
 0x1bf   : > { %1398 = vrot.lane.b32.xlu1 %v1393_v36, %s4120_s6  ;;  %1409 = vrot.lane.b32.xlu0 %v1405_v38, %s4120_s6  ;;  %v1529_v38 = vstv %s4844_s13  ;;  %v1066_v39 = vmul.f32 %v1065_v9, %v4516_v51  ;;  %s4952_s13 = sld [smem:[#allocation7 + $0x33]] }
 0x1c0   : > { %v4802_v52 = vadd.f32 %v934_v20, %v894_v40  ;;  %v4804_v53 = vadd.f32 %v938_v21, %v906_v45  ;;  %v1070_v40 = vstv %s4848_s14  ;;  %s4956_s14 = sld [smem:[#allocation7 + $0x85]] }
 0x1c1   : > { %v903_v54 = vpop.permute.xlu1 %902  ;;  %v914_v56 = vpop.permute.xlu0 %913 }
 0x1c2   : > { %v907_v41 = vadd.f32 %v903_v54, %v851_v61  ;;  %v919_v58 = vadd.f32 %v914_v56, %v863_v44  ;;  %v1518_v61 = vmul.f32 %v1516_v26, %v4854_v35  ;;  %v1530_v44 = vmul.f32 %v1529_v38, %v4841_v50 }
 0x1c3   : > { %1411 = vrot.lane.b32.xlu1 %v1406_v63, %s4120_s6  ;;  %1426 = vrot.lane.b32.xlu0 %v1422_v57, %s4121_s10  ;;  %v1542_v54 = vstv %s4852_s15  ;;  %v1067_v57 = vmul.f32 %v1065_v9, %v4534_v55  ;;  %s4964_s15 = sld [smem:[#allocation7 + $0x57]] }
 0x1c4   : > { %v4816_v0 = vadd.f32 %v939_v31, %v907_v41  ;;  %v4818_v49 = vadd.f32 %v943_v34, %v919_v58 }
 0x1c5   : > { %v916_v1 = vpop.permute.xlu1 %915  ;;  %v957_v4 = vpop.permute.xlu0 %956 }
 0x1c6   : > { %v920_v6 = vadd.f32 %v916_v1, %v864_v59  ;;  %v962_v62 = vadd.f32 %v957_v4, %v4772_v60  ;;  %v1531_v1 = vmul.f32 %v1529_v38, %v4854_v35  ;;  %v1543_v4 = vmul.f32 %v1542_v54, %v4841_v50 }
 0x1c7   : > { %1428 = vrot.lane.b32.xlu1 %v1423_v42, %s4121_s10  ;;  %1439 = vrot.lane.b32.xlu0 %v1435_v43, %s4121_s10  ;;  %v1559_v42 = vstv %s4865_s23  ;;  %s4976_s23 = sld [smem:[#allocation7 + $0x7b]] }
 0x1c8   : > { %v4828_v7 = vadd.f32 %v944_v19, %v920_v6  ;;  %v1561_v9 = vmul.f32 %v1559_v42, %v4854_v35 }
 0x1c9   : > { %v959_v5 = vpop.permute.xlu1 %958  ;;  %v970_v8 = vpop.permute.xlu0 %969 }
 0x1ca   : > { %v963_v60 = vadd.f32 %v959_v5, %v4786_v30  ;;  %v975_v45 = vadd.f32 %v970_v8, %v4788_v10  ;;  %v1071_v30 = vmul.f32 %v1070_v40, %v4516_v51  ;;  %v1075_v10 = vstv %s4860_s17  ;;  %s4969_s17 = sld [smem:[#allocation7 + $0x1a]] }
 0x1cb   : > { %1441 = vrot.lane.b32.xlu1 %v1436_v12, %s4121_s10  ;;  %1452 = vrot.lane.b32.xlu0 %v1448_v13, %s4121_s10 }
 0x1cd   : > { %v972_v25 = vpop.permute.xlu1 %971  ;;  %v983_v15 = vpop.permute.xlu0 %982 }
 0x1ce   : > { %v976_v23 = vadd.f32 %v972_v25, %v4802_v52  ;;  %v988_v41 = vadd.f32 %v983_v15, %v4804_v53  ;;  %v1072_v52 = vmul.f32 %v1070_v40, %v4534_v55  ;;  %v1076_v53 = vmul.f32 %v1075_v10, %v4516_v51 }
 0x1cf   : > { %1454 = vrot.lane.b32.xlu1 %v1449_v47, %s4121_s10  ;;  %1465 = vrot.lane.b32.xlu0 %v1461_v16, %s4121_s10  ;;  %v1544_v25 = vmul.f32 %v1542_v54, %v4854_v35  ;;  %v1560_v15 = vmul.f32 %v1559_v42, %v4841_v50  ;;  %v1572_v47 = vstv %s4881_s26  ;;  %s5001_s26 = sld [smem:[#allocation7 + $0x62]] }
 0x1d1   : > { %v985_v32 = vpop.permute.xlu1 %984  ;;  %v996_v18 = vpop.permute.xlu0 %995 }
 0x1d2   : > { %v989_v19 = vadd.f32 %v985_v32, %v4816_v0  ;;  %v1001_v5 = vadd.f32 %v996_v18, %v4818_v49  ;;  %v1077_v0 = vmul.f32 %v1075_v10, %v4534_v55  ;;  %v1081_v49 = vmul.f32 %v1080_v48, %v4516_v51 }
 0x1d3   : > { %1467 = vrot.lane.b32.xlu1 %v1462_v22, %s4121_s10  ;;  %1508 = vrot.lane.b32.xlu0 %v1504_v24, %s4120_s6  ;;  %v1082_v51 = vmul.f32 %v1080_v48, %v4534_v55 }
 0x1d5   : > { %v998_v27 = vpop.permute.xlu1 %997  ;;  %v1013_v28 = vpop.permute.xlu0 %1012 }
 0x1d6   : > { %v1018_v36 = vadd.f32 %v1013_v28, %v962_v62  ;;  %v1002_v32 = vadd.f32 %v998_v27, %v4828_v7  ;;  %v1573_v62 = vmul.f32 %v1572_v47, %v4841_v50 }
 0x1d7   : > { %1510 = vrot.lane.b32.xlu1 %v1505_v11, %s4120_s6  ;;  %1521 = vrot.lane.b32.xlu0 %v1517_v33, %s4120_s6  ;;  %v1585_v11 = vstv %s4897_s30  ;;  %s5017_s30 = sld [smem:[#allocation7 + $0x86]] }
 0x1d8   : > { %v4876_v20 = vadd.f32 %v1066_v39, %v1018_v36  ;;  %v1574_v36 = vmul.f32 %v1572_v47, %v4854_v35  ;;  %v1586_v38 = vmul.f32 %v1585_v11, %v4841_v50  ;;  %v1598_v39 = vstv %s4913_s7  ;;  %s5031_s7 = sld [smem:[#allocation7 + $0x1c]] }
 0x1d9   : > { %v1015_v21 = vpop.permute.xlu1 %1014  ;;  %v1026_v46 = vpop.permute.xlu0 %1025  ;;  %v1600_v54 = vmul.f32 %v1598_v39, %v4854_v35 }
 0x1da   : > { %v1019_v56 = vadd.f32 %v1015_v21, %v963_v60  ;;  %v1031_v63 = vadd.f32 %v1026_v46, %v975_v45  ;;  %v1587_v60 = vmul.f32 %v1585_v11, %v4854_v35  ;;  %v1599_v45 = vmul.f32 %v1598_v39, %v4841_v50  ;;  %v4945_v21 = vld [vmem:[#allocation2 + $0x49] sm:$0xff] }
 0x1db   : > { %1523 = vrot.lane.b32.xlu1 %v1518_v61, %s4120_s6  ;;  %1534 = vrot.lane.b32.xlu0 %v1530_v44, %s4120_s6  ;;  %v1641_v46 = vstv %s4927_s8  ;;  %v1218_v11 = vstv %s4976_s23  ;;  %s5041_s8 = sld [smem:[#allocation7 + $0x40]] }
 0x1dc   : > { %v4890_v58 = vadd.f32 %v1067_v57, %v1019_v56  ;;  %v4892_v31 = vadd.f32 %v1071_v30, %v1031_v63  ;;  %v1642_v56 = vmul.f32 %v1641_v46, %v4945_v21  ;;  %v4958_v63 = vld [vmem:[#allocation2 + $0x51] sm:$0xff]  ;;  %v1654_v57 = vstv %s4937_s9  ;;  %s5045_s9 = sld [smem:[#allocation7 + $0x12]] }
 0x1dd   : > { %v1028_v34 = vpop.permute.xlu1 %1027  ;;  %v1039_v59 = vpop.permute.xlu0 %1038  ;;  %v1203_v30 = vstv %s4941_s11  ;;  %s5052_s11 = sld [smem:[#allocation7 + $0x64]] }
 0x1de   : > { %v1032_v43 = vadd.f32 %v1028_v34, %v976_v23  ;;  %v1044_v6 = vadd.f32 %v1039_v59, %v988_v41  ;;  %v1643_v34 = vmul.f32 %v1641_v46, %v4958_v63  ;;  %v1655_v59 = vmul.f32 %v1654_v57, %v4945_v21  ;;  %s5089_s23 = sld [smem:[#allocation7 + $0x41]] }
 0x1df   : > { %1536 = vrot.lane.b32.xlu1 %v1531_v1, %s4120_s6  ;;  %1547 = vrot.lane.b32.xlu0 %v1543_v4, %s4120_s6  ;;  %v1667_v4 = vstv %s4948_s12  ;;  %v1204_v42 = vmul.f32 %v1203_v30, %v4633_v29  ;;  %s5056_s12 = sld [smem:[#allocation7 + $0x36]] }
 0x1e0   : > { %v4906_v8 = vadd.f32 %v1072_v52, %v1032_v43  ;;  %v4908_v12 = vadd.f32 %v1076_v53, %v1044_v6  ;;  %v1208_v43 = vstv %s4952_s13  ;;  %s5060_s13 = sld [smem:[#allocation7 + $0x88]] }
 0x1e1   : > { %v1041_v13 = vpop.permute.xlu1 %1040  ;;  %v1052_v14 = vpop.permute.xlu0 %1051 }
 0x1e2   : > { %v1045_v16 = vadd.f32 %v1041_v13, %v989_v19  ;;  %v1057_v17 = vadd.f32 %v1052_v14, %v1001_v5  ;;  %v1656_v19 = vmul.f32 %v1654_v57, %v4958_v63  ;;  %v1668_v5 = vmul.f32 %v1667_v4, %v4945_v21 }
 0x1e3   : > { %1549 = vrot.lane.b32.xlu1 %v1544_v25, %s4120_s6  ;;  %1564 = vrot.lane.b32.xlu0 %v1560_v15, %s4121_s10  ;;  %v1680_v13 = vstv %s4956_s14  ;;  %v1205_v15 = vmul.f32 %v1203_v30, %v4646_v37  ;;  %s5068_s14 = sld [smem:[#allocation7 + $0x5a]] }
 0x1e4   : > { %v4920_v18 = vadd.f32 %v1077_v0, %v1045_v16  ;;  %v4922_v22 = vadd.f32 %v1081_v49, %v1057_v17 }
 0x1e5   : > { %v1054_v24 = vpop.permute.xlu1 %1053  ;;  %v1095_v26 = vpop.permute.xlu0 %1094 }
 0x1e6   : > { %v1058_v28 = vadd.f32 %v1054_v24, %v1002_v32  ;;  %v1100_v10 = vadd.f32 %v1095_v26, %v4876_v20  ;;  %v1669_v24 = vmul.f32 %v1667_v4, %v4958_v63  ;;  %v1681_v26 = vmul.f32 %v1680_v13, %v4945_v21 }
 0x1e7   : > { %1566 = vrot.lane.b32.xlu1 %v1561_v9, %s4121_s10  ;;  %1577 = vrot.lane.b32.xlu0 %v1573_v62, %s4121_s10  ;;  %v1697_v9 = vstv %s4969_s17  ;;  %s5080_s17 = sld [smem:[#allocation7 + $0x7e]] }
 0x1e8   : > { %v4932_v7 = vadd.f32 %v1082_v51, %v1058_v28  ;;  %v1699_v30 = vmul.f32 %v1697_v9, %v4958_v63 }
 0x1e9   : > { %v1097_v27 = vpop.permute.xlu1 %1096  ;;  %v1108_v33 = vpop.permute.xlu0 %1107 }
 0x1ea   : > { %v1101_v20 = vadd.f32 %v1097_v27, %v4890_v58  ;;  %v1113_v6 = vadd.f32 %v1108_v33, %v4892_v31  ;;  %v1209_v58 = vmul.f32 %v1208_v43, %v4633_v29  ;;  %v1213_v31 = vstv %s4964_s15  ;;  %s5073_s15 = sld [smem:[#allocation7 + $0x1d]] }
 0x1eb   : > { %1579 = vrot.lane.b32.xlu1 %v1574_v36, %s4121_s10  ;;  %1590 = vrot.lane.b32.xlu0 %v1586_v38, %s4121_s10 }
 0x1ed   : > { %v1110_v55 = vpop.permute.xlu1 %1109  ;;  %v1121_v40 = vpop.permute.xlu0 %1120 }
 0x1ee   : > { %v1114_v47 = vadd.f32 %v1110_v55, %v4906_v8  ;;  %v1126_v16 = vadd.f32 %v1121_v40, %v4908_v12  ;;  %v1210_v8 = vmul.f32 %v1208_v43, %v4646_v37  ;;  %v1214_v12 = vmul.f32 %v1213_v31, %v4633_v29 }
 0x1ef   : > { %1592 = vrot.lane.b32.xlu1 %v1587_v60, %s4121_s10  ;;  %1603 = vrot.lane.b32.xlu0 %v1599_v45, %s4121_s10  ;;  %v1682_v55 = vmul.f32 %v1680_v13, %v4958_v63  ;;  %v1698_v40 = vmul.f32 %v1697_v9, %v4945_v21  ;;  %v1710_v60 = vstv %s4985_s25  ;;  %s5105_s25 = sld [smem:[#allocation7 + $0x65]] }
 0x1f1   : > { %v1123_v61 = vpop.permute.xlu1 %1122  ;;  %v1134_v44 = vpop.permute.xlu0 %1133 }
 0x1f2   : > { %v1127_v51 = vadd.f32 %v1123_v61, %v4920_v18  ;;  %v1139_v27 = vadd.f32 %v1134_v44, %v4922_v22  ;;  %v1215_v18 = vmul.f32 %v1213_v31, %v4646_v37  ;;  %v1219_v22 = vmul.f32 %v1218_v11, %v4633_v29 }
 0x1f3   : > { %1605 = vrot.lane.b32.xlu1 %v1600_v54, %s4121_s10  ;;  %1646 = vrot.lane.b32.xlu0 %v1642_v56, %s4120_s6  ;;  %v1220_v29 = vmul.f32 %v1218_v11, %v4646_v37 }
 0x1f5   : > { %v1136_v23 = vpop.permute.xlu1 %1135  ;;  %v1151_v41 = vpop.permute.xlu0 %1150 }
 0x1f6   : > { %v1156_v1 = vadd.f32 %v1151_v41, %v1100_v10  ;;  %v1140_v61 = vadd.f32 %v1136_v23, %v4932_v7  ;;  %v1711_v10 = vmul.f32 %v1710_v60, %v4945_v21 }
 0x1f7   : > { %1648 = vrot.lane.b32.xlu1 %v1643_v34, %s4120_s6  ;;  %1659 = vrot.lane.b32.xlu0 %v1655_v59, %s4120_s6  ;;  %v1723_v34 = vstv %s5001_s26  ;;  %s5121_s26 = sld [smem:[#allocation7 + $0x89]] }
 0x1f8   : > { %v4980_v52 = vadd.f32 %v1204_v42, %v1156_v1  ;;  %v1712_v1 = vmul.f32 %v1710_v60, %v4958_v63  ;;  %v1724_v4 = vmul.f32 %v1723_v34, %v4945_v21  ;;  %v1736_v42 = vstv %s5017_s30  ;;  %s5135_s30 = sld [smem:[#allocation7 + $0x1f]] }
 0x1f9   : > { %v1153_v53 = vpop.permute.xlu1 %1152  ;;  %v1164_v48 = vpop.permute.xlu0 %1163  ;;  %v1738_v13 = vmul.f32 %v1736_v42, %v4958_v63 }
 0x1fa   : > { %v1157_v14 = vadd.f32 %v1153_v53, %v1101_v20  ;;  %v1169_v25 = vadd.f32 %v1164_v48, %v1113_v6  ;;  %v1725_v20 = vmul.f32 %v1723_v34, %v4958_v63  ;;  %v1737_v6 = vmul.f32 %v1736_v42, %v4945_v21  ;;  %v5049_v53 = vld [vmem:[#allocation2 + $0x67] sm:$0xff] }
 0x1fb   : > { %1661 = vrot.lane.b32.xlu1 %v1656_v19, %s4120_s6  ;;  %1672 = vrot.lane.b32.xlu0 %v1668_v5, %s4120_s6  ;;  %v1779_v48 = vstv %s5031_s7  ;;  %v1356_v34 = vstv %s5080_s17  ;;  %s5145_s7 = sld [smem:[#allocation7 + $0x43]] }
 0x1fc   : > { %v4994_v17 = vadd.f32 %v1205_v15, %v1157_v14  ;;  %v4996_v0 = vadd.f32 %v1209_v58, %v1169_v25  ;;  %v1780_v14 = vmul.f32 %v1779_v48, %v5049_v53  ;;  %v5062_v25 = vld [vmem:[#allocation2 + $0x6f] sm:$0xff]  ;;  %v1792_v15 = vstv %s5041_s8  ;;  %s5149_s8 = sld [smem:[#allocation7 + $0x15]] }
 0x1fd   : > { %v1166_v49 = vpop.permute.xlu1 %1165  ;;  %v1177_v32 = vpop.permute.xlu0 %1176  ;;  %v1341_v58 = vstv %s5045_s9  ;;  %s5156_s9 = sld [smem:[#allocation7 + $0x67]] }
 0x1fe   : > { %v1170_v62 = vadd.f32 %v1166_v49, %v1114_v47  ;;  %v1182_v28 = vadd.f32 %v1177_v32, %v1126_v16  ;;  %v1781_v49 = vmul.f32 %v1779_v48, %v5062_v25  ;;  %v1793_v32 = vmul.f32 %v1792_v15, %v5049_v53  ;;  %s5193_s17 = sld [smem:[#allocation7 + $0x44]] }
 0x1ff   : > { %1674 = vrot.lane.b32.xlu1 %v1669_v24, %s4120_s6  ;;  %1685 = vrot.lane.b32.xlu0 %v1681_v26, %s4120_s6  ;;  %v1805_v26 = vstv %s5052_s11  ;;  %v1342_v9 = vmul.f32 %v1341_v58, %v4737_v3  ;;  %s5160_s11 = sld [smem:[#allocation7 + $0x39]] }
 0x200   : > { %v5010_v33 = vadd.f32 %v1210_v8, %v1170_v62  ;;  %v5012_v36 = vadd.f32 %v1214_v12, %v1182_v28  ;;  %v1346_v62 = vstv %s5056_s12  ;;  %s5164_s12 = sld [smem:[#allocation7 + $0x8b]] }
 0x201   : > { %v1179_v38 = vpop.permute.xlu1 %1178  ;;  %v1190_v39 = vpop.permute.xlu0 %1189 }
 0x202   : > { %v1183_v45 = vadd.f32 %v1179_v38, %v1127_v51  ;;  %v1195_v46 = vadd.f32 %v1190_v39, %v1139_v27  ;;  %v1794_v51 = vmul.f32 %v1792_v15, %v5062_v25  ;;  %v1806_v27 = vmul.f32 %v1805_v26, %v5049_v53 }
 0x203   : > { %1687 = vrot.lane.b32.xlu1 %v1682_v55, %s4120_s6  ;;  %1702 = vrot.lane.b32.xlu0 %v1698_v40, %s4121_s10  ;;  %v1818_v38 = vstv %s5060_s13  ;;  %v1343_v40 = vmul.f32 %v1341_v58, %v4750_v2  ;;  %s5172_s13 = sld [smem:[#allocation7 + $0x5d]] }
 0x204   : > { %v5024_v44 = vadd.f32 %v1215_v18, %v1183_v45  ;;  %v5026_v54 = vadd.f32 %v1219_v22, %v1195_v46 }
 0x205   : > { %v1192_v56 = vpop.permute.xlu1 %1191  ;;  %v1233_v57 = vpop.permute.xlu0 %1232 }
 0x206   : > { %v1196_v41 = vadd.f32 %v1192_v56, %v1140_v61  ;;  %v1238_v31 = vadd.f32 %v1233_v57, %v4980_v52  ;;  %v1807_v56 = vmul.f32 %v1805_v26, %v5062_v25  ;;  %v1819_v57 = vmul.f32 %v1818_v38, %v5049_v53 }
 0x207   : > { %1704 = vrot.lane.b32.xlu1 %v1699_v30, %s4121_s10  ;;  %1715 = vrot.lane.b32.xlu0 %v1711_v10, %s4121_s10  ;;  %v1835_v30 = vstv %s5073_s15  ;;  %s5184_s15 = sld [smem:[#allocation7 + $0x81]] }
 0x208   : > { %v5036_v7 = vadd.f32 %v1220_v29, %v1196_v41  ;;  %v1837_v58 = vmul.f32 %v1835_v30, %v5062_v25 }
 0x209   : > { %v1235_v23 = vpop.permute.xlu1 %1234  ;;  %v1246_v59 = vpop.permute.xlu0 %1245 }
 0x20a   : > { %v1239_v52 = vadd.f32 %v1235_v23, %v4994_v17  ;;  %v1251_v28 = vadd.f32 %v1246_v59, %v4996_v0  ;;  %v1347_v17 = vmul.f32 %v1346_v62, %v4737_v3  ;;  %v1351_v0 = vstv %s5068_s14  ;;  %s5177_s14 = sld [smem:[#allocation7 + $0x20]] }
 0x20b   : > { %1717 = vrot.lane.b32.xlu1 %v1712_v1, %s4121_s10  ;;  %1728 = vrot.lane.b32.xlu0 %v1724_v4, %s4121_s10 }
 0x20d   : > { %v1248_v37 = vpop.permute.xlu1 %1247  ;;  %v1259_v43 = vpop.permute.xlu0 %1258 }
 0x20e   : > { %v1252_v60 = vadd.f32 %v1248_v37, %v5010_v33  ;;  %v1264_v45 = vadd.f32 %v1259_v43, %v5012_v36  ;;  %v1348_v33 = vmul.f32 %v1346_v62, %v4750_v2  ;;  %v1352_v36 = vmul.f32 %v1351_v0, %v4737_v3 }
 0x20f   : > { %1730 = vrot.lane.b32.xlu1 %v1725_v20, %s4121_s10  ;;  %1741 = vrot.lane.b32.xlu0 %v1737_v6, %s4121_s10  ;;  %v1820_v37 = vmul.f32 %v1818_v38, %v5062_v25  ;;  %v1836_v43 = vmul.f32 %v1835_v30, %v5049_v53  ;;  %v1848_v20 = vstv %s5089_s23  ;;  %s5209_s23 = sld [smem:[#allocation7 + $0x68]] }
 0x211   : > { %v1261_v19 = vpop.permute.xlu1 %1260  ;;  %v1272_v5 = vpop.permute.xlu0 %1271 }
 0x212   : > { %v1265_v29 = vadd.f32 %v1261_v19, %v5024_v44  ;;  %v1277_v23 = vadd.f32 %v1272_v5, %v5026_v54  ;;  %v1353_v44 = vmul.f32 %v1351_v0, %v4750_v2  ;;  %v1357_v54 = vmul.f32 %v1356_v34, %v4737_v3 }
 0x213   : > { %1743 = vrot.lane.b32.xlu1 %v1738_v13, %s4121_s10  ;;  %1784 = vrot.lane.b32.xlu0 %v1780_v14, %s4120_s6  ;;  %v1358_v3 = vmul.f32 %v1356_v34, %v4750_v2 }
 0x215   : > { %v1274_v47 = vpop.permute.xlu1 %1273  ;;  %v1289_v16 = vpop.permute.xlu0 %1288 }
 0x216   : > { %v1294_v24 = vadd.f32 %v1289_v16, %v1238_v31  ;;  %v1278_v19 = vadd.f32 %v1274_v47, %v5036_v7  ;;  %v1849_v31 = vmul.f32 %v1848_v20, %v5049_v53 }
 0x217   : > { %1786 = vrot.lane.b32.xlu1 %v1781_v49, %s4120_s6  ;;  %1797 = vrot.lane.b32.xlu0 %v1793_v32, %s4120_s6  ;;  %v1861_v49 = vstv %s5105_s25  ;;  %s5225_s25 = sld [smem:[#allocation7 + $0x8c]] }
 0x218   : > { %v5084_v8 = vadd.f32 %v1342_v9, %v1294_v24  ;;  %v1850_v24 = vmul.f32 %v1848_v20, %v5062_v25  ;;  %v1862_v26 = vmul.f32 %v1861_v49, %v5049_v53  ;;  %v1874_v9 = vstv %s5121_s26  ;;  %s5239_s26 = sld [smem:[#allocation7 + $0x22]] }
 0x219   : > { %v1291_v12 = vpop.permute.xlu1 %1290  ;;  %v1302_v11 = vpop.permute.xlu0 %1301  ;;  %v1876_v38 = vmul.f32 %v1874_v9, %v5062_v25 }
 0x21a   : > { %v1295_v39 = vadd.f32 %v1291_v12, %v1239_v52  ;;  %v1307_v55 = vadd.f32 %v1302_v11, %v1251_v28  ;;  %v1863_v52 = vmul.f32 %v1861_v49, %v5062_v25  ;;  %v1875_v28 = vmul.f32 %v1874_v9, %v5049_v53  ;;  %v5153_v12 = vld [vmem:[#allocation2 + $0x68] sm:$0xff] }
 0x21b   : > { %1799 = vrot.lane.b32.xlu1 %v1794_v51, %s4120_s6  ;;  %1810 = vrot.lane.b32.xlu0 %v1806_v27, %s4120_s6  ;;  %v1917_v11 = vstv %s5135_s30  ;;  %v1494_v49 = vstv %s5184_s15  ;;  %s5249_s30 = sld [smem:[#allocation7 + $0x46]] }
 0x21c   : > { %v5098_v46 = vadd.f32 %v1343_v40, %v1295_v39  ;;  %v5100_v18 = vadd.f32 %v1347_v17, %v1307_v55  ;;  %v1918_v39 = vmul.f32 %v1917_v11, %v5153_v12  ;;  %v5166_v55 = vld [vmem:[#allocation2 + $0x70] sm:$0xff]  ;;  %v1930_v40 = vstv %s5145_s7  ;;  %s5253_s7 = sld [smem:[#allocation7 + $0x18]] }
 0x21d   : > { %v1304_v22 = vpop.permute.xlu1 %1303  ;;  %v1315_v61 = vpop.permute.xlu0 %1314  ;;  %v1479_v17 = vstv %s5149_s8  ;;  %s5260_s8 = sld [smem:[#allocation7 + $0x6a]] }
 0x21e   : > { %v1308_v10 = vadd.f32 %v1304_v22, %v1252_v60  ;;  %v1320_v41 = vadd.f32 %v1315_v61, %v1264_v45  ;;  %v1919_v22 = vmul.f32 %v1917_v11, %v5166_v55  ;;  %v1931_v61 = vmul.f32 %v1930_v40, %v5153_v12  ;;  %s5297_s15 = sld [smem:[#allocation7 + $0x47]] }
 0x21f   : > { %1812 = vrot.lane.b32.xlu1 %v1807_v56, %s4120_s6  ;;  %1823 = vrot.lane.b32.xlu0 %v1819_v57, %s4120_s6  ;;  %v1943_v57 = vstv %s5156_s9  ;;  %v1480_v30 = vmul.f32 %v1479_v17, %v4841_v50  ;;  %s5264_s9 = sld [smem:[#allocation7 + $0x3c]] }
 0x220   : > { %v5114_v59 = vadd.f32 %v1348_v33, %v1308_v10  ;;  %v5116_v1 = vadd.f32 %v1352_v36, %v1320_v41  ;;  %v1484_v10 = vstv %s5160_s11  ;;  %s5268_s11 = sld [smem:[#allocation7 + $0x8e]] }
 0x221   : > { %v1317_v4 = vpop.permute.xlu1 %1316  ;;  %v1328_v42 = vpop.permute.xlu0 %1327 }
 0x222   : > { %v1321_v6 = vadd.f32 %v1317_v4, %v1265_v29  ;;  %v1333_v48 = vadd.f32 %v1328_v42, %v1277_v23  ;;  %v1932_v29 = vmul.f32 %v1930_v40, %v5166_v55  ;;  %v1944_v23 = vmul.f32 %v1943_v57, %v5153_v12 }
 0x223   : > { %1825 = vrot.lane.b32.xlu1 %v1820_v37, %s4120_s6  ;;  %1840 = vrot.lane.b32.xlu0 %v1836_v43, %s4121_s10  ;;  %v1956_v4 = vstv %s5164_s12  ;;  %v1481_v43 = vmul.f32 %v1479_v17, %v4854_v35  ;;  %s5276_s12 = sld [smem:[#allocation7 + $0x60]] }
 0x224   : > { %v5128_v5 = vadd.f32 %v1353_v44, %v1321_v6  ;;  %v5130_v13 = vadd.f32 %v1357_v54, %v1333_v48 }
 0x225   : > { %v1330_v14 = vpop.permute.xlu1 %1329  ;;  %v1371_v15 = vpop.permute.xlu0 %1370 }
 0x226   : > { %v1334_v16 = vadd.f32 %v1330_v14, %v1278_v19  ;;  %v1376_v0 = vadd.f32 %v1371_v15, %v5084_v8  ;;  %v1945_v14 = vmul.f32 %v1943_v57, %v5166_v55  ;;  %v1957_v15 = vmul.f32 %v1956_v4, %v5153_v12 }
 0x227   : > { %1842 = vrot.lane.b32.xlu1 %v1837_v58, %s4121_s10  ;;  %1853 = vrot.lane.b32.xlu0 %v1849_v31, %s4121_s10  ;;  %v1973_v58 = vstv %s5177_s14  ;;  %s5288_s14 = sld [smem:[#allocation7 + $0x84]] }
 0x228   : > { %v5140_v7 = vadd.f32 %v1358_v3, %v1334_v16  ;;  %v1975_v17 = vmul.f32 %v1973_v58, %v5166_v55 }
 0x229   : > { %v1373_v47 = vpop.permute.xlu1 %1372  ;;  %v1384_v32 = vpop.permute.xlu0 %1383 }
 0x22a   : > { %v1377_v8 = vadd.f32 %v1373_v47, %v5098_v46  ;;  %v1389_v41 = vadd.f32 %v1384_v32, %v5100_v18  ;;  %v1485_v46 = vmul.f32 %v1484_v10, %v4841_v50  ;;  %v1489_v18 = vstv %s5172_s13  ;;  %s5281_s13 = sld [smem:[#allocation7 + $0x23]] }
 0x22b   : > { %1855 = vrot.lane.b32.xlu1 %v1850_v24, %s4121_s10  ;;  %1866 = vrot.lane.b32.xlu0 %v1862_v26, %s4121_s10 }
 0x22d   : > { %v1386_v2 = vpop.permute.xlu1 %1385  ;;  %v1397_v62 = vpop.permute.xlu0 %1396 }
 0x22e   : > { %v1390_v20 = vadd.f32 %v1386_v2, %v5114_v59  ;;  %v1402_v6 = vadd.f32 %v1397_v62, %v5116_v1  ;;  %v1486_v59 = vmul.f32 %v1484_v10, %v4854_v35  ;;  %v1490_v1 = vmul.f32 %v1489_v18, %v4841_v50 }
 0x22f   : > { %1868 = vrot.lane.b32.xlu1 %v1863_v52, %s4121_s10  ;;  %1879 = vrot.lane.b32.xlu0 %v1875_v28, %s4121_s10  ;;  %v1958_v2 = vmul.f32 %v1956_v4, %v5166_v55  ;;  %v1974_v62 = vmul.f32 %v1973_v58, %v5153_v12  ;;  %v1986_v52 = vstv %s5193_s17  ;;  %s5313_s17 = sld [smem:[#allocation7 + $0x6b]] }
 0x231   : > { %v1399_v51 = vpop.permute.xlu1 %1398  ;;  %v1410_v27 = vpop.permute.xlu0 %1409 }
 0x232   : > { %v1403_v3 = vadd.f32 %v1399_v51, %v5128_v5  ;;  %v1415_v47 = vadd.f32 %v1410_v27, %v5130_v13  ;;  %v1491_v5 = vmul.f32 %v1489_v18, %v4854_v35  ;;  %v1495_v13 = vmul.f32 %v1494_v49, %v4841_v50 }
 0x233   : > { %1881 = vrot.lane.b32.xlu1 %v1876_v38, %s4121_s10  ;;  %1922 = vrot.lane.b32.xlu0 %v1918_v39, %s4120_s6  ;;  %v1496_v50 = vmul.f32 %v1494_v49, %v4854_v35 }
 0x235   : > { %v1412_v60 = vpop.permute.xlu1 %1411  ;;  %v1427_v45 = vpop.permute.xlu0 %1426 }
 0x236   : > { %v1432_v56 = vadd.f32 %v1427_v45, %v1376_v0  ;;  %v1416_v51 = vadd.f32 %v1412_v60, %v5140_v7  ;;  %v1987_v0 = vmul.f32 %v1986_v52, %v5153_v12 }
 0x237   : > { %1924 = vrot.lane.b32.xlu1 %v1919_v22, %s4120_s6  ;;  %1935 = vrot.lane.b32.xlu0 %v1931_v61, %s4120_s6  ;;  %v1999_v22 = vstv %s5209_s23  ;;  %s5329_s23 = sld [smem:[#allocation7 + $0x8f]] }
 0x238   : > { %v5188_v33 = vadd.f32 %v1480_v30, %v1432_v56  ;;  %v1988_v56 = vmul.f32 %v1986_v52, %v5166_v55  ;;  %v2000_v57 = vmul.f32 %v1999_v22, %v5153_v12  ;;  %v2012_v30 = vstv %s5225_s25  ;;  %s3755_s25 = sld [smem:[#allocation7 + $0x1b]] }
 0x239   : > { %v1429_v36 = vpop.permute.xlu1 %1428  ;;  %v1440_v34 = vpop.permute.xlu0 %1439  ;;  %v2014_v4 = vmul.f32 %v2012_v30, %v5166_v55 }
 0x23a   : > { %v1433_v42 = vadd.f32 %v1429_v36, %v1377_v8  ;;  %v1445_v37 = vadd.f32 %v1440_v34, %v1389_v41  ;;  %v2001_v8 = vmul.f32 %v1999_v22, %v5166_v55  ;;  %v2013_v41 = vmul.f32 %v2012_v30, %v5153_v12  ;;  %v5257_v36 = vld [vmem:[#allocation2 + $0x69] sm:$0xff] }
 0x23b   : > { %1937 = vrot.lane.b32.xlu1 %v1932_v29, %s4120_s6  ;;  %1948 = vrot.lane.b32.xlu0 %v1944_v23, %s4120_s6  ;;  %v2055_v34 = vstv %s5239_s26  ;;  %v1632_v22 = vstv %s5288_s14  ;;  %s5351_s26 = sld [smem:[#allocation7 + $0x3f]] }
 0x23c   : > { %v5202_v48 = vadd.f32 %v1481_v43, %v1433_v42  ;;  %v5204_v44 = vadd.f32 %v1485_v46, %v1445_v37  ;;  %v2056_v42 = vmul.f32 %v2055_v34, %v5257_v36  ;;  %v5270_v37 = vld [vmem:[#allocation2 + $0x71] sm:$0xff]  ;;  %v2068_v43 = vstv %s5249_s30  ;;  %s5355_s30 = sld [smem:[#allocation7 + $0x63]] }
 0x23d   : > { %v1442_v54 = vpop.permute.xlu1 %1441  ;;  %v1453_v19 = vpop.permute.xlu0 %1452  ;;  %v1617_v46 = vstv %s5253_s7  ;;  %s5360_s7 = sld [smem:[#allocation7 + $0x87]] }
 0x23e   : > { %v1446_v31 = vadd.f32 %v1442_v54, %v1390_v20  ;;  %v1458_v16 = vadd.f32 %v1453_v19, %v1402_v6  ;;  %v2057_v54 = vmul.f32 %v2055_v34, %v5270_v37  ;;  %v2069_v19 = vmul.f32 %v2068_v43, %v5257_v36  ;;  %s3780_s14 = sld [smem:[#allocation7 + $0x45]] }
 0x23f   : > { %1950 = vrot.lane.b32.xlu1 %v1945_v14, %s4120_s6  ;;  %1961 = vrot.lane.b32.xlu0 %v1957_v15, %s4120_s6  ;;  %v2081_v15 = vstv %s5260_s8  ;;  %v1618_v58 = vmul.f32 %v1617_v46, %v4945_v21  ;;  %s3767_s8 = sld [smem:[#allocation7 + $0x1e]] }
 0x240   : > { %v5218_v32 = vadd.f32 %v1486_v59, %v1446_v31  ;;  %v5220_v24 = vadd.f32 %v1490_v1, %v1458_v16  ;;  %v1622_v31 = vstv %s5264_s9  ;;  %s3768_s9 = sld [smem:[#allocation7 + $0x42]] }
 0x241   : > { %v1455_v26 = vpop.permute.xlu1 %1454  ;;  %v1466_v9 = vpop.permute.xlu0 %1465 }
 0x242   : > { %v1459_v28 = vadd.f32 %v1455_v26, %v1403_v3  ;;  %v1471_v11 = vadd.f32 %v1466_v9, %v1415_v47  ;;  %v2070_v3 = vmul.f32 %v2068_v43, %v5270_v37  ;;  %v2082_v47 = vmul.f32 %v2081_v15, %v5257_v36 }
 0x243   : > { %1963 = vrot.lane.b32.xlu1 %v1958_v2, %s4120_s6  ;;  %1978 = vrot.lane.b32.xlu0 %v1974_v62, %s4121_s10  ;;  %v2094_v26 = vstv %s5268_s11  ;;  %v1619_v62 = vmul.f32 %v1617_v46, %v4958_v63  ;;  %s5375_s11 = sld [smem:[#allocation7 + $0x66]] }
 0x244   : > { %v5232_v27 = vadd.f32 %v1491_v5, %v1459_v28  ;;  %v5234_v38 = vadd.f32 %v1495_v13, %v1471_v11 }
 0x245   : > { %v1468_v39 = vpop.permute.xlu1 %1467  ;;  %v1509_v40 = vpop.permute.xlu0 %1508 }
 0x246   : > { %v1472_v45 = vadd.f32 %v1468_v39, %v1416_v51  ;;  %v1514_v18 = vadd.f32 %v1509_v40, %v5188_v33  ;;  %v2083_v39 = vmul.f32 %v2081_v15, %v5270_v37  ;;  %v2095_v40 = vmul.f32 %v2094_v26, %v5257_v36 }
 0x247   : > { %1980 = vrot.lane.b32.xlu1 %v1975_v17, %s4121_s10  ;;  %1991 = vrot.lane.b32.xlu0 %v1987_v0, %s4121_s10  ;;  %v2111_v17 = vstv %s5281_s13  ;;  %s3779_s13 = sld [smem:[#allocation7 + $0x21]] }
 0x248   : > { %v5244_v7 = vadd.f32 %v1496_v50, %v1472_v45  ;;  %v2113_v46 = vmul.f32 %v2111_v17, %v5270_v37 }
 0x249   : > { %v1511_v60 = vpop.permute.xlu1 %1510  ;;  %v1522_v61 = vpop.permute.xlu0 %1521 }
 0x24a   : > { %v1515_v33 = vadd.f32 %v1511_v60, %v5202_v48  ;;  %v1527_v16 = vadd.f32 %v1522_v61, %v5204_v44  ;;  %v1623_v48 = vmul.f32 %v1622_v31, %v4945_v21  ;;  %v1627_v44 = vstv %s5276_s12  ;;  %s5378_s12 = sld [smem:[#allocation7 + $0x8a]] }
 0x24b   : > { %1993 = vrot.lane.b32.xlu1 %v1988_v56, %s4121_s10  ;;  %2004 = vrot.lane.b32.xlu0 %v2000_v57, %s4121_s10 }
 0x24d   : > { %v1524_v35 = vpop.permute.xlu1 %1523  ;;  %v1535_v10 = vpop.permute.xlu0 %1534 }
 0x24e   : > { %v1528_v52 = vadd.f32 %v1524_v35, %v5218_v32  ;;  %v1540_v28 = vadd.f32 %v1535_v10, %v5220_v24  ;;  %v1624_v32 = vmul.f32 %v1622_v31, %v4958_v63  ;;  %v1628_v24 = vmul.f32 %v1627_v44, %v4945_v21 }
 0x24f   : > { %2006 = vrot.lane.b32.xlu1 %v2001_v8, %s4121_s10  ;;  %2017 = vrot.lane.b32.xlu0 %v2013_v41, %s4121_s10  ;;  %v2096_v35 = vmul.f32 %v2094_v26, %v5270_v37  ;;  %v2112_v10 = vmul.f32 %v2111_v17, %v5257_v36  ;;  %v2124_v8 = vstv %s5297_s15  ;;  %s5389_s15 = sld [smem:[#allocation7 + $0x69]] }
 0x251   : > { %v1537_v29 = vpop.permute.xlu1 %1536  ;;  %v1548_v23 = vpop.permute.xlu0 %1547 }
 0x252   : > { %v1541_v50 = vadd.f32 %v1537_v29, %v5232_v27  ;;  %v1553_v60 = vadd.f32 %v1548_v23, %v5234_v38  ;;  %v1629_v27 = vmul.f32 %v1627_v44, %v4958_v63  ;;  %v1633_v38 = vmul.f32 %v1632_v22, %v4945_v21 }
 0x253   : > { %2019 = vrot.lane.b32.xlu1 %v2014_v4, %s4121_s10  ;;  %2060 = vrot.lane.b32.xlu0 %v2056_v42, %s4120_s6  ;;  %v1760_v44 = vstv %s5351_s26  ;;  %s5403_s26 = sld [smem:[#allocation7 + $0x92]] }
 0x255   : > { %v1550_v20 = vpop.permute.xlu1 %1549  ;;  %v1565_v6 = vpop.permute.xlu0 %1564 }
 0x256   : > { %v1570_v14 = vadd.f32 %v1565_v6, %v1514_v18  ;;  %v1554_v29 = vadd.f32 %v1550_v20, %v5244_v7  ;;  %v2125_v18 = vmul.f32 %v2124_v8, %v5257_v36  ;;  %v2126_v20 = vmul.f32 %v2124_v8, %v5270_v37 }
 0x257   : > { %2062 = vrot.lane.b32.xlu1 %v2057_v54, %s4120_s6  ;;  %2073 = vrot.lane.b32.xlu0 %v2069_v19, %s4120_s6  ;;  %v2137_v54 = vstv %s5313_s17  ;;  %v1634_v19 = vmul.f32 %v1632_v22, %v4958_v63  ;;  %s5392_s17 = sld [smem:[#allocation7 + $0x8d]] }
 0x258   : > { %v5292_v59 = vadd.f32 %v1618_v58, %v1570_v14  ;;  %v2138_v15 = vmul.f32 %v2137_v54, %v5257_v36  ;;  %v2150_v58 = vstv %s5329_s23  ;;  %v2139_v63 = vmul.f32 %v2137_v54, %v5270_v37  ;;  %s3791_s23 = sld [smem:[#allocation7 + $0x90]] }
 0x259   : > { %v1567_v1 = vpop.permute.xlu1 %1566  ;;  %v1578_v49 = vpop.permute.xlu0 %1577 }
 0x25a   : > { %v1571_v9 = vadd.f32 %v1567_v1, %v1515_v33  ;;  %v1583_v2 = vadd.f32 %v1578_v49, %v1527_v16  ;;  %v2151_v16 = vmul.f32 %v2150_v58, %v5257_v36 }
 0x25b   : > { %2075 = vrot.lane.b32.xlu1 %v2070_v3, %s4120_s6  ;;  %2086 = vrot.lane.b32.xlu0 %v2082_v47, %s4120_s6  ;;  %v2152_v3 = vmul.f32 %v2150_v58, %v5270_v37  ;;  %v1755_v47 = vstv %s3755_s25  ;;  %s3792_s25 = sld [smem:[#allocation7 + $0x91]] }
 0x25c   : > { %v5306_v11 = vadd.f32 %v1619_v62, %v1571_v9  ;;  %v5308_v5 = vadd.f32 %v1623_v48, %v1583_v2  ;;  %v1756_v48 = vmul.f32 %v1755_v47, %v5049_v53 }
 0x25d   : > { %v1580_v13 = vpop.permute.xlu1 %1579  ;;  %v1591_v51 = vpop.permute.xlu0 %1590 }
 0x25e   : > { %v1584_v0 = vadd.f32 %v1580_v13, %v1528_v52  ;;  %v1596_v45 = vadd.f32 %v1591_v51, %v1540_v28 }
 0x25f   : > { %2088 = vrot.lane.b32.xlu1 %v2083_v39, %s4120_s6  ;;  %2099 = vrot.lane.b32.xlu0 %v2095_v40, %s4120_s6 }
 0x260   : > { %v5322_v61 = vadd.f32 %v1624_v32, %v1584_v0  ;;  %v5324_v56 = vadd.f32 %v1628_v24, %v1596_v45  ;;  %v1761_v0 = vmul.f32 %v1760_v44, %v5049_v53  ;;  %v1765_v45 = vstv %s5355_s30  ;;  %s5405_s30 = sld [smem:[#allocation7 + $0x93]] }
 0x261   : > { %v1593_v57 = vpop.permute.xlu1 %1592  ;;  %v1604_v30 = vpop.permute.xlu0 %1603 }
 0x262   : > { %v1597_v41 = vadd.f32 %v1593_v57, %v1541_v50  ;;  %v1609_v34 = vadd.f32 %v1604_v30, %v1553_v60  ;;  %v1762_v30 = vmul.f32 %v1760_v44, %v5062_v25 }
 0x263   : > { %2101 = vrot.lane.b32.xlu1 %v2096_v35, %s4120_s6  ;;  %2116 = vrot.lane.b32.xlu0 %v2112_v10, %s4121_s10  ;;  %v1766_v35 = vmul.f32 %v1765_v45, %v5049_v53  ;;  %v1770_v10 = vstv %s5360_s7  ;;  %s3797_s7 = sld [smem:[#allocation9 + $0x1]] }
 0x264   : > { %v1631_v23 = vadd.f32 %v1629_v27, %v1597_v41  ;;  %v1635_v4 = vadd.f32 %v1633_v38, %v1609_v34 }
 0x265   : > { %v1606_v42 = vpop.permute.xlu1 %1605  ;;  %v1647_v43 = vpop.permute.xlu0 %1646 }
 0x266   : > { %v1610_v6 = vadd.f32 %v1606_v42, %v1554_v29  ;;  %v1652_v26 = vadd.f32 %v1647_v43, %v5292_v59  ;;  %v1757_v59 = vmul.f32 %v1755_v47, %v5062_v25  ;;  %v1771_v43 = vmul.f32 %v1770_v10, %v5049_v53 }
 0x267   : > { %2118 = vrot.lane.b32.xlu1 %v2113_v46, %s4121_s10  ;;  %2129 = vrot.lane.b32.xlu0 %v2125_v18, %s4121_s10 }
 0x268   : > { %v1636_v21 = vadd.f32 %v1634_v19, %v1610_v6 }
 0x269   : > { %v1649_v14 = vpop.permute.xlu1 %1648  ;;  %v1660_v7 = vpop.permute.xlu0 %1659 }
 0x26a   : > { %v1653_v52 = vadd.f32 %v1649_v14, %v5306_v11  ;;  %v1665_v28 = vadd.f32 %v1660_v7, %v5308_v5  ;;  %v1772_v7 = vmul.f32 %v1770_v10, %v5062_v25 }
 0x26b   : > { %2131 = vrot.lane.b32.xlu1 %v2126_v20, %s4121_s10  ;;  %2142 = vrot.lane.b32.xlu0 %v2138_v15, %s4121_s10 }
 0x26d   : > { %v1662_v31 = vpop.permute.xlu1 %1661  ;;  %v1673_v33 = vpop.permute.xlu0 %1672 }
 0x26e   : > { %v1666_v32 = vadd.f32 %v1662_v31, %v5322_v61  ;;  %v1678_v24 = vadd.f32 %v1673_v33, %v5324_v56  ;;  %v1767_v56 = vmul.f32 %v1765_v45, %v5062_v25  ;;  %v1898_v25 = vstv %s3768_s9  ;;  %s3799_s9 = sld [smem:[#allocation9 + $0x49]] }
 0x26f   : > { %2144 = vrot.lane.b32.xlu1 %v2139_v63, %s4121_s10  ;;  %2155 = vrot.lane.b32.xlu0 %v2151_v16, %s4121_s10  ;;  %v1893_v63 = vstv %s3767_s8  ;;  %s3798_s8 = sld [smem:[#allocation9 + $0x25]] }
 0x270   : > { %v1895_v44 = vmul.f32 %v1893_v63, %v5166_v55 }
 0x271   : > { %v1675_v1 = vpop.permute.xlu1 %1674  ;;  %v1686_v49 = vpop.permute.xlu0 %1685 }
 0x272   : > { %v1679_v8 = vadd.f32 %v1675_v1, %v1631_v23  ;;  %v1691_v41 = vadd.f32 %v1686_v49, %v1635_v4  ;;  %v1894_v49 = vmul.f32 %v1893_v63, %v5153_v12 }
 0x273   : > { %2157 = vrot.lane.b32.xlu1 %v2152_v3, %s4121_s10 }
 0x275   : > { %v1688_v9 = vpop.permute.xlu1 %1687  ;;  %v1703_v2 = vpop.permute.xlu0 %1702 }
 0x276   : > { %v1708_v62 = vadd.f32 %v1703_v2, %v1652_v26  ;;  %v1692_v46 = vadd.f32 %v1688_v9, %v1636_v21 }
 0x278   : > { %v1758_v13 = vadd.f32 %v1756_v48, %v1708_v62 }
 0x279   : > { %v1705_v51 = vpop.permute.xlu1 %1704  ;;  %v1716_v39 = vpop.permute.xlu0 %1715 }
 0x27a   : > { %v1709_v40 = vadd.f32 %v1705_v51, %v1653_v52  ;;  %v1721_v17 = vadd.f32 %v1716_v39, %v1665_v28  ;;  %v1899_v52 = vmul.f32 %v1898_v25, %v5153_v12  ;;  %v1903_v28 = vstv %s5375_s11  ;;  %s3801_s11 = sld [smem:[#allocation9 + $0x26]] }
 0x27c   : > { %v1759_v22 = vadd.f32 %v1757_v59, %v1709_v40  ;;  %v1763_v50 = vadd.f32 %v1761_v0, %v1721_v17 }
 0x27d   : > { %v1718_v11 = vpop.permute.xlu1 %1717  ;;  %v1729_v60 = vpop.permute.xlu0 %1728 }
 0x27e   : > { %v1722_v5 = vadd.f32 %v1718_v11, %v1666_v32  ;;  %v1734_v57 = vadd.f32 %v1729_v60, %v1678_v24  ;;  %v1900_v32 = vmul.f32 %v1898_v25, %v5166_v55  ;;  %v1904_v24 = vmul.f32 %v1903_v28, %v5153_v12 }
 0x27f   : > { %v2041_v25 = vstv %s5389_s15  ;;  %s3808_s15 = sld [smem:[#allocation9 + $0x4c]] }
 0x280   : > { %v1764_v34 = vadd.f32 %v1762_v30, %v1722_v5  ;;  %v1768_v27 = vadd.f32 %v1766_v35, %v1734_v57 }
 0x281   : > { %v1731_v38 = vpop.permute.xlu1 %1730  ;;  %v1742_v29 = vpop.permute.xlu0 %1741 }
 0x282   : > { %v1735_v61 = vadd.f32 %v1731_v38, %v1679_v8  ;;  %v1747_v42 = vadd.f32 %v1742_v29, %v1691_v41  ;;  %v1905_v8 = vmul.f32 %v1903_v28, %v5166_v55  ;;  %v2042_v28 = vmul.f32 %v2041_v25, %v5257_v36 }
 0x284   : > { %v1769_v18 = vadd.f32 %v1767_v56, %v1735_v61  ;;  %v1773_v6 = vadd.f32 %v1771_v43, %v1747_v42 }
 0x285   : > { %v1744_v54 = vpop.permute.xlu1 %1743  ;;  %v1785_v19 = vpop.permute.xlu0 %1784 }
 0x286   : > { %v1748_v14 = vadd.f32 %v1744_v54, %v1692_v46  ;;  %v1790_v53 = vadd.f32 %v1785_v19, %v1758_v13 }
 0x288   : > { %v1774_v23 = vadd.f32 %v1772_v7, %v1748_v14  ;;  %v2031_v7 = vstv %s3779_s13  ;;  %s3806_s13 = sld [smem:[#allocation9 + $0x4]] }
 0x289   : > { %v1787_v4 = vpop.permute.xlu1 %1786  ;;  %v1798_v20 = vpop.permute.xlu0 %1797 }
 0x28a   : > { %v1791_v3 = vadd.f32 %v1787_v4, %v1759_v22  ;;  %v1803_v47 = vadd.f32 %v1798_v20, %v1763_v50  ;;  %v1908_v22 = vstv %s5378_s12  ;;  %s3802_s12 = sld [smem:[#allocation9 + $0x4a]] }
 0x28b   : > { %v1909_v41 = vmul.f32 %v1908_v22, %v5153_v12  ;;  %v1910_v56 = vmul.f32 %v1908_v22, %v5166_v55  ;;  %v2036_v55 = vstv %s3780_s14  ;;  %s3807_s14 = sld [smem:[#allocation9 + $0x28]] }
 0x28d   : > { %v1800_v15 = vpop.permute.xlu1 %1799  ;;  %v1811_v58 = vpop.permute.xlu0 %1810 }
 0x28e   : > { %v1804_v13 = vadd.f32 %v1800_v15, %v1764_v34  ;;  %v1816_v51 = vadd.f32 %v1811_v58, %v1768_v27  ;;  %v2032_v15 = vmul.f32 %v2031_v7, %v5257_v36 }
 0x291   : > { %v1813_v31 = vpop.permute.xlu1 %1812  ;;  %v1824_v33 = vpop.permute.xlu0 %1823 }
 0x292   : > { %v1817_v50 = vadd.f32 %v1813_v31, %v1769_v18  ;;  %v1829_v11 = vadd.f32 %v1824_v33, %v1773_v6 }
 0x295   : > { %v1826_v21 = vpop.permute.xlu1 %1825  ;;  %v1841_v16 = vpop.permute.xlu0 %1840 }
 0x296   : > { %v1846_v1 = vadd.f32 %v1841_v16, %v1790_v53  ;;  %v1830_v34 = vadd.f32 %v1826_v21, %v1774_v23 }
 0x298   : > { %v1896_v26 = vadd.f32 %v1894_v49, %v1846_v1  ;;  %v2033_v1 = vmul.f32 %v2031_v7, %v5270_v37  ;;  %v2037_v49 = vmul.f32 %v2036_v55, %v5257_v36 }
 0x299   : > { %v1843_v9 = vpop.permute.xlu1 %1842  ;;  %v1854_v2 = vpop.permute.xlu0 %1853 }
 0x29a   : > { %v1847_v62 = vadd.f32 %v1843_v9, %v1791_v3  ;;  %v1859_v48 = vadd.f32 %v1854_v2, %v1803_v47 }
 0x29c   : > { %v1897_v39 = vadd.f32 %v1895_v44, %v1847_v62  ;;  %v1901_v40 = vadd.f32 %v1899_v52, %v1859_v48  ;;  %v2038_v52 = vmul.f32 %v2036_v55, %v5270_v37  ;;  %v2193_v55 = vstv %s5403_s26  ;;  %s3815_s26 = sld [smem:[#allocation9 + $0x7]] }
 0x29d   : > { %v1856_v17 = vpop.permute.xlu1 %1855  ;;  %v1867_v59 = vpop.permute.xlu0 %1866 }
 0x29e   : > { %v1860_v0 = vadd.f32 %v1856_v17, %v1804_v13  ;;  %v1872_v45 = vadd.f32 %v1867_v59, %v1816_v51  ;;  %v2046_v13 = vstv %s5392_s17  ;;  %s3809_s17 = sld [smem:[#allocation9 + $0x5]] }
 0x29f   : > { %v2047_v22 = vmul.f32 %v2046_v13, %v5257_v36  ;;  %v2164_v36 = vstv %s3791_s23  ;;  %s3810_s23 = sld [smem:[#allocation9 + $0x29]] }
 0x2a0   : > { %v1902_v60 = vadd.f32 %v1900_v32, %v1860_v0  ;;  %v1906_v5 = vadd.f32 %v1904_v24, %v1872_v45  ;;  %v2043_v24 = vmul.f32 %v2041_v25, %v5270_v37 }
 0x2a1   : > { %v1869_v57 = vpop.permute.xlu1 %1868  ;;  %v1880_v30 = vpop.permute.xlu0 %1879 }
 0x2a2   : > { %v1873_v35 = vadd.f32 %v1869_v57, %v1817_v50  ;;  %v1885_v10 = vadd.f32 %v1880_v30, %v1829_v11 }
 0x2a4   : > { %v1907_v27 = vadd.f32 %v1905_v8, %v1873_v35  ;;  %v1911_v38 = vadd.f32 %v1909_v41, %v1885_v10  ;;  %v2048_v35 = vmul.f32 %v2046_v13, %v5270_v37 }
 0x2a5   : > { %v1882_v29 = vpop.permute.xlu1 %1881  ;;  %v1923_v61 = vpop.permute.xlu0 %1922 }
 0x2a6   : > { %v1886_v42 = vadd.f32 %v1882_v29, %v1830_v34  ;;  %v1928_v12 = vadd.f32 %v1923_v61, %v1896_v26 }
 0x2a8   : > { %v1912_v43 = vadd.f32 %v1910_v56, %v1886_v42 }
 0x2a9   : > { %v1925_v46 = vpop.permute.xlu1 %1924  ;;  %v1936_v18 = vpop.permute.xlu0 %1935 }
 0x2aa   : > { %v1929_v58 = vadd.f32 %v1925_v46, %v1897_v39  ;;  %v1941_v31 = vadd.f32 %v1936_v18, %v1901_v40 }
 0x2ad   : > { %v1938_v6 = vpop.permute.xlu1 %1937  ;;  %v1949_v54 = vpop.permute.xlu0 %1948 }
 0x2ae   : > { %v1942_v3 = vadd.f32 %v1938_v6, %v1902_v60  ;;  %v1954_v47 = vadd.f32 %v1949_v54, %v1906_v5  ;;  %v2178_v54 = vstv %s3792_s25  ;;  %s3811_s25 = sld [smem:[#allocation9 + $0x4d]] }
 0x2b1   : > { %v1951_v19 = vpop.permute.xlu1 %1950  ;;  %v1962_v14 = vpop.permute.xlu0 %1961 }
 0x2b2   : > { %v1955_v51 = vadd.f32 %v1951_v19, %v1907_v27  ;;  %v1967_v39 = vadd.f32 %v1962_v14, %v1911_v38 }
 0x2b5   : > { %v1964_v23 = vpop.permute.xlu1 %1963  ;;  %v1979_v4 = vpop.permute.xlu0 %1978 }
 0x2b6   : > { %v1984_v20 = vadd.f32 %v1979_v4, %v1928_v12  ;;  %v1968_v50 = vadd.f32 %v1964_v23, %v1912_v43 }
 0x2b8   : > { %v2034_v33 = vadd.f32 %v2032_v15, %v1984_v20 }
 0x2b9   : > { %v1981_v63 = vpop.permute.xlu1 %1980  ;;  %v1992_v53 = vpop.permute.xlu0 %1991 }
 0x2ba   : > { %v1985_v21 = vadd.f32 %v1981_v63, %v1929_v58  ;;  %v1997_v16 = vadd.f32 %v1992_v53, %v1941_v31 }
 0x2bc   : > { %v2035_v26 = vadd.f32 %v2033_v1, %v1985_v21  ;;  %v2039_v9 = vadd.f32 %v2037_v49, %v1997_v16  ;;  %v2208_v49 = vstv %s5405_s30  ;;  %s3816_s30 = sld [smem:[#allocation9 + $0x2b]] }
 0x2bd   : > { %v1994_v2 = vpop.permute.xlu1 %1993  ;;  %v2005_v62 = vpop.permute.xlu0 %2004 }
 0x2be   : > { %v1998_v48 = vadd.f32 %v1994_v2, %v1942_v3  ;;  %v2010_v44 = vadd.f32 %v2005_v62, %v1954_v47 }
 0x2c0   : > { %v2040_v40 = vadd.f32 %v2038_v52, %v1998_v48  ;;  %v2044_v17 = vadd.f32 %v2042_v28, %v2010_v44 }
 0x2c1   : > { %v2007_v59 = vpop.permute.xlu1 %2006  ;;  %v2018_v0 = vpop.permute.xlu0 %2017 }
 0x2c2   : > { %v2011_v45 = vadd.f32 %v2007_v59, %v1955_v51  ;;  %v2023_v32 = vadd.f32 %v2018_v0, %v1967_v39  ;;  %v2245_v51 = vstv %s3797_s7  ;;  %v2258_v0 = vstv %s3798_s8  ;;  %s3817_s7 = sld [smem:[#allocation9 + $0x4f]] }
 0x2c3   : > { %s3818_s8 = sld [smem:[#allocation9 + $0x8]] }
 0x2c4   : > { %v2045_v11 = vadd.f32 %v2043_v24, %v2011_v45  ;;  %v2049_v60 = vadd.f32 %v2047_v22, %v2023_v32 }
 0x2c5   : > { %v2020_v5 = vpop.permute.xlu1 %2019  ;;  %v2061_v57 = vpop.permute.xlu0 %2060 }
 0x2c6   : > { %v2024_v30 = vadd.f32 %v2020_v5, %v1968_v50  ;;  %v2066_v61 = vadd.f32 %v2061_v57, %v2034_v33 }
 0x2c8   : > { %v2050_v10 = vadd.f32 %v2048_v35, %v2024_v30 }
 0x2c9   : > { %v2063_v8 = vpop.permute.xlu1 %2062  ;;  %v2074_v41 = vpop.permute.xlu0 %2073 }
 0x2ca   : > { %v2067_v46 = vadd.f32 %v2063_v8, %v2035_v26  ;;  %v2079_v18 = vadd.f32 %v2074_v41, %v2039_v9  ;;  %v2300_v8 = vstv %s3801_s11  ;;  %s3824_s11 = sld [smem:[#allocation9 + $0xa]] }
 0x2cd   : > { %v2076_v34 = vpop.permute.xlu1 %2075  ;;  %v2087_v27 = vpop.permute.xlu0 %2086 }
 0x2ce   : > { %v2080_v12 = vadd.f32 %v2076_v34, %v2040_v40  ;;  %v2092_v23 = vadd.f32 %v2087_v27, %v2044_v17  ;;  %v2313_v27 = vstv %s3802_s12  ;;  %s3825_s12 = sld [smem:[#allocation9 + $0x2e]] }
 0x2d1   : > { %v2089_v38 = vpop.permute.xlu1 %2088  ;;  %v2100_v29 = vpop.permute.xlu0 %2099 }
 0x2d2   : > { %v2093_v63 = vadd.f32 %v2089_v38, %v2045_v11  ;;  %v2105_v53 = vadd.f32 %v2100_v29, %v2049_v60  ;;  %v2271_v11 = vstv %s3799_s9  ;;  %s3819_s9 = sld [smem:[#allocation9 + $0x2c]] }
 0x2d5   : > { %v2102_v42 = vpop.permute.xlu1 %2101  ;;  %v2117_v56 = vpop.permute.xlu0 %2116 }
 0x2d6   : > { %v2122_v43 = vadd.f32 %v2117_v56, %v2066_v61  ;;  %v2106_v26 = vadd.f32 %v2102_v42, %v2050_v10  ;;  %v2349_v42 = vstv %s3806_s13  ;;  %s3826_s13 = sld [smem:[#allocation9 + $0x52]] }
 0x2d8   : > { %v2165_v37 = vadd.f32 %v2164_v36, %v2122_v43 }
 0x2d9   : > { %v2119_v6 = vpop.permute.xlu1 %2118  ;;  %v2130_v19 = vpop.permute.xlu0 %2129 }
 0x2da   : > { %v2123_v14 = vadd.f32 %v2119_v6, %v2067_v46  ;;  %v2135_v7 = vadd.f32 %v2130_v19, %v2079_v18  ;;  %2169 = vrot.lane.b32.xlu0 %v2165_v37, %s4119_s16  ;;  %v2362_v46 = vstv %s3807_s14  ;;  %v2375_v6 = vstv %s3808_s15  ;;  %s3827_s14 = sld [smem:[#allocation9 + $0xb]] }
 0x2db   : > { %s3828_s15 = sld [smem:[#allocation9 + $0x2f]] }
 0x2dc   : > { %v2166_v4 = vadd.f32 %v2164_v36, %v2123_v14  ;;  %v2179_v20 = vadd.f32 %v2178_v54, %v2135_v7  ;;  %v2391_v14 = vstv %s3809_s17  ;;  %s3829_s17 = sld [smem:[#allocation9 + $0x53]] }
 0x2dd   : > { %v2132_v15 = vpop.permute.xlu1 %2131  ;;  %v2143_v58 = vpop.permute.xlu0 %2142 }
 0x2de   : > { %v2136_v31 = vadd.f32 %v2132_v15, %v2080_v12  ;;  %v2148_v33 = vadd.f32 %v2143_v58, %v2092_v23  ;;  %2171 = vrot.lane.b32.xlu1 %v2166_v4, %s4119_s16  ;;  %2183 = vrot.lane.b32.xlu0 %v2179_v20, %s4119_s16  ;;  %v2404_v23 = vstv %s3810_s23  ;;  %v2417_v15 = vstv %s3811_s25  ;;  %s3833_s23 = sld [smem:[#allocation9 + $0xd]] }
 0x2df   : > { %s3834_s25 = sld [smem:[#allocation9 + $0x31]] }
 0x2e0   : > { %v2180_v21 = vadd.f32 %v2178_v54, %v2136_v31  ;;  %v2194_v16 = vadd.f32 %v2193_v55, %v2148_v33  ;;  %v2453_v33 = vstv %s3815_s26  ;;  %s3835_s26 = sld [smem:[#allocation9 + $0x55]] }
 0x2e1   : > { %v2145_v1 = vpop.permute.xlu1 %2144  ;;  %v2156_v25 = vpop.permute.xlu0 %2155 }
 0x2e2   : > { %v2149_v3 = vadd.f32 %v2145_v1, %v2093_v63  ;;  %v2161_v47 = vadd.f32 %v2156_v25, %v2105_v53  ;;  %2185 = vrot.lane.b32.xlu1 %v2180_v21, %s4119_s16  ;;  %2198 = vrot.lane.b32.xlu0 %v2194_v16, %s4119_s16  ;;  %v2466_v16 = vstv %s3816_s30  ;;  %v2479_v25 = vstv %s3817_s7  ;;  %s3836_s30 = sld [smem:[#allocation9 + $0xe]] }
 0x2e3   : > { %s3837_s7 = sld [smem:[#allocation9 + $0x32]] }
 0x2e4   : > { %v2195_v9 = vadd.f32 %v2193_v55, %v2149_v3  ;;  %v2209_v2 = vadd.f32 %v2208_v49, %v2161_v47 }
 0x2e5   : > { %v2158_v62 = vpop.permute.xlu1 %2157 }
 0x2e6   : > { %v2162_v48 = vadd.f32 %v2158_v62, %v2106_v26  ;;  %2200 = vrot.lane.b32.xlu1 %v2195_v9, %s4119_s16  ;;  %2213 = vrot.lane.b32.xlu0 %v2209_v2, %s4119_s16  ;;  %v2495_v26 = vstv %s3818_s8  ;;  %v2508_v62 = vstv %s3819_s9  ;;  %s3838_s8 = sld [smem:[#allocation9 + $0x56]] }
 0x2e7   : > { %s5553_s9 = sld [smem:[#allocation9 + $0x10]] }
 0x2e8   : > { %v2210_v44 = vadd.f32 %v2208_v49, %v2162_v48 }
 0x2ea   : > { %2215 = vrot.lane.b32.xlu1 %v2210_v44, %s4119_s16  ;;  %s3800_s16 = sld [smem:[#allocation9 + $0x2]] }
 0x2f0   : > { %v2287_v30 = vstv %s3800_s16  ;;  %s3820_s16 = sld [smem:[#allocation9 + $0x50]] }
 0x34c   : > { %v2170_v52 = vpop.permute.xlu0 %2169 }
 0x34d   : > { %2175 = vst.msk [vmem:[#allocation3 + $0x8] sm:$0xff] %vm399_vm0, %v2170_v52  ;;  %v2521_v52 = vstv %s3820_s16  ;;  %s5559_s16 = sld [smem:[#allocation9 + $0x34]] }
 0x350   : > { %v2172_v28 = vpop.permute.xlu1 %2171  ;;  %v2184_v13 = vpop.permute.xlu0 %2183 }
 0x351   : > { %2176 = vst.msk [vmem:[#allocation3 + $0x10] sm:$0xff] %vm399_vm0, %v2172_v28  ;;  %2190 = vst.msk [vmem:[#allocation3 + $0x28] sm:$0xff] %vm399_vm0, %v2184_v13 }
 0x354   : > { %v2186_v39 = vpop.permute.xlu1 %2185  ;;  %v2199_v40 = vpop.permute.xlu0 %2198  ;;  %v5420_v17 = vld [vmem:[#allocation3 + $0x7] sm:$0xff] }
 0x355   : > { %2191 = vst.msk [vmem:[#allocation3 + $0x30] sm:$0xff] %vm399_vm0, %v2186_v39  ;;  %2205 = vst.msk [vmem:[#allocation3 + $0x48] sm:$0xff] %vm399_vm0, %v2199_v40  ;;  %v2246_v59 = vmul.f32 %v2245_v51, %v5420_v17  ;;  %v2259_v50 = vmul.f32 %v2258_v0, %v5420_v17  ;;  %v2272_v57 = vmul.f32 %v2271_v11, %v5420_v17  ;;  %v5449_v61 = vld [vmem:[#allocation3 + $0x8] sm:$0xff]  ;;  %v2557_v39 = vstv %s3824_s11  ;;  %s5563_s11 = sld [smem:[#allocation9]] }
 0x356   : > { %v2288_v10 = vmul.f32 %v2287_v30, %v5420_v17  ;;  %v2301_v34 = vmul.f32 %v2300_v8, %v5420_v17  ;;  %v2314_v29 = vmul.f32 %v2313_v27, %v5420_v17  ;;  %v2350_v56 = vmul.f32 %v2349_v42, %v5449_v61 }
 0x357   : > { %2250 = vrot.lane.b32.xlu0 %v2246_v59, %s4120_s6  ;;  %v2363_v37 = vmul.f32 %v2362_v46, %v5449_v61  ;;  %v2376_v19 = vmul.f32 %v2375_v6, %v5449_v61  ;;  %v2392_v12 = vmul.f32 %v2391_v14, %v5449_v61  ;;  %v2405_v20 = vmul.f32 %v2404_v23, %v5449_v61 }
 0x358   : > { %v2201_v45 = vpop.permute.xlu1 %2200  ;;  %v2214_v32 = vpop.permute.xlu0 %2213  ;;  %v5426_v24 = vld [vmem:[#allocation3 + $0xf] sm:$0xff]  ;;  %v2418_v58 = vmul.f32 %v2417_v15, %v5449_v61 }
 0x359   : > { %2206 = vst.msk [vmem:[#allocation3 + $0x50] sm:$0xff] %vm399_vm0, %v2201_v45  ;;  %2220 = vst.msk [vmem:[#allocation3 + $0x68] sm:$0xff] %vm399_vm0, %v2214_v32  ;;  %v2247_v22 = vmul.f32 %v2245_v51, %v5426_v24  ;;  %v2260_v5 = vmul.f32 %v2258_v0, %v5426_v24  ;;  %v2273_v35 = vmul.f32 %v2271_v11, %v5426_v24  ;;  %v5455_v43 = vld [vmem:[#allocation3 + $0x10] sm:$0xff]  ;;  %v5505_v51 = vld [vmem:[#allocation3 + $0x27] sm:$0xff]  ;;  %v2570_v45 = vstv %s3825_s12  ;;  %s5567_s12 = sld [smem:[#allocation9 + $0x24]] }
 0x35a   : > { %v2289_v41 = vmul.f32 %v2287_v30, %v5426_v24  ;;  %v2302_v38 = vmul.f32 %v2300_v8, %v5426_v24  ;;  %v2315_v36 = vmul.f32 %v2313_v27, %v5426_v24  ;;  %v2351_v18 = vmul.f32 %v2349_v42, %v5455_v43  ;;  %v5477_v31 = vld [vmem:[#allocation3 + $0x9] sm:$0xff]  ;;  %v5483_v21 = vld [vmem:[#allocation3 + $0x11] sm:$0xff] }
 0x35b   : > { %2252 = vrot.lane.b32.xlu1 %v2247_v22, %s4120_s6  ;;  %2263 = vrot.lane.b32.xlu0 %v2259_v50, %s4120_s6  ;;  %v2364_v54 = vmul.f32 %v2362_v46, %v5455_v43  ;;  %v2377_v7 = vmul.f32 %v2375_v6, %v5455_v43  ;;  %v2393_v4 = vmul.f32 %v2391_v14, %v5455_v43  ;;  %v2583_v50 = vstv %s3826_s13  ;;  %s5572_s13 = sld [smem:[#allocation9 + $0x58]] }
 0x35c   : > { %v2216_v60 = vpop.permute.xlu1 %2215  ;;  %v2406_v55 = vmul.f32 %v2404_v23, %v5455_v43  ;;  %v2419_v63 = vmul.f32 %v2417_v15, %v5455_v43  ;;  %v2454_v53 = vmul.f32 %v2453_v33, %v5477_v31  ;;  %v2455_v1 = vmul.f32 %v2453_v33, %v5483_v21  ;;  %v5511_v0 = vld [vmem:[#allocation3 + $0x2f] sm:$0xff] }
 0x35d   : > { %2221 = vst.msk [vmem:[#allocation3 + $0x70] sm:$0xff] %vm399_vm0, %v2216_v60  ;;  %v2467_v49 = vmul.f32 %v2466_v16, %v5477_v31  ;;  %v2468_v3 = vmul.f32 %v2466_v16, %v5483_v21  ;;  %v2480_v47 = vmul.f32 %v2479_v25, %v5477_v31  ;;  %v2481_v9 = vmul.f32 %v2479_v25, %v5483_v21 }
 0x35e   : > { %v2496_v2 = vmul.f32 %v2495_v26, %v5477_v31  ;;  %v2497_v48 = vmul.f32 %v2495_v26, %v5483_v21  ;;  %v2509_v44 = vmul.f32 %v2508_v62, %v5477_v31  ;;  %v2510_v28 = vmul.f32 %v2508_v62, %v5483_v21 }
 0x35f   : > { %2265 = vrot.lane.b32.xlu1 %v2260_v5, %s4120_s6  ;;  %2276 = vrot.lane.b32.xlu0 %v2272_v57, %s4120_s6  ;;  %v2522_v13 = vmul.f32 %v2521_v52, %v5477_v31  ;;  %v2523_v40 = vmul.f32 %v2521_v52, %v5483_v21  ;;  %v2558_v59 = vmul.f32 %v2557_v39, %v5505_v51  ;;  %v2599_v5 = vstv %s3827_s14  ;;  %s5576_s14 = sld [smem:[#allocation9 + $0x3]] }
 0x360   : > { %v2559_v32 = vmul.f32 %v2557_v39, %v5511_v0  ;;  %v2571_v22 = vmul.f32 %v2570_v45, %v5505_v51  ;;  %v2572_v11 = vmul.f32 %v2570_v45, %v5511_v0  ;;  %v2584_v60 = vmul.f32 %v2583_v50, %v5505_v51 }
 0x361   : > { %v2585_v57 = vmul.f32 %v2583_v50, %v5511_v0  ;;  %v2600_v30 = vmul.f32 %v2599_v5, %v5505_v51  ;;  %v2674_v46 = vstv %s3834_s25  ;;  %v2687_v6 = vstv %s3835_s26  ;;  %s5592_s25 = sld [smem:[#allocation9 + $0x35]] }
 0x362   : > { %v2703_v14 = vstv %s3836_s30  ;;  %v2716_v23 = vstv %s3837_s7  ;;  %v2729_v15 = vstv %s3838_s8  ;;  %v2227_v26 = vstv %s5563_s11  ;;  %s5602_s26 = sld [smem:[#allocation9 + $0x4b]] }
 0x363   : > { %2278 = vrot.lane.b32.xlu1 %v2273_v35, %s4120_s6  ;;  %2292 = vrot.lane.b32.xlu0 %v2288_v10, %s4121_s10  ;;  %v2612_v35 = vstv %s3828_s15  ;;  %v2601_v10 = vmul.f32 %v2599_v5, %v5511_v0  ;;  %s5578_s15 = sld [smem:[#allocation9 + $0x48]]  ;;  %v2791_v52 = vstv %s5572_s13 }
 0x364   : > { %v2613_v8 = vmul.f32 %v2612_v35, %v5505_v51  ;;  %s5608_s30 = sld [smem:[#allocation9 + $0x59]] }
 0x365   : > { %s5625_s7 = sld [smem:[#allocation9 + $0x13]] }
 0x366   : > { %s5640_s8 = sld [smem:[#allocation9 + $0x37]] }
 0x367   : > { %2294 = vrot.lane.b32.xlu1 %v2289_v41, %s4121_s10  ;;  %2305 = vrot.lane.b32.xlu0 %v2301_v34, %s4121_s10  ;;  %v2625_v41 = vstv %s3829_s17  ;;  %v2614_v34 = vmul.f32 %v2612_v35, %v5511_v0  ;;  %s5582_s17 = sld [smem:[#allocation9 + $0x11]] }
 0x368   : > { %v2626_v27 = vmul.f32 %v2625_v41, %v5505_v51  ;;  %v2627_v42 = vmul.f32 %v2625_v41, %v5511_v0  ;;  %s5667_s11 = sld [smem:[#allocation9 + $0x14]] }
 0x369   : > { %s5675_s13 = sld [smem:[#allocation9 + $0x38]] }
 0x36b   : > { %2307 = vrot.lane.b32.xlu1 %v2302_v38, %s4121_s10  ;;  %2318 = vrot.lane.b32.xlu0 %v2314_v29, %s4121_s10  ;;  %v5533_v38 = vld [vmem:[#allocation3 + $0x28] sm:$0xff]  ;;  %v2661_v29 = vstv %s3833_s23  ;;  %s5590_s23 = sld [smem:[#allocation9 + $0x27]] }
 0x36c   : > { %v2730_v33 = vmul.f32 %v2729_v15, %v5533_v38 }
 0x36d   : > { %v2807_v50 = vstv %s5582_s17  ;;  %s5702_s17 = sld [smem:[#allocation9 + $0x16]] }
 0x36f   : > { %2320 = vrot.lane.b32.xlu1 %v2315_v36, %s4121_s10  ;;  %2354 = vrot.lane.b32.xlu0 %v2350_v56, %s4120_s6  ;;  %v2662_v36 = vmul.f32 %v2661_v29, %v5533_v38  ;;  %v5539_v56 = vld [vmem:[#allocation3 + $0x30] sm:$0xff] }
 0x373   : > { %2356 = vrot.lane.b32.xlu1 %v2351_v18, %s4120_s6  ;;  %2367 = vrot.lane.b32.xlu0 %v2363_v37, %s4120_s6  ;;  %v2663_v18 = vmul.f32 %v2661_v29, %v5539_v56  ;;  %v2675_v37 = vmul.f32 %v2674_v46, %v5533_v38 }
 0x377   : > { %2369 = vrot.lane.b32.xlu1 %v2364_v54, %s4120_s6  ;;  %2380 = vrot.lane.b32.xlu0 %v2376_v19, %s4120_s6  ;;  %v2676_v54 = vmul.f32 %v2674_v46, %v5539_v56  ;;  %v2688_v19 = vmul.f32 %v2687_v6, %v5533_v38 }
 0x37b   : > { %2382 = vrot.lane.b32.xlu1 %v2377_v7, %s4120_s6  ;;  %2396 = vrot.lane.b32.xlu0 %v2392_v12, %s4121_s10  ;;  %v2689_v7 = vmul.f32 %v2687_v6, %v5539_v56  ;;  %v2704_v12 = vmul.f32 %v2703_v14, %v5533_v38 }
 0x37f   : > { %2398 = vrot.lane.b32.xlu1 %v2393_v4, %s4121_s10  ;;  %2409 = vrot.lane.b32.xlu0 %v2405_v20, %s4121_s10  ;;  %v2705_v4 = vmul.f32 %v2703_v14, %v5539_v56  ;;  %v2717_v20 = vmul.f32 %v2716_v23, %v5533_v38 }
 0x383   : > { %2411 = vrot.lane.b32.xlu1 %v2406_v55, %s4121_s10  ;;  %2422 = vrot.lane.b32.xlu0 %v2418_v58, %s4121_s10  ;;  %v2718_v58 = vmul.f32 %v2716_v23, %v5539_v56 }
 0x387   : > { %2424 = vrot.lane.b32.xlu1 %v2419_v63, %s4121_s10  ;;  %2458 = vrot.lane.b32.xlu0 %v2454_v53, %s4120_s6  ;;  %v5569_v63 = vld [vmem:[#allocation3 + $0x29] sm:$0xff]  ;;  %v2765_v53 = vstv %s5553_s9  ;;  %s5654_s9 = sld [smem:[#allocation9 + $0x5b]] }
 0x388   : > { %v2766_v25 = vmul.f32 %v2765_v53, %v5569_v63  ;;  %v2808_v46 = vmul.f32 %v2807_v50, %v5569_v63 }
 0x38b   : > { %2460 = vrot.lane.b32.xlu1 %v2455_v1, %s4120_s6  ;;  %2471 = vrot.lane.b32.xlu0 %v2467_v49, %s4120_s6  ;;  %v2731_v49 = vmul.f32 %v2729_v15, %v5539_v56 }
 0x38f   : > { %2473 = vrot.lane.b32.xlu1 %v2468_v3, %s4120_s6  ;;  %2484 = vrot.lane.b32.xlu0 %v2480_v47, %s4120_s6  ;;  %v5584_v3 = vld [vmem:[#allocation3 + $0x31] sm:$0xff]  ;;  %v2778_v47 = vstv %s5559_s16  ;;  %s5658_s16 = sld [smem:[#allocation9 + $0x6]] }
 0x390   : > { %v2767_v62 = vmul.f32 %v2765_v53, %v5584_v3  ;;  %v2809_v15 = vmul.f32 %v2807_v50, %v5584_v3 }
 0x393   : > { %2486 = vrot.lane.b32.xlu1 %v2481_v9, %s4120_s6  ;;  %2500 = vrot.lane.b32.xlu0 %v2496_v2, %s4121_s10 }
 0x397   : > { %2502 = vrot.lane.b32.xlu1 %v2497_v48, %s4121_s10  ;;  %2513 = vrot.lane.b32.xlu0 %v2509_v44, %s4121_s10  ;;  %v2779_v48 = vmul.f32 %v2778_v47, %v5569_v63  ;;  %v2228_v44 = vmul.f32 %v2227_v26, %v5420_v17 }
 0x39b   : > { %2515 = vrot.lane.b32.xlu1 %v2510_v28, %s4121_s10  ;;  %2526 = vrot.lane.b32.xlu0 %v2522_v13, %s4121_s10  ;;  %v2232_v28 = vstv %s5567_s12  ;;  %v2331_v13 = vstv %s5576_s14  ;;  %s5671_s12 = sld [smem:[#allocation9 + $0x2a]] }
 0x39c   : > { %v2333_v6 = vmul.f32 %v2331_v13, %v5455_v43  ;;  %s5681_s14 = sld [smem:[#allocation9 + $0x4e]] }
 0x39f   : > { %2528 = vrot.lane.b32.xlu1 %v2523_v40, %s4121_s10  ;;  %2562 = vrot.lane.b32.xlu0 %v2558_v59, %s4120_s6  ;;  %v2237_v40 = vstv %s5578_s15  ;;  %s5686_s15 = sld [smem:[#allocation9 + $0x5c]] }
 0x3a0   : > { %v2239_v23 = vmul.f32 %v2237_v40, %v5426_v24 }
 0x3a3   : > { %2564 = vrot.lane.b32.xlu1 %v2559_v32, %s4120_s6  ;;  %2575 = vrot.lane.b32.xlu0 %v2571_v22, %s4120_s6  ;;  %v2780_v32 = vmul.f32 %v2778_v47, %v5584_v3  ;;  %v2792_v22 = vmul.f32 %v2791_v52, %v5569_v63 }
 0x3a7   : > { %2577 = vrot.lane.b32.xlu1 %v2572_v11, %s4120_s6  ;;  %2588 = vrot.lane.b32.xlu0 %v2584_v60, %s4120_s6  ;;  %v2229_v11 = vmul.f32 %v2227_v26, %v5426_v24  ;;  %v2233_v60 = vmul.f32 %v2232_v28, %v5420_v17 }
 0x3ab   : > { %2590 = vrot.lane.b32.xlu1 %v2585_v57, %s4120_s6  ;;  %2604 = vrot.lane.b32.xlu0 %v2600_v30, %s4121_s10  ;;  %v2332_v57 = vmul.f32 %v2331_v13, %v5449_v61  ;;  %v2336_v30 = vstv %s5590_s23  ;;  %s5714_s23 = sld [smem:[#allocation9 + $0x3a]] }
 0x3af   : > { %2606 = vrot.lane.b32.xlu1 %v2601_v10, %s4121_s10  ;;  %2617 = vrot.lane.b32.xlu0 %v2613_v8, %s4121_s10  ;;  %v2820_v8 = vstv %s5592_s25  ;;  %s5729_s25 = sld [smem:[#allocation9 + $0x5e]] }
 0x3b3   : > { %2619 = vrot.lane.b32.xlu1 %v2614_v34, %s4121_s10  ;;  %2630 = vrot.lane.b32.xlu0 %v2626_v27, %s4121_s10  ;;  %v2234_v34 = vmul.f32 %v2232_v28, %v5426_v24  ;;  %v2238_v27 = vmul.f32 %v2237_v40, %v5420_v17  ;;  %v2341_v17 = vstv %s5602_s26  ;;  %s5733_s26 = sld [smem:[#allocation9 + $0x9]] }
 0x3b7   : > { %2632 = vrot.lane.b32.xlu1 %v2627_v42, %s4121_s10  ;;  %2666 = vrot.lane.b32.xlu0 %v2662_v36, %s4120_s6  ;;  %v2793_v36 = vmul.f32 %v2791_v52, %v5584_v3 }
 0x3bb   : > { %2668 = vrot.lane.b32.xlu1 %v2663_v18, %s4120_s6  ;;  %2679 = vrot.lane.b32.xlu0 %v2675_v37, %s4120_s6 }
 0x3bf   : > { %2681 = vrot.lane.b32.xlu1 %v2676_v54, %s4120_s6  ;;  %2692 = vrot.lane.b32.xlu0 %v2688_v19, %s4120_s6  ;;  %v2337_v54 = vmul.f32 %v2336_v30, %v5449_v61 }
 0x3c3   : > { %2694 = vrot.lane.b32.xlu1 %v2689_v7, %s4120_s6  ;;  %2708 = vrot.lane.b32.xlu0 %v2704_v12, %s4121_s10 }
 0x3c7   : > { %2710 = vrot.lane.b32.xlu1 %v2705_v4, %s4121_s10  ;;  %2721 = vrot.lane.b32.xlu0 %v2717_v20, %s4121_s10 }
 0x3c9   : > { %v2251_v55 = vpop.permute.xlu0 %2250 }
 0x3ca   : > { %v2256_v39 = vadd.f32 %v2251_v55, %v2228_v44  ;;  %v2821_v55 = vmul.f32 %v2820_v8, %v5569_v63  ;;  %v2343_v44 = vmul.f32 %v2341_v17, %v5455_v43 }
 0x3cb   : > { %2723 = vrot.lane.b32.xlu1 %v2718_v58, %s4121_s10  ;;  %2734 = vrot.lane.b32.xlu0 %v2730_v33, %s4121_s10  ;;  %v2833_v58 = vstv %s5608_s30  ;;  %s5742_s30 = sld [smem:[#allocation9 + $0x17]] }
 0x3cd   : > { %v2253_v16 = vpop.permute.xlu1 %2252  ;;  %v2264_v1 = vpop.permute.xlu0 %2263 }
 0x3ce   : > { %v2257_v35 = vadd.f32 %v2253_v16, %v2229_v11  ;;  %v2269_v10 = vadd.f32 %v2264_v1, %v2233_v60  ;;  %v2338_v16 = vmul.f32 %v2336_v30, %v5455_v43  ;;  %v2342_v1 = vmul.f32 %v2341_v17, %v5449_v61  ;;  %v5650_v61 = vld [vmem:[#allocation3 + $0x47] sm:$0xff] }
 0x3cf   : > { %2736 = vrot.lane.b32.xlu1 %v2731_v49, %s4121_s10  ;;  %2770 = vrot.lane.b32.xlu0 %v2766_v25, %s4120_s6  ;;  %v2882_v43 = vstv %s5640_s8  ;;  %v2895_v11 = vstv %s5654_s9  ;;  %s5750_s8 = sld [smem:[#allocation9 + $0x3b]] }
 0x3d0   : > { %v2883_v50 = vmul.f32 %v2882_v43, %v5650_v61  ;;  %v2435_v60 = vstv %s5658_s16  ;;  %s5756_s9 = sld [smem:[#allocation9 + $0x51]] }
 0x3d1   : > { %v2266_v9 = vpop.permute.xlu1 %2265  ;;  %v2277_v2 = vpop.permute.xlu0 %2276  ;;  %s5761_s16 = sld [smem:[#allocation9 + $0x5f]] }
 0x3d2   : > { %v2270_v19 = vadd.f32 %v2266_v9, %v2234_v34  ;;  %v2282_v14 = vadd.f32 %v2277_v2, %v2238_v27  ;;  %v2822_v9 = vmul.f32 %v2820_v8, %v5584_v3  ;;  %v2834_v2 = vmul.f32 %v2833_v58, %v5569_v63 }
 0x3d3   : > { %2772 = vrot.lane.b32.xlu1 %v2767_v62, %s4120_s6  ;;  %2783 = vrot.lane.b32.xlu0 %v2779_v48, %s4120_s6  ;;  %v2869_v48 = vstv %s5625_s7  ;;  %v2911_v34 = vstv %s5667_s11  ;;  %v2436_v27 = vmul.f32 %v2435_v60, %v5477_v31  ;;  %s5746_s7 = sld [smem:[#allocation9 + $0x2d]] }
 0x3d4   : > { %v2870_v40 = vmul.f32 %v2869_v48, %v5650_v61  ;;  %s5775_s11 = sld [smem:[#allocation9 + $0x19]] }
 0x3d5   : > { %v2279_v59 = vpop.permute.xlu1 %2278  ;;  %v2293_v45 = vpop.permute.xlu0 %2292 }
 0x3d6   : > { %v2298_v5 = vadd.f32 %v2293_v45, %v2256_v39  ;;  %v2283_v24 = vadd.f32 %v2279_v59, %v2239_v23  ;;  %v2835_v39 = vmul.f32 %v2833_v58, %v5584_v3  ;;  %v5664_v59 = vld [vmem:[#allocation3 + $0x4f] sm:$0xff] }
 0x3d7   : > { %2785 = vrot.lane.b32.xlu1 %v2780_v32, %s4120_s6  ;;  %2796 = vrot.lane.b32.xlu0 %v2792_v22, %s4120_s6  ;;  %v2871_v22 = vmul.f32 %v2869_v48, %v5664_v59 }
 0x3d8   : > { %v5617_v41 = vadd.f32 %v2332_v57, %v2298_v5 }
 0x3d9   : > { %v2295_v29 = vpop.permute.xlu1 %2294  ;;  %v2306_v42 = vpop.permute.xlu0 %2305 }
 0x3da   : > { %v2299_v18 = vadd.f32 %v2295_v29, %v2257_v35  ;;  %v2311_v37 = vadd.f32 %v2306_v42, %v2269_v10  ;;  %v2884_v35 = vmul.f32 %v2882_v43, %v5664_v59  ;;  %v2896_v10 = vmul.f32 %v2895_v11, %v5650_v61 }
 0x3db   : > { %2798 = vrot.lane.b32.xlu1 %v2793_v36, %s4120_s6  ;;  %2812 = vrot.lane.b32.xlu0 %v2808_v46, %s4121_s10  ;;  %v2440_v29 = vstv %s5671_s12  ;;  %s5787_s12 = sld [smem:[#allocation9 + $0x3d]] }
 0x3dc   : > { %v5630_v7 = vadd.f32 %v2333_v6, %v2299_v18  ;;  %v5632_v12 = vadd.f32 %v2337_v54, %v2311_v37  ;;  %v2897_v37 = vmul.f32 %v2895_v11, %v5664_v59  ;;  %v2912_v6 = vmul.f32 %v2911_v34, %v5650_v61 }
 0x3dd   : > { %v2308_v4 = vpop.permute.xlu1 %2307  ;;  %v2319_v20 = vpop.permute.xlu0 %2318  ;;  %v2924_v54 = vstv %s5675_s13  ;;  %v2441_v23 = vmul.f32 %v2440_v29, %v5477_v31  ;;  %s5802_s13 = sld [smem:[#allocation9 + $0x61]] }
 0x3de   : > { %v2312_v33 = vadd.f32 %v2308_v4, %v2270_v19  ;;  %v2324_v53 = vadd.f32 %v2319_v20, %v2282_v14  ;;  %v2437_v14 = vmul.f32 %v2435_v60, %v5483_v21  ;;  %v2926_v48 = vmul.f32 %v2924_v54, %v5664_v59 }
 0x3df   : > { %2814 = vrot.lane.b32.xlu1 %v2809_v15, %s4121_s10  ;;  %2825 = vrot.lane.b32.xlu0 %v2821_v55, %s4121_s10 }
 0x3e0   : > { %v5644_v49 = vadd.f32 %v2338_v16, %v2312_v33  ;;  %v5646_v25 = vadd.f32 %v2342_v1, %v2324_v53  ;;  %v2913_v33 = vmul.f32 %v2911_v34, %v5664_v59  ;;  %v2925_v53 = vmul.f32 %v2924_v54, %v5650_v61 }
 0x3e1   : > { %v2321_v47 = vpop.permute.xlu1 %2320  ;;  %v2355_v26 = vpop.permute.xlu0 %2354  ;;  %v2937_v16 = vstv %s5686_s15  ;;  %s5815_s15 = sld [smem:[#allocation9 + $0x1a]] }
 0x3e2   : > { %v2325_v62 = vadd.f32 %v2321_v47, %v2283_v24  ;;  %v2360_v5 = vadd.f32 %v2355_v26, %v5617_v41  ;;  %v2442_v47 = vmul.f32 %v2440_v29, %v5483_v21 }
 0x3e3   : > { %2827 = vrot.lane.b32.xlu1 %v2822_v9, %s4121_s10  ;;  %2838 = vrot.lane.b32.xlu0 %v2834_v2, %s4121_s10 }
 0x3e4   : > { %v5660_v52 = vadd.f32 %v2343_v44, %v2325_v62  ;;  %v2938_v44 = vmul.f32 %v2937_v16, %v5650_v61 }
 0x3e5   : > { %v2357_v28 = vpop.permute.xlu1 %2356  ;;  %v2368_v13 = vpop.permute.xlu0 %2367 }
 0x3e6   : > { %v2361_v41 = vadd.f32 %v2357_v28, %v5630_v7  ;;  %v2373_v42 = vadd.f32 %v2368_v13, %v5632_v12  ;;  %v2445_v7 = vstv %s5681_s14  ;;  %v5725_v28 = vld [vmem:[#allocation3 + $0x48] sm:$0xff]  ;;  %v2973_v13 = vstv %s5702_s17  ;;  %s5806_s14 = sld [smem:[#allocation9 + $0xc]] }
 0x3e7   : > { %2840 = vrot.lane.b32.xlu1 %v2835_v39, %s4121_s10  ;;  %2874 = vrot.lane.b32.xlu0 %v2870_v40, %s4120_s6  ;;  %v2446_v26 = vmul.f32 %v2445_v7, %v5477_v31  ;;  %v2447_v39 = vmul.f32 %v2445_v7, %v5483_v21  ;;  %v2986_v21 = vstv %s5714_s23  ;;  %s5819_s17 = sld [smem:[#allocation9 + $0x30]] }
 0x3e8   : > { %s5823_s23 = sld [smem:[#allocation9 + $0x3e]] }
 0x3e9   : > { %v2370_v45 = vpop.permute.xlu1 %2369  ;;  %v2381_v32 = vpop.permute.xlu0 %2380 }
 0x3ea   : > { %v2374_v12 = vadd.f32 %v2370_v45, %v5644_v49  ;;  %v2386_v4 = vadd.f32 %v2381_v32, %v5646_v25  ;;  %v2939_v45 = vmul.f32 %v2937_v16, %v5664_v59  ;;  %v2974_v32 = vmul.f32 %v2973_v13, %v5725_v28 }
 0x3eb   : > { %2876 = vrot.lane.b32.xlu1 %v2871_v22, %s4120_s6  ;;  %2887 = vrot.lane.b32.xlu0 %v2883_v50, %s4120_s6  ;;  %v5739_v22 = vld [vmem:[#allocation3 + $0x50] sm:$0xff] }
 0x3ec   : > { %v2975_v60 = vmul.f32 %v2973_v13, %v5739_v22  ;;  %v2988_v34 = vmul.f32 %v2986_v21, %v5739_v22 }
 0x3ed   : > { %v2383_v57 = vpop.permute.xlu1 %2382  ;;  %v2397_v30 = vpop.permute.xlu0 %2396 }
 0x3ee   : > { %v2402_v8 = vadd.f32 %v2397_v30, %v2360_v5  ;;  %v2387_v49 = vadd.f32 %v2383_v57, %v5660_v52  ;;  %v2987_v5 = vmul.f32 %v2986_v21, %v5725_v28  ;;  %v2999_v57 = vstv %s5729_s25  ;;  %s5829_s25 = sld [smem:[#allocation9 + $0x54]] }
 0x3ef   : > { %2889 = vrot.lane.b32.xlu1 %v2884_v35, %s4120_s6  ;;  %2900 = vrot.lane.b32.xlu0 %v2896_v10, %s4120_s6  ;;  %v2539_v30 = vstv %s5733_s26  ;;  %s5834_s26 = sld [smem:[#allocation9 + $0x62]] }
 0x3f0   : > { %v5695_v36 = vadd.f32 %v2436_v27, %v2402_v8  ;;  %v3000_v27 = vmul.f32 %v2999_v57, %v5725_v28 }
 0x3f1   : > { %v2399_v46 = vpop.permute.xlu1 %2398  ;;  %v2410_v18 = vpop.permute.xlu0 %2409 }
 0x3f2   : > { %v2403_v17 = vadd.f32 %v2399_v46, %v2361_v41  ;;  %v2415_v19 = vadd.f32 %v2410_v18, %v2373_v42  ;;  %v3015_v41 = vstv %s5742_s30  ;;  %v2540_v42 = vmul.f32 %v2539_v30, %v5505_v51  ;;  %s5846_s30 = sld [smem:[#allocation9 + $0x1c]] }
 0x3f3   : > { %2902 = vrot.lane.b32.xlu1 %v2897_v37, %s4120_s6  ;;  %2916 = vrot.lane.b32.xlu0 %v2912_v6, %s4121_s10  ;;  %v2544_v46 = vstv %s5746_s7  ;;  %s5858_s7 = sld [smem:[#allocation9 + $0x40]] }
 0x3f4   : > { %v2439_v20 = vadd.f32 %v2437_v14, %v2403_v17  ;;  %v2443_v15 = vadd.f32 %v2441_v23, %v2415_v19  ;;  %v3001_v17 = vmul.f32 %v2999_v57, %v5739_v22  ;;  %v3016_v19 = vmul.f32 %v3015_v41, %v5725_v28 }
 0x3f5   : > { %v2412_v55 = vpop.permute.xlu1 %2411  ;;  %v2423_v58 = vpop.permute.xlu0 %2422  ;;  %v3028_v14 = vstv %s5750_s8  ;;  %s5869_s8 = sld [smem:[#allocation9 + $0x64]] }
 0x3f6   : > { %v2416_v1 = vadd.f32 %v2412_v55, %v2374_v12  ;;  %v2428_v24 = vadd.f32 %v2423_v58, %v2386_v4  ;;  %v2541_v12 = vmul.f32 %v2539_v30, %v5511_v0  ;;  %v2545_v4 = vmul.f32 %v2544_v46, %v5505_v51 }
 0x3f7   : > { %2918 = vrot.lane.b32.xlu1 %v2913_v33, %s4121_s10  ;;  %2929 = vrot.lane.b32.xlu0 %v2925_v53, %s4121_s10  ;;  %v3030_v13 = vmul.f32 %v3028_v14, %v5739_v22 }
 0x3f8   : > { %v5719_v25 = vadd.f32 %v2442_v47, %v2416_v1  ;;  %v5721_v9 = vadd.f32 %v2446_v26, %v2428_v24  ;;  %v3017_v1 = vmul.f32 %v3015_v41, %v5739_v22  ;;  %v3029_v24 = vmul.f32 %v3028_v14, %v5725_v28 }
 0x3f9   : > { %v2425_v2 = vpop.permute.xlu1 %2424  ;;  %v2459_v62 = vpop.permute.xlu0 %2458  ;;  %v3041_v47 = vstv %s5761_s16  ;;  %s5880_s16 = sld [smem:[#allocation9 + $0x1d]] }
 0x3fa   : > { %v2429_v31 = vadd.f32 %v2425_v2, %v2387_v49  ;;  %v2464_v35 = vadd.f32 %v2459_v62, %v5695_v36  ;;  %v2546_v2 = vmul.f32 %v2544_v46, %v5511_v0 }
 0x3fb   : > { %2931 = vrot.lane.b32.xlu1 %v2926_v48, %s4121_s10  ;;  %2942 = vrot.lane.b32.xlu0 %v2938_v44, %s4121_s10 }
 0x3fc   : > { %v5735_v52 = vadd.f32 %v2447_v39, %v2429_v31  ;;  %v3042_v39 = vmul.f32 %v3041_v47, %v5725_v28 }
 0x3fd   : > { %v2461_v40 = vpop.permute.xlu1 %2460  ;;  %v2472_v43 = vpop.permute.xlu0 %2471 }
 0x3fe   : > { %v2465_v36 = vadd.f32 %v2461_v40, %v2439_v20  ;;  %v2477_v18 = vadd.f32 %v2472_v43, %v2443_v15  ;;  %v2549_v20 = vstv %s5756_s9  ;;  %v5798_v40 = vld [vmem:[#allocation3 + $0x49] sm:$0xff]  ;;  %v3077_v43 = vstv %s5775_s11  ;;  %s5873_s9 = sld [smem:[#allocation9 + $0xf]] }
 0x3ff   : > { %2944 = vrot.lane.b32.xlu1 %v2939_v45, %s4121_s10  ;;  %2978 = vrot.lane.b32.xlu0 %v2974_v32, %s4120_s6  ;;  %v2550_v62 = vmul.f32 %v2549_v20, %v5505_v51  ;;  %v2551_v45 = vmul.f32 %v2549_v20, %v5511_v0  ;;  %v3090_v0 = vstv %s5787_s12  ;;  %s5884_s11 = sld [smem:[#allocation9 + $0x33]] }
 0x400   : > { %s5888_s12 = sld [smem:[#allocation9 + $0x41]] }
 0x401   : > { %v2474_v50 = vpop.permute.xlu1 %2473  ;;  %v2485_v11 = vpop.permute.xlu0 %2484 }
 0x402   : > { %v2478_v15 = vadd.f32 %v2474_v50, %v5719_v25  ;;  %v2490_v55 = vadd.f32 %v2485_v11, %v5721_v9  ;;  %v3043_v50 = vmul.f32 %v3041_v47, %v5739_v22  ;;  %v3078_v11 = vmul.f32 %v3077_v43, %v5798_v40 }
 0x403   : > { %2980 = vrot.lane.b32.xlu1 %v2975_v60, %s4120_s6  ;;  %2991 = vrot.lane.b32.xlu0 %v2987_v5, %s4120_s6  ;;  %v5812_v60 = vld [vmem:[#allocation3 + $0x51] sm:$0xff] }
 0x404   : > { %v3079_v30 = vmul.f32 %v3077_v43, %v5812_v60  ;;  %v3092_v41 = vmul.f32 %v3090_v0, %v5812_v60 }
 0x405   : > { %v2487_v10 = vpop.permute.xlu1 %2486  ;;  %v2501_v8 = vpop.permute.xlu0 %2500 }
 0x406   : > { %v2506_v29 = vadd.f32 %v2501_v8, %v2464_v35  ;;  %v2491_v25 = vadd.f32 %v2487_v10, %v5735_v52  ;;  %v3091_v35 = vmul.f32 %v3090_v0, %v5798_v40  ;;  %v3103_v10 = vstv %s5802_s13  ;;  %s5894_s13 = sld [smem:[#allocation9 + $0x57]] }
 0x407   : > { %2993 = vrot.lane.b32.xlu1 %v2988_v34, %s4120_s6  ;;  %3004 = vrot.lane.b32.xlu0 %v3000_v27, %s4120_s6  ;;  %v2643_v8 = vstv %s5806_s14  ;;  %s5898_s14 = sld [smem:[#allocation9 + $0x65]] }
 0x408   : > { %v5768_v37 = vadd.f32 %v2540_v42, %v2506_v29  ;;  %v3104_v42 = vmul.f32 %v3103_v10, %v5798_v40 }
 0x409   : > { %v2503_v6 = vpop.permute.xlu1 %2502  ;;  %v2514_v54 = vpop.permute.xlu0 %2513 }
 0x40a   : > { %v2507_v23 = vadd.f32 %v2503_v6, %v2465_v36  ;;  %v2519_v7 = vadd.f32 %v2514_v54, %v2477_v18  ;;  %v3119_v36 = vstv %s5815_s15  ;;  %v2644_v18 = vmul.f32 %v2643_v8, %v5533_v38  ;;  %s5910_s15 = sld [smem:[#allocation9 + $0x1f]] }
 0x40b   : > { %3006 = vrot.lane.b32.xlu1 %v3001_v17, %s4120_s6  ;;  %3020 = vrot.lane.b32.xlu0 %v3016_v19, %s4121_s10  ;;  %v2648_v6 = vstv %s5819_s17  ;;  %s5920_s17 = sld [smem:[#allocation9 + $0x43]] }
 0x40c   : > { %v2543_v58 = vadd.f32 %v2541_v12, %v2507_v23  ;;  %v2547_v33 = vadd.f32 %v2545_v4, %v2519_v7  ;;  %v3105_v23 = vmul.f32 %v3103_v10, %v5812_v60  ;;  %v3120_v7 = vmul.f32 %v3119_v36, %v5798_v40 }
 0x40d   : > { %v2516_v53 = vpop.permute.xlu1 %2515  ;;  %v2527_v16 = vpop.permute.xlu0 %2526  ;;  %v3132_v12 = vstv %s5823_s23  ;;  %s5930_s23 = sld [smem:[#allocation9 + $0x67]] }
 0x40e   : > { %v2520_v26 = vadd.f32 %v2516_v53, %v2478_v15  ;;  %v2532_v49 = vadd.f32 %v2527_v16, %v2490_v55  ;;  %v2645_v15 = vmul.f32 %v2643_v8, %v5539_v56  ;;  %v2649_v55 = vmul.f32 %v2648_v6, %v5533_v38  ;;  %v5877_v8 = vld [vmem:[#allocation3 + $0x6f] sm:$0xff] }
 0x40f   : > { %3022 = vrot.lane.b32.xlu1 %v3017_v1, %s4121_s10  ;;  %3033 = vrot.lane.b32.xlu0 %v3029_v24, %s4121_s10  ;;  %v3134_v43 = vmul.f32 %v3132_v12, %v5812_v60 }
 0x410   : > { %v5792_v9 = vadd.f32 %v2546_v2, %v2520_v26  ;;  %v5794_v48 = vadd.f32 %v2550_v62, %v2532_v49  ;;  %v3121_v26 = vmul.f32 %v3119_v36, %v5812_v60  ;;  %v3133_v49 = vmul.f32 %v3132_v12, %v5798_v40 }
 0x411   : > { %v2529_v44 = vpop.permute.xlu1 %2528  ;;  %v2563_v31 = vpop.permute.xlu0 %2562  ;;  %v3145_v2 = vstv %s5834_s26  ;;  %v3207_v36 = vstv %s5869_s8  ;;  %v2752_v12 = vstv %s5884_s11  ;;  %s5941_s26 = sld [smem:[#allocation9 + $0x20]] }
 0x412   : > { %v2533_v51 = vadd.f32 %v2529_v44, %v2491_v25  ;;  %v2568_v34 = vadd.f32 %v2563_v31, %v5768_v37  ;;  %v2650_v44 = vmul.f32 %v2648_v6, %v5539_v56  ;;  %s5955_s8 = sld [smem:[#allocation9 + $0x5a]] }
 0x413   : > { %3035 = vrot.lane.b32.xlu1 %v3030_v13, %s4121_s10  ;;  %3046 = vrot.lane.b32.xlu0 %v3042_v39, %s4121_s10  ;;  %s5981_s11 = sld [smem:[#allocation9 + $0x46]] }
 0x414   : > { %v5808_v52 = vadd.f32 %v2551_v45, %v2533_v51  ;;  %v3146_v45 = vmul.f32 %v3145_v2, %v5798_v40 }
 0x415   : > { %v2565_v32 = vpop.permute.xlu1 %2564  ;;  %v2576_v21 = vpop.permute.xlu0 %2575 }
 0x416   : > { %v2569_v37 = vadd.f32 %v2565_v32, %v2543_v58  ;;  %v2581_v54 = vadd.f32 %v2576_v21, %v2547_v33  ;;  %v2653_v58 = vstv %s5829_s25  ;;  %s5934_s25 = sld [smem:[#allocation9 + $0x12]] }
 0x417   : > { %3048 = vrot.lane.b32.xlu1 %v3043_v50, %s4121_s10  ;;  %3082 = vrot.lane.b32.xlu0 %v3078_v11, %s4120_s6  ;;  %v2654_v31 = vmul.f32 %v2653_v58, %v5533_v38  ;;  %v5865_v38 = vld [vmem:[#allocation3 + $0x67] sm:$0xff]  ;;  %v3181_v50 = vstv %s5846_s30  ;;  %v2655_v11 = vmul.f32 %v2653_v58, %v5539_v56  ;;  %v3194_v56 = vstv %s5858_s7  ;;  %s5945_s30 = sld [smem:[#allocation9 + $0x36]] }
 0x418   : > { %s5949_s7 = sld [smem:[#allocation9 + $0x44]] }
 0x419   : > { %v2578_v5 = vpop.permute.xlu1 %2577  ;;  %v2589_v57 = vpop.permute.xlu0 %2588 }
 0x41a   : > { %v2582_v33 = vadd.f32 %v2578_v5, %v5792_v9  ;;  %v2594_v53 = vadd.f32 %v2589_v57, %v5794_v48  ;;  %v3147_v57 = vmul.f32 %v3145_v2, %v5812_v60 }
 0x41b   : > { %3084 = vrot.lane.b32.xlu1 %v3079_v30, %s4120_s6  ;;  %3095 = vrot.lane.b32.xlu0 %v3091_v35, %s4120_s6  ;;  %v3182_v30 = vmul.f32 %v3181_v50, %v5865_v38 }
 0x41d   : > { %v2591_v27 = vpop.permute.xlu1 %2590  ;;  %v2605_v29 = vpop.permute.xlu0 %2604 }
 0x41e   : > { %v2610_v46 = vadd.f32 %v2605_v29, %v2568_v34  ;;  %v2595_v9 = vadd.f32 %v2591_v27, %v5808_v52  ;;  %v3183_v29 = vmul.f32 %v3181_v50, %v5877_v8 }
 0x41f   : > { %3097 = vrot.lane.b32.xlu1 %v3092_v41, %s4120_s6  ;;  %3108 = vrot.lane.b32.xlu0 %v3104_v42, %s4120_s6  ;;  %v3195_v41 = vmul.f32 %v3194_v56, %v5865_v38 }
 0x420   : > { %v2646_v17 = vadd.f32 %v2644_v18, %v2610_v46  ;;  %v2747_v18 = vstv %s5873_s9  ;;  %s5959_s9 = sld [smem:[#allocation9 + $0x68]] }
 0x421   : > { %v2607_v19 = vpop.permute.xlu1 %2606  ;;  %v2618_v14 = vpop.permute.xlu0 %2617 }
 0x422   : > { %v2611_v4 = vadd.f32 %v2607_v19, %v2569_v37  ;;  %v2623_v20 = vadd.f32 %v2618_v14, %v2581_v54  ;;  %v3196_v54 = vmul.f32 %v3194_v56, %v5877_v8 }
 0x423   : > { %3110 = vrot.lane.b32.xlu1 %v3105_v23, %s4120_s6  ;;  %3124 = vrot.lane.b32.xlu0 %v3120_v7, %s4121_s10  ;;  %v3223_v23 = vstv %s5880_s16  ;;  %v2748_v7 = vmul.f32 %v2747_v18, %v5569_v63  ;;  %s5971_s16 = sld [smem:[#allocation9 + $0x22]] }
 0x424   : > { %v2647_v16 = vadd.f32 %v2645_v15, %v2611_v4  ;;  %v2651_v1 = vadd.f32 %v2649_v55, %v2623_v20  ;;  %v3209_v55 = vmul.f32 %v3207_v36, %v5877_v8  ;;  %v3224_v58 = vmul.f32 %v3223_v23, %v5865_v38 }
 0x425   : > { %v2620_v24 = vpop.permute.xlu1 %2619  ;;  %v2631_v47 = vpop.permute.xlu0 %2630 }
 0x426   : > { %v2624_v62 = vadd.f32 %v2620_v24, %v2582_v33  ;;  %v2636_v25 = vadd.f32 %v2631_v47, %v2594_v53  ;;  %v3236_v33 = vstv %s5888_s12  ;;  %v2753_v24 = vmul.f32 %v2752_v12, %v5569_v63  ;;  %s5991_s12 = sld [smem:[#allocation9 + $0x6a]] }
 0x427   : > { %3126 = vrot.lane.b32.xlu1 %v3121_v26, %s4121_s10  ;;  %3137 = vrot.lane.b32.xlu0 %v3133_v49, %s4121_s10  ;;  %v2757_v47 = vstv %s5894_s13  ;;  %s5995_s13 = sld [smem:[#allocation9 + $0x15]] }
 0x428   : > { %v2652_v48 = vadd.f32 %v2650_v44, %v2624_v62  ;;  %v2656_v13 = vadd.f32 %v2654_v31, %v2636_v25  ;;  %v3225_v25 = vmul.f32 %v3223_v23, %v5877_v8  ;;  %v3237_v44 = vmul.f32 %v3236_v33, %v5865_v38 }
 0x429   : > { %v2633_v39 = vpop.permute.xlu1 %2632  ;;  %v2667_v51 = vpop.permute.xlu0 %2666  ;;  %v3249_v31 = vstv %s5898_s14  ;;  %s6002_s14 = sld [smem:[#allocation9 + $0x23]] }
 0x42a   : > { %v2637_v32 = vadd.f32 %v2633_v39, %v2595_v9  ;;  %v2672_v21 = vadd.f32 %v2667_v51, %v2646_v17  ;;  %v3208_v17 = vmul.f32 %v3207_v36, %v5865_v38  ;;  %v2758_v39 = vmul.f32 %v2757_v47, %v5569_v63 }
 0x42b   : > { %3139 = vrot.lane.b32.xlu1 %v3134_v43, %s4121_s10  ;;  %3150 = vrot.lane.b32.xlu0 %v3146_v45, %s4121_s10  ;;  %v3250_v50 = vmul.f32 %v3249_v31, %v5865_v38  ;;  %v3285_v63 = vstv %s5910_s15  ;;  %s6006_s15 = sld [smem:[#allocation9 + $0x39]] }
 0x42c   : > { %v2657_v52 = vadd.f32 %v2655_v11, %v2637_v32 }
 0x42d   : > { %v2669_v0 = vpop.permute.xlu1 %2668  ;;  %v2680_v5 = vpop.permute.xlu0 %2679 }
 0x42e   : > { %v2673_v35 = vadd.f32 %v2669_v0, %v2647_v16  ;;  %v2685_v10 = vadd.f32 %v2680_v5, %v2651_v1  ;;  %v2749_v1 = vmul.f32 %v2747_v18, %v5584_v3  ;;  %v5926_v0 = vld [vmem:[#allocation3 + $0x68] sm:$0xff]  ;;  %v2759_v5 = vmul.f32 %v2757_v47, %v5584_v3 }
 0x42f   : > { %3152 = vrot.lane.b32.xlu1 %v3147_v57, %s4121_s10  ;;  %3186 = vrot.lane.b32.xlu0 %v3182_v30, %s4120_s6  ;;  %v3286_v56 = vmul.f32 %v3285_v63, %v5926_v0 }
 0x431   : > { %v2682_v34 = vpop.permute.xlu1 %2681  ;;  %v2693_v27 = vpop.permute.xlu0 %2692 }
 0x432   : > { %v2686_v42 = vadd.f32 %v2682_v34, %v2652_v48  ;;  %v2698_v46 = vadd.f32 %v2693_v27, %v2656_v13  ;;  %v2754_v13 = vmul.f32 %v2752_v12, %v5584_v3  ;;  %v3298_v3 = vstv %s5920_s17  ;;  %s6010_s17 = sld [smem:[#allocation9 + $0x47]] }
 0x433   : > { %3188 = vrot.lane.b32.xlu1 %v3183_v29, %s4120_s6  ;;  %3199 = vrot.lane.b32.xlu0 %v3195_v41, %s4120_s6  ;;  %v5938_v29 = vld [vmem:[#allocation3 + $0x70] sm:$0xff]  ;;  %v3299_v36 = vmul.f32 %v3298_v3, %v5926_v0 }
 0x435   : > { %v2695_v6 = vpop.permute.xlu1 %2694  ;;  %v2709_v37 = vpop.permute.xlu0 %2708 }
 0x436   : > { %v2699_v19 = vadd.f32 %v2695_v6, %v2657_v52  ;;  %v2714_v14 = vadd.f32 %v2709_v37, %v2672_v21  ;;  %v3238_v21 = vmul.f32 %v3236_v33, %v5877_v8  ;;  %v3311_v37 = vstv %s5930_s23  ;;  %s6016_s23 = sld [smem:[#allocation9 + $0x5d]] }
 0x437   : > { %3201 = vrot.lane.b32.xlu1 %v3196_v54, %s4120_s6  ;;  %3212 = vrot.lane.b32.xlu0 %v3208_v17, %s4120_s6  ;;  %v2851_v54 = vstv %s5934_s25  ;;  %v3312_v23 = vmul.f32 %v3311_v37, %v5926_v0  ;;  %s6020_s25 = sld [smem:[#allocation9 + $0x6b]] }
 0x438   : > { %v2750_v4 = vadd.f32 %v2748_v7, %v2714_v14  ;;  %v3300_v14 = vmul.f32 %v3298_v3, %v5938_v29 }
 0x439   : > { %v2711_v20 = vpop.permute.xlu1 %2710  ;;  %v2722_v15 = vpop.permute.xlu0 %2721 }
 0x43a   : > { %v2715_v53 = vadd.f32 %v2711_v20, %v2673_v35  ;;  %v2727_v16 = vadd.f32 %v2722_v15, %v2685_v10  ;;  %v3251_v10 = vmul.f32 %v3249_v31, %v5877_v8  ;;  %v2852_v20 = vmul.f32 %v2851_v54, %v5650_v61 }
 0x43b   : > { %3214 = vrot.lane.b32.xlu1 %v3209_v55, %s4120_s6  ;;  %3228 = vrot.lane.b32.xlu0 %v3224_v58, %s4121_s10  ;;  %v2856_v15 = vstv %s5945_s30  ;;  %s3868_s30 = sld [smem:[#allocation9 + $0x60]] }
 0x43c   : > { %v2751_v26 = vadd.f32 %v2749_v1, %v2715_v53  ;;  %v2755_v49 = vadd.f32 %v2753_v24, %v2727_v16  ;;  %v3313_v53 = vmul.f32 %v3311_v37, %v5938_v29  ;;  %v3340_v1 = vstv %s5949_s7  ;;  %s3876_s7 = sld [smem:[#allocation9 + $0x3f]] }
 0x43d   : > { %v2724_v2 = vpop.permute.xlu1 %2723  ;;  %v2735_v62 = vpop.permute.xlu0 %2734 }
 0x43e   : > { %v2728_v9 = vadd.f32 %v2724_v2, %v2686_v42  ;;  %v2740_v48 = vadd.f32 %v2735_v62, %v2698_v46  ;;  %v3287_v46 = vmul.f32 %v3285_v63, %v5938_v29  ;;  %v2861_v2 = vstv %s5955_s8  ;;  %s3877_s8 = sld [smem:[#allocation9 + $0x63]] }
 0x43f   : > { %3230 = vrot.lane.b32.xlu1 %v3225_v25, %s4121_s10  ;;  %3241 = vrot.lane.b32.xlu0 %v3237_v44, %s4121_s10 }
 0x440   : > { %v2756_v51 = vadd.f32 %v2754_v13, %v2728_v9  ;;  %v2760_v43 = vadd.f32 %v2758_v39, %v2740_v48  ;;  %v3341_v48 = vmul.f32 %v3340_v1, %v5926_v0  ;;  %v3353_v13 = vstv %s5959_s9  ;;  %s3884_s9 = sld [smem:[#allocation9 + $0x1e]] }
 0x441   : > { %v2737_v45 = vpop.permute.xlu1 %2736  ;;  %v2771_v32 = vpop.permute.xlu0 %2770  ;;  %v3354_v63 = vmul.f32 %v3353_v13, %v5926_v0 }
 0x442   : > { %v2741_v11 = vadd.f32 %v2737_v45, %v2699_v19  ;;  %v2776_v52 = vadd.f32 %v2771_v32, %v2750_v4  ;;  %v3327_v4 = vstv %s5941_s26  ;;  %v2862_v45 = vmul.f32 %v2861_v2, %v5650_v61  ;;  %s3867_s26 = sld [smem:[#allocation9 + $0x3c]] }
 0x443   : > { %3243 = vrot.lane.b32.xlu1 %v3238_v21, %s4121_s10  ;;  %3254 = vrot.lane.b32.xlu0 %v3250_v50, %s4121_s10  ;;  %v3328_v16 = vmul.f32 %v3327_v4, %v5926_v0  ;;  %v3329_v9 = vmul.f32 %v3327_v4, %v5938_v29 }
 0x444   : > { %v2761_v57 = vadd.f32 %v2759_v5, %v2741_v11 }
 0x445   : > { %v2773_v30 = vpop.permute.xlu1 %2772  ;;  %v2784_v35 = vpop.permute.xlu0 %2783 }
 0x446   : > { %v2777_v34 = vadd.f32 %v2773_v30, %v2751_v26  ;;  %v2789_v27 = vadd.f32 %v2784_v35, %v2755_v49  ;;  %v2853_v26 = vmul.f32 %v2851_v54, %v5664_v59  ;;  %v2857_v49 = vmul.f32 %v2856_v15, %v5650_v61  ;;  %v5987_v30 = vld [vmem:[#allocation3 + $0x69] sm:$0xff] }
 0x447   : > { %3256 = vrot.lane.b32.xlu1 %v3251_v10, %s4121_s10  ;;  %3290 = vrot.lane.b32.xlu0 %v3286_v56, %s4120_s6  ;;  %v3389_v61 = vstv %s5971_s16  ;;  %v2863_v35 = vmul.f32 %v2861_v2, %v5664_v59  ;;  %s3885_s16 = sld [smem:[#allocation9 + $0x42]] }
 0x448   : > { %v3390_v3 = vmul.f32 %v3389_v61, %v5987_v30 }
 0x449   : > { %v2786_v41 = vpop.permute.xlu1 %2785  ;;  %v2797_v42 = vpop.permute.xlu0 %2796 }
 0x44a   : > { %v2790_v18 = vadd.f32 %v2786_v41, %v2756_v51  ;;  %v2802_v6 = vadd.f32 %v2797_v42, %v2760_v43  ;;  %v2858_v43 = vmul.f32 %v2856_v15, %v5664_v59  ;;  %v3402_v59 = vstv %s5981_s11  ;;  %s6061_s11 = sld [smem:[#allocation9 + $0x66]] }
 0x44b   : > { %3292 = vrot.lane.b32.xlu1 %v3287_v46, %s4120_s6  ;;  %3303 = vrot.lane.b32.xlu0 %v3299_v36, %s4120_s6  ;;  %v5999_v46 = vld [vmem:[#allocation3 + $0x71] sm:$0xff]  ;;  %v3403_v37 = vmul.f32 %v3402_v59, %v5987_v30 }
 0x44d   : > { %v2799_v17 = vpop.permute.xlu1 %2798  ;;  %v2813_v19 = vpop.permute.xlu0 %2812 }
 0x44e   : > { %v2803_v7 = vadd.f32 %v2799_v17, %v2761_v57  ;;  %v2818_v12 = vadd.f32 %v2813_v19, %v2776_v52  ;;  %v3342_v52 = vmul.f32 %v3340_v1, %v5938_v29  ;;  %v3415_v19 = vstv %s5991_s12  ;;  %s3893_s12 = sld [smem:[#allocation9 + $0x21]] }
 0x44f   : > { %3305 = vrot.lane.b32.xlu1 %v3300_v14, %s4120_s6  ;;  %3316 = vrot.lane.b32.xlu0 %v3312_v23, %s4120_s6  ;;  %v2955_v14 = vstv %s5995_s13  ;;  %v3416_v4 = vmul.f32 %v3415_v19, %v5987_v30  ;;  %s3894_s13 = sld [smem:[#allocation9 + $0x45]] }
 0x450   : > { %v2854_v55 = vadd.f32 %v2852_v20, %v2818_v12  ;;  %v3404_v12 = vmul.f32 %v3402_v59, %v5999_v46 }
 0x451   : > { %v2815_v58 = vpop.permute.xlu1 %2814  ;;  %v2826_v33 = vpop.permute.xlu0 %2825 }
 0x452   : > { %v2819_v24 = vadd.f32 %v2815_v58, %v2777_v34  ;;  %v2831_v47 = vadd.f32 %v2826_v33, %v2789_v27  ;;  %v3355_v27 = vmul.f32 %v3353_v13, %v5938_v29  ;;  %v2956_v58 = vmul.f32 %v2955_v14, %v5725_v28 }
 0x453   : > { %3318 = vrot.lane.b32.xlu1 %v3313_v53, %s4120_s6  ;;  %3332 = vrot.lane.b32.xlu0 %v3328_v16, %s4121_s10  ;;  %v2960_v33 = vstv %s6006_s15  ;;  %s3902_s15 = sld [smem:[#allocation9 + $0x6c]] }
 0x454   : > { %v2855_v62 = vadd.f32 %v2853_v26, %v2819_v24  ;;  %v2859_v25 = vadd.f32 %v2857_v49, %v2831_v47  ;;  %v3417_v24 = vmul.f32 %v3415_v19, %v5999_v46  ;;  %v3444_v26 = vstv %s6010_s17  ;;  %s269_s17 = sand.u32 1, %s4105_s19  }
 0x455   : > { %v2828_v44 = vpop.permute.xlu1 %2827  ;;  %v2839_v31 = vpop.permute.xlu0 %2838 }
 0x456   : > { %v2832_v39 = vadd.f32 %v2828_v44, %v2790_v18  ;;  %v2844_v51 = vadd.f32 %v2839_v31, %v2802_v6  ;;  %v3391_v6 = vmul.f32 %v3389_v61, %v5999_v46  ;;  %v2965_v44 = vstv %s6016_s23  ;;  %s6080_s23 = sld [smem:[#allocation9 + $0x6d]] }
 0x457   : > { %3334 = vrot.lane.b32.xlu1 %v3329_v9, %s4121_s10  ;;  %3345 = vrot.lane.b32.xlu0 %v3341_v48, %s4121_s10 }
 0x458   : > { %v2860_v32 = vadd.f32 %v2858_v43, %v2832_v39  ;;  %v2864_v21 = vadd.f32 %v2862_v45, %v2844_v51  ;;  %v3445_v51 = vmul.f32 %v3444_v26, %v5987_v30  ;;  %v3457_v43 = vstv %s6020_s25  ;;  %s3914_s25 = smul.u32 48, %s269_s17 }
 0x459   : > { %v2841_v50 = vpop.permute.xlu1 %2840  ;;  %v2875_v11 = vpop.permute.xlu0 %2874  ;;  %v3458_v61 = vmul.f32 %v3457_v43, %v5987_v30 }
 0x45a   : > { %v2845_v5 = vadd.f32 %v2841_v50, %v2803_v7  ;;  %v2880_v57 = vadd.f32 %v2875_v11, %v2854_v55  ;;  %v3431_v55 = vstv %s6002_s14  ;;  %v2966_v50 = vmul.f32 %v2965_v44, %v5725_v28  ;;  %s6070_s14 = sld [smem:[#allocation9 + $0x69]] }
 0x45b   : > { %3347 = vrot.lane.b32.xlu1 %v3342_v52, %s4121_s10  ;;  %3358 = vrot.lane.b32.xlu0 %v3354_v63, %s4121_s10  ;;  %v3432_v47 = vmul.f32 %v3431_v55, %v5987_v30  ;;  %v3433_v39 = vmul.f32 %v3431_v55, %v5999_v46 }
 0x45c   : > { %v2865_v10 = vadd.f32 %v2863_v35, %v2845_v5 }
 0x45d   : > { %v2877_v56 = vpop.permute.xlu1 %2876  ;;  %v2888_v34 = vpop.permute.xlu0 %2887 }
 0x45e   : > { %v2881_v41 = vadd.f32 %v2877_v56, %v2855_v62  ;;  %v2893_v42 = vadd.f32 %v2888_v34, %v2859_v25  ;;  %v2957_v62 = vmul.f32 %v2955_v14, %v5739_v22  ;;  %v2961_v25 = vmul.f32 %v2960_v33, %v5725_v28 }
 0x45f   : > { %3360 = vrot.lane.b32.xlu1 %v3355_v27, %s4121_s10  ;;  %3394 = vrot.lane.b32.xlu0 %v3390_v3, %s4120_s6  ;;  %v2967_v56 = vmul.f32 %v2965_v44, %v5739_v22  ;;  %v3459_v3 = vmul.f32 %v3457_v43, %v5999_v46 }
 0x461   : > { %v2890_v36 = vpop.permute.xlu1 %2889  ;;  %v2901_v18 = vpop.permute.xlu0 %2900 }
 0x462   : > { %v2894_v54 = vadd.f32 %v2890_v36, %v2860_v32  ;;  %v2906_v17 = vadd.f32 %v2901_v18, %v2864_v21  ;;  %v2962_v21 = vmul.f32 %v2960_v33, %v5739_v22  ;;  %v3069_v33 = vstv %s3868_s30  ;;  %s3915_s30 = smul.u32 768, %s4176_s22  ;;  %s6104_s22 = scalar_lea.sflag [#allocation5], %s269_s17 }
 0x463   : > { %3396 = vrot.lane.b32.xlu1 %v3391_v6, %s4120_s6  ;;  %3407 = vrot.lane.b32.xlu0 %v3403_v37, %s4120_s6 }
 0x465   : > { %v2903_v23 = vpop.permute.xlu1 %2902  ;;  %v2917_v7 = vpop.permute.xlu0 %2916 }
 0x466   : > { %v2907_v20 = vadd.f32 %v2903_v23, %v2865_v10  ;;  %v2922_v15 = vadd.f32 %v2917_v7, %v2880_v57  ;;  %v3446_v57 = vmul.f32 %v3444_v26, %v5999_v46  ;;  %v3064_v23 = vstv %s3867_s26  ;;  %s271_s26 = scalar_lea.vmem [#allocation10], %s3914_s25 }
 0x467   : > { %3409 = vrot.lane.b32.xlu1 %v3404_v12, %s4120_s6  ;;  %3420 = vrot.lane.b32.xlu0 %v3416_v4, %s4120_s6 }
 0x468   : > { %v2958_v53 = vadd.f32 %v2956_v58, %v2922_v15  ;;  %v3065_v58 = vmul.f32 %v3064_v23, %v5798_v40 }
 0x469   : > { %v2919_v16 = vpop.permute.xlu1 %2918  ;;  %v2930_v1 = vpop.permute.xlu0 %2929 }
 0x46a   : > { %v2923_v49 = vadd.f32 %v2919_v16, %v2881_v41  ;;  %v2935_v2 = vadd.f32 %v2930_v1, %v2893_v42 }
 0x46b   : > { %3422 = vrot.lane.b32.xlu1 %v3417_v24, %s4120_s6  ;;  %3436 = vrot.lane.b32.xlu0 %v3432_v47, %s4121_s10  ;;  %s3866_s6 = sld [smem:[#allocation9 + $0x18]] }
 0x46c   : > { %v2959_v31 = vadd.f32 %v2957_v62, %v2923_v49  ;;  %v2963_v9 = vadd.f32 %v2961_v25, %v2935_v2  ;;  %v3066_v49 = vmul.f32 %v3064_v23, %v5812_v60  ;;  %v3070_v2 = vmul.f32 %v3069_v33, %v5798_v40 }
 0x46d   : > { %v2932_v48 = vpop.permute.xlu1 %2931  ;;  %v2943_v13 = vpop.permute.xlu0 %2942 }
 0x46e   : > { %v2936_v45 = vadd.f32 %v2932_v48, %v2894_v54  ;;  %v2948_v32 = vadd.f32 %v2943_v13, %v2906_v17  ;;  %v3071_v13 = vmul.f32 %v3069_v33, %v5812_v60 }
 0x46f   : > { %3438 = vrot.lane.b32.xlu1 %v3433_v39, %s4121_s10  ;;  %3449 = vrot.lane.b32.xlu0 %v3445_v51, %s4121_s10 }
 0x470   : > { %v2964_v11 = vadd.f32 %v2962_v21, %v2936_v45  ;;  %v2968_v52 = vadd.f32 %v2966_v50, %v2948_v32 }
 0x471   : > { %v2945_v63 = vpop.permute.xlu1 %2944  ;;  %v2979_v5 = vpop.permute.xlu0 %2978  ;;  %v3059_v22 = vstv %s3866_s6  ;;  %s6084_s6 = sld [smem:[#allocation9 + $0x6e]] }
 0x472   : > { %v2949_v35 = vadd.f32 %v2945_v63, %v2907_v20  ;;  %v2984_v10 = vadd.f32 %v2979_v5, %v2958_v53  ;;  %v3060_v14 = vmul.f32 %v3059_v22, %v5798_v40  ;;  %v3061_v55 = vmul.f32 %v3059_v22, %v5812_v60 }
 0x473   : > { %3451 = vrot.lane.b32.xlu1 %v3446_v57, %s4121_s10  ;;  %3462 = vrot.lane.b32.xlu0 %v3458_v61, %s4121_s10  ;;  %v3168_v60 = vstv %s3876_s7 }
 0x474   : > { %v2969_v28 = vadd.f32 %v2967_v56, %v2949_v35 }
 0x475   : > { %v2981_v34 = vpop.permute.xlu1 %2980  ;;  %v2992_v27 = vpop.permute.xlu0 %2991 }
 0x476   : > { %v2985_v41 = vadd.f32 %v2981_v34, %v2959_v31  ;;  %v2997_v42 = vadd.f32 %v2992_v27, %v2963_v9 }
 0x477   : > { %3464 = vrot.lane.b32.xlu1 %v3459_v3, %s4121_s10  ;;  %s3875_s10 = sld [smem:[#allocation9 + $0x1b]] }
 0x479   : > { %v2994_v59 = vpop.permute.xlu1 %2993  ;;  %v3005_v36 = vpop.permute.xlu0 %3004 }
 0x47a   : > { %v2998_v18 = vadd.f32 %v2994_v59, %v2964_v11  ;;  %v3010_v6 = vadd.f32 %v3005_v36, %v2968_v52 }
 0x47d   : > { %v3007_v37 = vpop.permute.xlu1 %3006  ;;  %v3021_v54 = vpop.permute.xlu0 %3020  ;;  %v3163_v40 = vstv %s3875_s10  ;;  %s3505_s10 = sshll.u32 %s271_s26, 4  ;;  %s6094_s10 = int_to_ptr.vmem [resolvable:$true] %s3505_s10 }
 0x47e   : > { %v3011_v17 = vadd.f32 %v3007_v37, %v2969_v28  ;;  %v3026_v19 = vadd.f32 %v3021_v54, %v2984_v10  ;;  %v3164_v35 = vmul.f32 %v3163_v40, %v5865_v38  ;;  %v3165_v3 = vmul.f32 %v3163_v40, %v5877_v8 }
 0x47f   : > { %v3170_v54 = vmul.f32 %v3168_v60, %v5877_v8 }
 0x480   : > { %v3062_v7 = vadd.f32 %v3060_v14, %v3026_v19 }
 0x481   : > { %v3023_v12 = vpop.permute.xlu1 %3022  ;;  %v3034_v4 = vpop.permute.xlu0 %3033 }
 0x482   : > { %v3027_v20 = vadd.f32 %v3023_v12, %v2985_v41  ;;  %v3039_v15 = vadd.f32 %v3034_v4, %v2997_v42  ;;  %v3169_v41 = vmul.f32 %v3168_v60, %v5865_v38  ;;  %v3173_v42 = vstv %s3877_s8 }
 0x483   : > { %v3175_v4 = vmul.f32 %v3173_v42, %v5877_v8 }
 0x484   : > { %v3063_v53 = vadd.f32 %v3061_v55, %v3027_v20  ;;  %v3067_v16 = vadd.f32 %v3065_v58, %v3039_v15 }
 0x485   : > { %v3036_v1 = vpop.permute.xlu1 %3035  ;;  %v3047_v24 = vpop.permute.xlu0 %3046 }
 0x486   : > { %v3040_v47 = vadd.f32 %v3036_v1, %v2998_v18  ;;  %v3052_v26 = vadd.f32 %v3047_v24, %v3010_v6 }
 0x488   : > { %v3068_v62 = vadd.f32 %v3066_v49, %v3040_v47  ;;  %v3072_v25 = vadd.f32 %v3070_v2, %v3052_v26  ;;  %v3272_v26 = vstv %s3885_s16  ;;  %s4045_s16 = scalar_lea.vmem %s6094_s10, 768 }
 0x489   : > { %v3049_v44 = vpop.permute.xlu1 %3048  ;;  %v3083_v31 = vpop.permute.xlu0 %3082  ;;  %p4046_p12 = scmp.ne.s32.totalorder %s6094_s10, %s4045_s16 }
 0x48a   : > { %v3053_v9 = vadd.f32 %v3049_v44, %v3011_v17  ;;  %v3088_v48 = vadd.f32 %v3083_v31, %v3062_v7  ;;  %v3174_v17 = vmul.f32 %v3173_v42, %v5865_v38 }
 0x48b   : > { %p4047_p3 = pnand %p4046_p12, %p6162_p2 }
 0x48c   : > { %v3073_v39 = vadd.f32 %v3071_v13, %v3053_v9  ;;  %v3277_v13 = vstv %s6061_s11  ;;  %s4122_s11 = smov [#allocation10]  }
 0x48d   : > { %v3085_v51 = vpop.permute.xlu1 %3084  ;;  %v3096_v43 = vpop.permute.xlu0 %3095  ;;  %v3278_v40 = vmul.f32 %v3277_v13, %v5926_v0  ;;  %p4048_p4 = pneg %p4047_p3 }
 0x48e   : > { %v3089_v45 = vadd.f32 %v3085_v51, %v3063_v53  ;;  %v3101_v32 = vadd.f32 %v3096_v43, %v3067_v16  ;;  %v3267_v53 = vstv %s3884_s9  ;;  %s6099_s9 = scalar_lea.hbm %s6149_s5, %s3915_s30 }
 0x48f   : > { %v3268_v47 = vmul.f32 %v3267_v53, %v5926_v0  ;;  %v3269_v9 = vmul.f32 %v3267_v53, %v5938_v29 }
 0x491   : > { %v3098_v21 = vpop.permute.xlu1 %3097  ;;  %v3109_v50 = vpop.permute.xlu0 %3108 }
 0x492   : > { %v3102_v11 = vadd.f32 %v3098_v21, %v3068_v62  ;;  %v3114_v52 = vadd.f32 %v3109_v50, %v3072_v25 }
 0x495   : > { %v3111_v63 = vpop.permute.xlu1 %3110  ;;  %v3125_v5 = vpop.permute.xlu0 %3124 }
 0x496   : > { %v3115_v57 = vadd.f32 %v3111_v63, %v3073_v39  ;;  %v3130_v61 = vadd.f32 %v3125_v5, %v3088_v48  ;;  %v3273_v48 = vmul.f32 %v3272_v26, %v5926_v0 }
 0x498   : > { %v3166_v10 = vadd.f32 %v3164_v35, %v3130_v61 }
 0x499   : > { %v3127_v56 = vpop.permute.xlu1 %3126  ;;  %v3138_v28 = vpop.permute.xlu0 %3137 }
 0x49a   : > { %v3131_v34 = vadd.f32 %v3127_v56, %v3089_v45  ;;  %v3143_v27 = vadd.f32 %v3138_v28, %v3101_v32 }
 0x49c   : > { %v3167_v59 = vadd.f32 %v3165_v3, %v3131_v34  ;;  %v3171_v36 = vadd.f32 %v3169_v41, %v3143_v27  ;;  %v3371_v41 = vstv %s3893_s12  ;;  %s4049_s12 = sshll.u32 %s4122_s11, 4  ;;  %s4050_s12 = int_to_ptr.vmem [resolvable:$false] %s4049_s12 }
 0x49d   : > { %v3140_v18 = vpop.permute.xlu1 %3139  ;;  %v3151_v6 = vpop.permute.xlu0 %3150  ;;  %p4052_p9 = scmp.lt.s32.totalorder %s6094_s10, %s4050_s12 }
 0x49e   : > { %v3144_v22 = vadd.f32 %v3140_v18, %v3102_v11  ;;  %v3156_v37 = vadd.f32 %v3151_v6, %v3114_v52  ;;  %v3274_v52 = vmul.f32 %v3272_v26, %v5938_v29  ;;  %v3372_v18 = vmul.f32 %v3371_v41, %v5987_v30 }
 0x49f   : > { %v3376_v6 = vstv %s3894_s13  ;;  %s4051_s13 = scalar_lea.vmem %s4050_s12, 1536 }
 0x4a0   : > { %v3172_v19 = vadd.f32 %v3170_v54, %v3144_v22  ;;  %v3176_v14 = vadd.f32 %v3174_v17, %v3156_v37  ;;  %p4053_p7 = scmp.lt.s32.totalorder %s4051_s13, %s4045_s16 }
 0x4a1   : > { %v3153_v23 = vpop.permute.xlu1 %3152  ;;  %v3187_v7 = vpop.permute.xlu0 %3186 }
 0x4a2   : > { %v3157_v12 = vadd.f32 %v3153_v23, %v3115_v57  ;;  %v3192_v16 = vadd.f32 %v3187_v7, %v3166_v10  ;;  %v3279_v10 = vmul.f32 %v3277_v13, %v5938_v29  ;;  %v3373_v23 = vmul.f32 %v3371_v41, %v5999_v46  ;;  %p4054_p5 = por %p4053_p7, %p4052_p9 }
 0x4a3   : > { %v3377_v7 = vmul.f32 %v3376_v6, %v5987_v30 }
 0x4a4   : > { %v3177_v20 = vadd.f32 %v3175_v4, %v3157_v12  ;;  %v3381_v12 = vstv %s6070_s14  ;;  %p4055_p6 = pnand %p4054_p5, %p4048_p4 }
 0x4a5   : > { %v3189_v15 = vpop.permute.xlu1 %3188  ;;  %v3200_v55 = vpop.permute.xlu0 %3199 }
 0x4a6   : > { %v3193_v49 = vadd.f32 %v3189_v15, %v3167_v59  ;;  %v3205_v8 = vadd.f32 %v3200_v55, %v3171_v36 }
 0x4a9   : > { %v3202_v58 = vpop.permute.xlu1 %3201  ;;  %v3213_v33 = vpop.permute.xlu0 %3212 }
 0x4aa   : > { %v3206_v39 = vadd.f32 %v3202_v58, %v3172_v19  ;;  %v3218_v51 = vadd.f32 %v3213_v33, %v3176_v14 }
 0x4ad   : > { %v3215_v38 = vpop.permute.xlu1 %3214  ;;  %v3229_v1 = vpop.permute.xlu0 %3228 }
 0x4ae   : > { %v3234_v24 = vadd.f32 %v3229_v1, %v3192_v16  ;;  %v3219_v63 = vadd.f32 %v3215_v38, %v3177_v20  ;;  %v3378_v38 = vmul.f32 %v3376_v6, %v5999_v46  ;;  %v3382_v1 = vmul.f32 %v3381_v12, %v5987_v30 }
 0x4b0   : > { %v3270_v2 = vadd.f32 %v3268_v47, %v3234_v24 }
 0x4b1   : > { %v3231_v62 = vpop.permute.xlu1 %3230  ;;  %v3242_v25 = vpop.permute.xlu0 %3241 }
 0x4b2   : > { %v3235_v44 = vadd.f32 %v3231_v62, %v3193_v49  ;;  %v3247_v31 = vadd.f32 %v3242_v25, %v3205_v8  ;;  %v3383_v62 = vmul.f32 %v3381_v12, %v5999_v46 }
 0x4b4   : > { %v3271_v43 = vadd.f32 %v3269_v9, %v3235_v44  ;;  %v3275_v45 = vadd.f32 %v3273_v48, %v3247_v31 }
 0x4b5   : > { %v3244_v32 = vpop.permute.xlu1 %3243  ;;  %v3255_v21 = vpop.permute.xlu0 %3254 }
 0x4b6   : > { %v3248_v50 = vadd.f32 %v3244_v32, %v3206_v39  ;;  %v3260_v11 = vadd.f32 %v3255_v21, %v3218_v51  ;;  %v3471_v39 = vstv %s3902_s15 }
 0x4b8   : > { %v3276_v5 = vadd.f32 %v3274_v52, %v3248_v50  ;;  %v3280_v57 = vadd.f32 %v3278_v40, %v3260_v11  ;;  %v3478_v50 = vstv %s6080_s23 }
 0x4b9   : > { %v3257_v61 = vpop.permute.xlu1 %3256  ;;  %v3291_v35 = vpop.permute.xlu0 %3290 }
 0x4ba   : > { %v3261_v60 = vadd.f32 %v3257_v61, %v3219_v63  ;;  %v3296_v0 = vadd.f32 %v3291_v35, %v3270_v2 }
 0x4bc   : > { %v3281_v56 = vadd.f32 %v3279_v10, %v3261_v60  ;;  %v3485_v60 = vstv %s6084_s6 }
 0x4bd   : > { %v3293_v28 = vpop.permute.xlu1 %3292  ;;  %v3304_v34 = vpop.permute.xlu0 %3303 }
 0x4be   : > { %v3297_v22 = vadd.f32 %v3293_v28, %v3271_v43  ;;  %v3309_v29 = vadd.f32 %v3304_v34, %v3275_v45 }
 0x4c1   : > { %v3306_v27 = vpop.permute.xlu1 %3305  ;;  %v3317_v3 = vpop.permute.xlu0 %3316 }
 0x4c2   : > { %v3310_v4 = vadd.f32 %v3306_v27, %v3276_v5  ;;  %v3322_v20 = vadd.f32 %v3317_v3, %v3280_v57 }
 0x4c5   : > { %v3319_v42 = vpop.permute.xlu1 %3318  ;;  %v3333_v59 = vpop.permute.xlu0 %3332 }
 0x4c6   : > { %v3338_v36 = vadd.f32 %v3333_v59, %v3296_v0  ;;  %v3323_v24 = vadd.f32 %v3319_v42, %v3281_v56 }
 0x4c8   : > { %v3374_v37 = vadd.f32 %v3372_v18, %v3338_v36 }
 0x4c9   : > { %v3335_v54 = vpop.permute.xlu1 %3334  ;;  %v3346_v17 = vpop.permute.xlu0 %3345 }
 0x4ca   : > { %v3339_v19 = vadd.f32 %v3335_v54, %v3297_v22  ;;  %v3351_v14 = vadd.f32 %v3346_v17, %v3309_v29 }
 0x4cc   : > { %v3375_v15 = vadd.f32 %v3373_v23, %v3339_v19  ;;  %v3379_v55 = vadd.f32 %v3377_v7, %v3351_v14 }
 0x4cd   : > { %v3348_v58 = vpop.permute.xlu1 %3347  ;;  %v3359_v33 = vpop.permute.xlu0 %3358 }
 0x4ce   : > { %v3352_v53 = vadd.f32 %v3348_v58, %v3310_v4  ;;  %v3364_v16 = vadd.f32 %v3359_v33, %v3322_v20 }
 0x4d0   : > { %v3380_v47 = vadd.f32 %v3378_v38, %v3352_v53  ;;  %v3384_v26 = vadd.f32 %v3382_v1, %v3364_v16 }
 0x4d1   : > { %v3361_v49 = vpop.permute.xlu1 %3360  ;;  %v3395_v8 = vpop.permute.xlu0 %3394 }
 0x4d2   : > { %v3365_v2 = vadd.f32 %v3361_v49, %v3323_v24  ;;  %v3400_v30 = vadd.f32 %v3395_v8, %v3374_v37 }
 0x4d4   : > { %v3385_v25 = vadd.f32 %v3383_v62, %v3365_v2 }
 0x4d5   : > { %v3397_v44 = vpop.permute.xlu1 %3396  ;;  %v3408_v31 = vpop.permute.xlu0 %3407 }
 0x4d6   : > { %v3401_v46 = vadd.f32 %v3397_v44, %v3375_v15  ;;  %v3413_v45 = vadd.f32 %v3408_v31, %v3379_v55 }
 0x4d9   : > { %v3410_v9 = vpop.permute.xlu1 %3409  ;;  %v3421_v48 = vpop.permute.xlu0 %3420 }
 0x4da   : > { %v3414_v63 = vadd.f32 %v3410_v9, %v3380_v47  ;;  %v3426_v5 = vadd.f32 %v3421_v48, %v3384_v26 }
 0x4dd   : > { %v3423_v13 = vpop.permute.xlu1 %3422  ;;  %v3437_v51 = vpop.permute.xlu0 %3436 }
 0x4de   : > { %v3442_v43 = vadd.f32 %v3437_v51, %v3400_v30  ;;  %v3427_v34 = vadd.f32 %v3423_v13, %v3385_v25 }
 0x4e0   : > { %v3472_v32 = vadd.f32 %v3471_v39, %v3442_v43 }
 0x4e1   : > { %v3439_v21 = vpop.permute.xlu1 %3438  ;;  %v3450_v11 = vpop.permute.xlu0 %3449 }
 0x4e2   : > { %3475 = vst.msk [vmem:[%s271_s26] sm:$0xff] %vm3474_vm1, %v3472_v32  ;;  %v3443_v52 = vadd.f32 %v3439_v21, %v3401_v46  ;;  %v3455_v40 = vadd.f32 %v3450_v11, %v3413_v45 }
 0x4e4   : > { %v3473_v57 = vadd.f32 %v3471_v39, %v3443_v52  ;;  %v3479_v61 = vadd.f32 %v3478_v50, %v3455_v40 }
 0x4e5   : > { %v3452_v35 = vpop.permute.xlu1 %3451  ;;  %v3463_v10 = vpop.permute.xlu0 %3462 }
 0x4e6   : > { %3476 = vst.msk [vmem:[%s271_s26 + $0x8] sm:$0xff] %vm3474_vm1, %v3473_v57  ;;  %3904 = vst.msk [vmem:[%s271_s26 + $0x10] sm:$0xff] %vm3474_vm1, %v3479_v61  ;;  %v3456_v56 = vadd.f32 %v3452_v35, %v3414_v63  ;;  %v3468_v28 = vadd.f32 %v3463_v10, %v3426_v5 }
 0x4e8   : > { %v3480_v27 = vadd.f32 %v3478_v50, %v3456_v56  ;;  %v3486_v3 = vadd.f32 %v3485_v60, %v3468_v28 }
 0x4e9   : > { %v3465_v41 = vpop.permute.xlu1 %3464 }
 0x4ea   : > { %3905 = vst.msk [vmem:[%s271_s26 + $0x18] sm:$0xff] %vm3474_vm1, %v3480_v27  ;;  %3907 = vst.msk [vmem:[%s271_s26 + $0x20] sm:$0xff] %vm3474_vm1, %v3486_v3  ;;  %v3469_v0 = vadd.f32 %v3465_v41, %v3427_v34 }
 0x4ec   : > { %v3487_v42 = vadd.f32 %v3485_v60, %v3469_v0 }
 0x4ee   : > { %3908 = vst.msk [vmem:[%s271_s26 + $0x28] sm:$0xff] %vm3474_vm1, %v3487_v42 }
 0x4ef   : > { %4058 = shalt.err (!%p4055_p6)
}
 0x4f0   : > { %s4059_s14 = scalar_lea.hbm %s6099_s9, 768  ;;  %s4063_s23 = scalar_lea.hbm %s6149_s5, 1536 }
 0x4f1   : > { %p4060_p10 = scmp.ne.s32.totalorder %s6099_s9, %s4059_s14  ;;  %p4064_p11 = scmp.lt.s32.totalorder %s6099_s9, %s6149_s5 }
 0x4f2   : > { %p4065_p13 = scmp.lt.s32.totalorder %s4063_s23, %s4059_s14 }
 0x4f3   : > { %p4061_p8 = pnand %p4060_p10, %p6162_p2 }
 0x4f4   : > { %p4066_p1 = por %p4065_p13, %p4064_p11 }
 0x4f5   : > { %p4062_p0 = pneg %p4061_p8 }
 0x4f7   : > { %p4067_p12 = pnand %p4066_p1, %p4062_p0 }
 0x4f9   : > { %4070 = shalt.err (!%p4067_p12)
}
 0x4fa   : > { %s4123_s26 = smov 128   ;;  %s4124_s30 = smov 8  }
 0x4fb   : > { %3928 = dma.vmem_to_hbm [thread:$0]  (%p6162_p2), %s6094_s10, 768, %s6099_s9, %s6104_s22, %s4123_s26, %s4123_s26, %s4124_s30  }
 0x4fc PF: > { %p3950_p3 = scmp.ge.s32.totalorder %s4113_s21, 2  ;;  %s3520_s7 = sand.u32 1, %s4101_s18  }
 0x4fd   : > { %p6163_p4 = scmp.ne.s32.totalorder %s6154_s29, 0  ;;  %s3521_s8 = scalar_lea.sflag [#allocation5], %s3520_s7 }
 0x4ff   : > { %p3941_p9 = pnand %p3950_p3, %p6163_p4 }
 0x501   : > { %p3942_p7 = pneg %p3941_p9 }
 0x503   : > { %4096 = dma.done.wait (%p3942_p7), %s3521_s8, 768  }
 0x504   : > { %4098 = vsyncadd (%p3942_p7), %s3521_s8, 4294966528  ;;  %p17_p5 = scmp.ge.s32.totalorder %s4180_s24, 4   ;;  %s6164_s18 = smov %s4105_s19 }
 0x505   : > { %s6165_s19 = smov %s4109_s20  ;;  %s6166_s20 = smov %s4191_s27 }
 0x506   : > { %s6167_s21 = smov %s4180_s24  ;;  %19 = sbr.rel (!%p17_p5) target bundleno = 5 (0x5), region = 102 }
 0x50b   :  { %3526 = vsyncpa [#allocation5], 1 }
 0x50c   :  { %3528 = vsyncpa [#allocation5 + $0x1], 1 }
 0x50d   :  { %3529 = vsyncpa [#allocation6], 1 }
 0x50e   :  { %3531 = vsyncpa [#allocation6 + $0x1], 1 }
 0x50f   :  { %3532 = vsyncpa [#allocation8], 1 }

</bundles_post_ra>
